<compile_context>
chip_gen: v7x
topology: tpu7x:2x2x1
jax: 0.10.0
libtpu: 0.0.40
codegen_flags: <defaults>
</compile_context>

<pallas_src>
import functools

import jax
import jax.numpy as jnp
from jax import lax
from jax.experimental import pallas as pl
from jax.experimental.pallas import tpu as pltpu


# --------------------------------------------------------------------------- #
# Shared helper: LeakyReLU'd raw scores for one row tile, flat (TQ, K*N) layout
# --------------------------------------------------------------------------- #
def _leaky_scores(ss_tile, stt_flat, e_mat):
    """z[q, k*N + m] = LeakyReLU_0.2( ss[q, k] + st[m, k] ).

    ss_tile  (TQ, K)  f32   source logits for this row tile
    stt_flat (1, K*N) f32   target logits, head-major flattened
    e_mat    (K, K*N) f32   0/1 indicator, E[j, k*N+m] = (j == k)

    The per-head broadcast of ss is an exact MXU matmul against the indicator
    (HIGHEST precision so multiply-by-1.0 stays f32-exact) -> no 3-D broadcast,
    no relayout, and the VPU/XLU slots stay free for the elementwise work.
    """
    ss_rep = jnp.dot(ss_tile, e_mat, precision=lax.Precision.HIGHEST,
                     preferred_element_type=jnp.float32)       # (TQ, K*N)
    s = ss_rep + stt_flat
    return jnp.where(s > 0.0, s, 0.2 * s)                      # LeakyReLU(0.2)


# --------------------------------------------------------------------------- #
# Kernel A: global sum / sum-of-squares of the LeakyReLU'd logits
# --------------------------------------------------------------------------- #
def gat_stats_kernel(ss_ref, stt_ref, e_ref, sum_ref, sq_ref):
    """Grid = (num_row_tiles,).  Accumulates per-tile partial sums (within-tile
    tree reduction, only NT cross-tile adds -> no long running-sum error)."""
    i = pl.program_id(0)
    z = _leaky_scores(ss_ref[...], stt_ref[...], e_ref[...])   # (TQ, K*N) f32

    tsum = jnp.sum(jnp.sum(z, axis=1, keepdims=True), axis=0, keepdims=True)
    tsq = jnp.sum(jnp.sum(z * z, axis=1, keepdims=True), axis=0, keepdims=True)

    @pl.when(i == 0)
    def _init():
        sum_ref[...] = jnp.zeros_like(sum_ref)
        sq_ref[...] = jnp.zeros_like(sq_ref)

    sum_ref[...] = sum_ref[...] + tsum                         # (1,128)+(1,1)
    sq_ref[...] = sq_ref[...] + tsq


# --------------------------------------------------------------------------- #
# Kernel B: standardize, masked softmax, aggregate, ELU  (fully parallel grid)
# --------------------------------------------------------------------------- #
def gat_attn_kernel(stats_ref, ss_ref, stt_ref, e_ref, et_ref, ed_ref,
                    mask_ref, xpbd_ref, out_ref, *, num_heads):
    """Grid = (num_row_tiles,), dimension_semantics=("parallel",).

    stats_ref (2,)       f32 SMEM   [global mean, 1/std]
    ss_ref    (TQ, K)    f32        source logits (streamed)
    stt_ref   (1, K*N)   f32        target logits, flat (resident)
    e_ref     (K, K*N)   f32        per-head lane-block indicator (resident)
    et_ref    (K*N, K)   f32        its transpose (resident)
    ed_ref    (K, K*D)   f32        per-head D-block indicator (resident)
    mask_ref  (TQ, N)    int8       adjacency rows (streamed)
    xpbd_ref  (K*N, K*D) bf16       block-diagonal projected features (resident)
    out_ref   (TQ, K*D)  f32        elu(h_prime), heads concatenated, lane-dense
    """
    K = num_heads
    mean = stats_ref[0]
    inv_std = stats_ref[1]

    # TODO(synk): on v6e/v7x this elementwise/exp path could run in bf16
    # (native bf16 VPU/EUP, ~2x on the binding slot); kept f32 for accuracy
    # parity with the f32 reference and for v5e (no bf16 VALU/EUP).
    z = _leaky_scores(ss_ref[...], stt_ref[...], e_ref[...])   # (TQ, K*N) f32
    z = (z - mean) * inv_std                                   # global standardize

    # Replicate mask rows across the K head lane-blocks (K cheap vreg copies).
    m = mask_ref[...].astype(jnp.float32)                      # (TQ, N)
    m_rep = jnp.concatenate([m] * K, axis=1)                   # (TQ, K*N)

    # Per-row masked max shift: cancels exactly in the softmax, prevents
    # exp overflow / inf * 0 NaNs.
    zm = jnp.where(m_rep > 0.0, z, jnp.float32(-1e30))
    rmax = jnp.max(zm, axis=-1, keepdims=True)                 # (TQ, 1)
    sm = jnp.exp(zm - rmax)                                    # masked-out -> 0

    # Per-head denominator: segmented lane-block sum as an MXU matmul.
    denom = jnp.dot(sm, et_ref[...], precision=lax.Precision.HIGHEST,
                    preferred_element_type=jnp.float32)        # (TQ, K)
    inv = 1.0 / denom                                          # tiny -> exact divide

    # Unnormalized aggregation: ONE wide, lane-dense bf16 MXU matmul against
    # the block-diagonal value matrix, then the per-head 1/denominator is
    # applied in f32 on the (TQ, K*D) result (scalar factors out of the sum).
    hraw = jnp.dot(sm.astype(jnp.bfloat16), xpbd_ref[...],
                   preferred_element_type=jnp.float32)         # (TQ, K*D)
    inv_rep = jnp.dot(inv, ed_ref[...], precision=lax.Precision.HIGHEST,
                      preferred_element_type=jnp.float32)      # (TQ, K*D)
    h = hraw * inv_rep

    out_ref[...] = jnp.where(h > 0.0, h, jnp.exp(h) - 1.0)     # ELU


# --------------------------------------------------------------------------- #
# Generation-aware sizing helpers
# --------------------------------------------------------------------------- #
def _vmem_capacity_bytes(default=64 * 1024 * 1024):
    """Physical VMEM per TensorCore; conservative 64 MiB (v7x) fallback."""
    try:
        info = pltpu.get_tpu_info()
        cap = int(getattr(info, "vmem_capacity_bytes", 0))
        if cap > 0:
            return cap
    except Exception:
        pass
    return default


def _pick_row_tile(n, num_heads, vmem_cap, max_tile=256):
    """Largest row tile dividing N such that ~6 live f32 (TQ, K*N) temporaries
    of the attention pass stay under ~30% of this generation's VMEM."""
    budget = int(0.30 * vmem_cap)
    cap = max(8, budget // (6 * 4 * num_heads * n))
    cap = min(cap, max_tile)
    for t in (256, 128, 64, 32, 16, 8):
        if t <= cap and n % t == 0:
            return t
    return n  # fall back to a single whole-graph tile


def _vmem_limit_bytes(vmem_cap, num_heads, n, tq, out_dim):
    kn, kd = num_heads * n, num_heads * out_dim
    temps = 6 * tq * kn * 4                                    # live f32 flat tiles
    streamed = 2 * (tq * num_heads * 4 + tq * n * 1 + tq * kd * 4)
    resident = 2 * (kn * 4 + num_heads * kn * 4 + kn * num_heads * 4
                    + num_heads * kd * 4 + kn * kd * 2)
    est = temps + streamed + resident + (2 << 20)
    return int(min(max(2 * est, 32 << 20), int(0.70 * vmem_cap)))


# --------------------------------------------------------------------------- #
# Wrapper
# --------------------------------------------------------------------------- #
def gat_forward(x, mask, batch, params, *, num_heads, out_dim,
                is_final_layer=False, max_row_tile=256):
    N, F = x.shape
    K, D = num_heads, out_dim
    KD, KN = K * D, K * N

    vmem_cap = _vmem_capacity_bytes()
    TQ = _pick_row_tile(N, K, vmem_cap, max_tile=max_row_tile)
    NT = N // TQ
    vmem_limit = _vmem_limit_bytes(vmem_cap, K, N, TQ, D)

    # ---- hoisted projection & logits (O(N*F*KD): tiny vs O(K*N^2)) — XLA ----
    w_t = jnp.transpose(params["W_weight"]).astype(jnp.float32)     # (F, KD)
    b = params["W_bias"].reshape(1, KD).astype(jnp.float32)
    a_left = params["a_left"].astype(jnp.float32)                   # (1, K, D)
    a_right = params["a_right"].astype(jnp.float32)

    xp = x.astype(jnp.float32) @ w_t + b                            # (N, KD)
    xp3 = xp.reshape(N, K, D)
    ss = jnp.sum(xp3 * a_left, axis=-1)                             # (N, K)
    st = jnp.sum(xp3 * a_right, axis=-1)                            # (N, K)
    stt_flat = jnp.transpose(st).reshape(1, KN)                     # [0,k*N+m]=st[m,k]

    # 0/1 indicator matrices for the in-kernel per-head broadcasts/reductions.
    eye_k = jnp.eye(K, dtype=jnp.float32)
    E = jnp.repeat(eye_k, N, axis=1)                                # (K, KN)
    ET = jnp.transpose(E)                                           # (KN, K)
    ED = jnp.repeat(eye_k, D, axis=1)                               # (K, KD)

    # Block-diagonal value matrix (bf16) so the head aggregation is one wide
    # lane-dense MXU matmul.
    # TODO(synk): for large K*N switch to a batched (K, N, D) dot_general to
    # avoid the K^2 zero padding of the block-diagonal form.
    xp_bd = jnp.zeros((KN, KD), jnp.float32)
    for k in range(K):
        xp_bd = xp_bd.at[k * N:(k + 1) * N, k * D:(k + 1) * D].set(xp3[:, k, :])
    xp_bd = xp_bd.astype(jnp.bfloat16)

    mask_i8 = (mask > 0).astype(jnp.int8)                           # N^2 bytes streamed

    # Residents (stt_flat/E/ET/ED/xp_bd) are tiny after hoisting the projection,
    # so default double-buffering of them is negligible (no pl.Buffered needed).

    # ---- pass 0: global statistics --------------------------------------- #
    sum_out, sq_out = pl.pallas_call(
        gat_stats_kernel,
        out_shape=(jax.ShapeDtypeStruct((1, 128), jnp.float32),
                   jax.ShapeDtypeStruct((1, 128), jnp.float32)),
        grid_spec=pltpu.PrefetchScalarGridSpec(
            num_scalar_prefetch=0,
            grid=(NT,),
            in_specs=[
                pl.BlockSpec((TQ, K), lambda i: (i, 0)),            # ss (streamed)
                pl.BlockSpec((1, KN), lambda i: (0, 0)),            # stt (resident)
                pl.BlockSpec((K, KN), lambda i: (0, 0)),            # E   (resident)
            ],
            out_specs=(pl.BlockSpec((1, 128), lambda i: (0, 0)),
                       pl.BlockSpec((1, 128), lambda i: (0, 0)))),
        compiler_params=pltpu.CompilerParams(
            dimension_semantics=("arbitrary",),                     # accumulator
            vmem_limit_bytes=vmem_limit),
    )(ss, stt_flat, E)

    # Finalize mean / 1/std in plain XLA (a handful of scalar ops).
    cnt = float(K) * float(N) * float(N)
    total = sum_out[0, 0]
    totsq = sq_out[0, 0]
    mean = total / cnt
    var = (totsq - cnt * mean * mean) / (cnt - 1.0)                 # unbiased (torch.std)
    inv_std = lax.rsqrt(var)
    stats = jnp.stack([mean, inv_std]).astype(jnp.float32)          # (2,)

    # ---- pass 1: attention + aggregation (fully parallel row tiles) ------ #
    kernel_b = functools.partial(gat_attn_kernel, num_heads=K)
    concat_out = pl.pallas_call(
        kernel_b,
        out_shape=jax.ShapeDtypeStruct((N, KD), jnp.float32),
        grid_spec=pltpu.PrefetchScalarGridSpec(
            num_scalar_prefetch=0,
            grid=(NT,),
            in_specs=[
                pl.BlockSpec(memory_space=pltpu.MemorySpace.SMEM),  # stats (2,)
                pl.BlockSpec((TQ, K), lambda i: (i, 0)),            # ss     (streamed)
                pl.BlockSpec((1, KN), lambda i: (0, 0)),            # stt    (resident)
                pl.BlockSpec((K, KN), lambda i: (0, 0)),            # E      (resident)
                pl.BlockSpec((KN, K), lambda i: (0, 0)),            # E^T    (resident)
                pl.BlockSpec((K, KD), lambda i: (0, 0)),            # E_D    (resident)
                pl.BlockSpec((TQ, N), lambda i: (i, 0)),            # mask   (streamed, int8)
                pl.BlockSpec((KN, KD), lambda i: (0, 0)),           # xp_bd  (resident, bf16)
            ],
            out_specs=pl.BlockSpec((TQ, KD), lambda i: (i, 0))),
        compiler_params=pltpu.CompilerParams(
            dimension_semantics=("parallel",),                      # shards over 2 TCs on v7x
            vmem_limit_bytes=vmem_limit),
    )(stats, ss, stt_flat, E, ET, ED, mask_i8, xp_bd)

    if not is_final_layer:
        output = concat_out                                         # (N, K*F')  eq. (5)
    else:
        # Equation (6): average heads, then global max-pool per graph (XLA glue).
        avg = concat_out.reshape(N, K, D).mean(axis=1)              # (N, F')
        num_graphs = int(jnp.max(batch)) + 1
        output = jax.ops.segment_max(avg, batch, num_segments=num_graphs)
    return output, mask, batch


# --------------------------------------------------------------------------- #
# Pure-JAX f32 reference (mirror of the PyTorch forward, non-final-layer path)
# --------------------------------------------------------------------------- #
def gat_reference(x, mask, params, *, num_heads, out_dim):
    N = x.shape[0]
    K, D = num_heads, out_dim
    xp = x @ jnp.transpose(params["W_weight"]) + params["W_bias"]
    xp3 = xp.reshape(N, K, D)
    ss = (xp3 * params["a_left"]).sum(-1)                           # (N, K)
    st = (xp3 * params["a_right"]).sum(-1)                          # (N, K)
    score = ss[:, None, :] + st[None, :, :]                         # (N, N, K)
    score = jnp.where(score > 0, score, 0.2 * score)                # LeakyReLU(0.2)
    mean = score.mean()
    std = jnp.sqrt(((score - mean) ** 2).sum() / (score.size - 1))  # unbiased, torch.std
    score = jnp.exp((score - mean) / std)
    mask2 = mask[:, :, None]
    denom = (score * mask2).sum(1, keepdims=True)
    aij = (score / denom) * mask2
    aij = jnp.transpose(aij, (2, 0, 1))                             # (K, N, N)
    h = jnp.einsum('knm,mkf->nkf', aij, xp3)
    h = jnp.where(h > 0, h, jnp.exp(h) - 1.0)                       # ELU
    return h.reshape(N, -1)


if __name__ == "__main__":
    # Small shapes consistent with the module: N nodes, F features, K heads, F' out dim.
    N, F, K, D = 256, 32, 4, 16
    key = jax.random.PRNGKey(0)
    k_x, k_m, k_w, k_b, k_al, k_ar = jax.random.split(key, 6)

    x = jax.random.normal(k_x, (N, F), jnp.float32)
    # Random adjacency with self-loops: a zero-degree row would divide by zero,
    # exactly like the PyTorch module (documented precondition).
    adj = (jax.random.uniform(k_m, (N, N)) < 0.25).astype(jnp.float32)
    mask = jnp.maximum(adj, jnp.eye(N, dtype=jnp.float32))
    batch = jnp.zeros((N,), jnp.int32)

    params = {
        "W_weight": jax.random.normal(k_w, (K * D, F), jnp.float32)
                    * jnp.sqrt(2.0 / (F + K * D)),                  # xavier-ish scales
        "W_bias":   jax.random.normal(k_b, (K * D,), jnp.float32) * 0.01,
        "a_left":   jax.random.normal(k_al, (1, K, D), jnp.float32)
                    * jnp.sqrt(2.0 / (K * D + 1)),
        "a_right":  jax.random.normal(k_ar, (1, K, D), jnp.float32)
                    * jnp.sqrt(2.0 / (K * D + 1)),
    }
    # TODO(synk): self.linear (K*F' -> 2 classes) is defined in __init__ but never
    # used in forward(); dropout layers are identity in eval mode.

    out, _, _ = gat_forward(x, mask, batch, params, num_heads=K, out_dim=D,
                            is_final_layer=False, max_row_tile=128)  # 2 row tiles
    out = jax.block_until_ready(out)

    ref = gat_reference(x, mask, params, num_heads=K, out_dim=D)
    # Tolerance accounts for the bf16 aggregation inputs.
    if not jnp.allclose(out, ref, rtol=2e-2, atol=2e-2):
        err = float(jnp.max(jnp.abs(out - ref)))
        raise AssertionError(f"Pallas GAT kernel mismatch vs JAX reference (max|err|={err})")

    print("KERNEL_OK")
</pallas_src>

<mosaic_0001>
module attributes {stable_mosaic.version = 11 : i64} {
  func.func @gat_stats_kernel(%arg0: i32, %arg1: memref<128x4xf32, #tpu.memory_space<vmem>>, %arg2: memref<1x1024xf32, #tpu.memory_space<vmem>>, %arg3: memref<4x1024xf32, #tpu.memory_space<vmem>>, %arg4: memref<1x128xf32, #tpu.memory_space<vmem>>, %arg5: memref<1x128xf32, #tpu.memory_space<vmem>>) attributes {dimension_semantics = [#tpu.dimension_semantics<arbitrary>], iteration_bounds = array<i64: 2>, scalar_prefetch = 0 : i64, scratch_operands = 0 : i64, tpu.core_type = #tpu.core_type<tc>, window_params = [{transform_indices = @transform_0, window_bounds = array<i64: 128, 4>}, {pipeline_mode = #tpu.pipeline_mode<synchronous>, transform_indices = @transform_1, window_bounds = array<i64: 1, 1024>}, {pipeline_mode = #tpu.pipeline_mode<synchronous>, transform_indices = @transform_2, window_bounds = array<i64: 4, 1024>}, {pipeline_mode = #tpu.pipeline_mode<synchronous>, transform_indices = @transform_3, window_bounds = array<i64: 1, 128>}, {pipeline_mode = #tpu.pipeline_mode<synchronous>, transform_indices = @transform_4, window_bounds = array<i64: 1, 128>}]} {
    %c0 = arith.constant 0 : index
    %c0_0 = arith.constant 0 : index
    %0 = vector.load %arg1[%c0, %c0_0] : memref<128x4xf32, #tpu.memory_space<vmem>>, vector<128x4xf32>
    %c0_1 = arith.constant 0 : index
    %c0_2 = arith.constant 0 : index
    %1 = vector.load %arg2[%c0_1, %c0_2] : memref<1x1024xf32, #tpu.memory_space<vmem>>, vector<1x1024xf32>
    %c0_3 = arith.constant 0 : index
    %c0_4 = arith.constant 0 : index
    %2 = vector.load %arg3[%c0_3, %c0_4] : memref<4x1024xf32, #tpu.memory_space<vmem>>, vector<4x1024xf32>
    %cst = arith.constant dense<0.000000e+00> : vector<128x1024xf32>
    %3 = tpu.matmul %0, %2, %cst {dimension_numbers = #tpu.dot_dimension_numbers<[1], [0], [0], [1], [0, 0, 1, 1], [], []>, precision = #tpu.contract_precision<fp32>} : vector<128x4xf32>, vector<4x1024xf32>, vector<128x1024xf32> -> vector<128x1024xf32>
    %4 = vector.broadcast %1 : vector<1x1024xf32> to vector<128x1024xf32>
    %5 = arith.addf %3, %4 : vector<128x1024xf32>
    %cst_5 = arith.constant 0.000000e+00 : f32
    %6 = vector.broadcast %cst_5 : f32 to vector<128x1024xf32>
    %7 = arith.cmpf ogt, %5, %6 : vector<128x1024xf32>
    %cst_6 = arith.constant 2.000000e-01 : f32
    %8 = vector.broadcast %cst_6 : f32 to vector<128x1024xf32>
    %9 = arith.mulf %8, %5 : vector<128x1024xf32>
    %10 = arith.select %7, %5, %9 : vector<128x1024xi1>, vector<128x1024xf32>
    %cst_7 = arith.constant dense<0.000000e+00> : vector<128xf32>
    %11 = vector.multi_reduction <add>, %10, %cst_7 [1] : vector<128x1024xf32> to vector<128xf32>
    %12 = vector.shape_cast %11 : vector<128xf32> to vector<128x1xf32>
    %cst_8 = arith.constant dense<0.000000e+00> : vector<1xf32>
    %13 = vector.multi_reduction <add>, %12, %cst_8 [0] : vector<128x1xf32> to vector<1xf32>
    %14 = vector.shape_cast %13 : vector<1xf32> to vector<1x1xf32>
    %15 = arith.mulf %10, %10 : vector<128x1024xf32>
    %cst_9 = arith.constant dense<0.000000e+00> : vector<128xf32>
    %16 = vector.multi_reduction <add>, %15, %cst_9 [1] : vector<128x1024xf32> to vector<128xf32>
    %17 = vector.shape_cast %16 : vector<128xf32> to vector<128x1xf32>
    %cst_10 = arith.constant dense<0.000000e+00> : vector<1xf32>
    %18 = vector.multi_reduction <add>, %17, %cst_10 [0] : vector<128x1xf32> to vector<1xf32>
    %19 = vector.shape_cast %18 : vector<1xf32> to vector<1x1xf32>
    %c0_i32 = arith.constant 0 : i32
    %20 = arith.cmpi eq, %arg0, %c0_i32 : i32
    %21 = arith.extui %20 : i1 to i32
    %c0_i32_11 = arith.constant 0 : i32
    %22 = arith.cmpi ne, %21, %c0_i32_11 : i32
    scf.if %22 {
      %cst_20 = arith.constant 0.000000e+00 : f32
      %31 = vector.broadcast %cst_20 : f32 to vector<1x128xf32>
      %c0_21 = arith.constant 0 : index
      %c0_22 = arith.constant 0 : index
      %32 = vector.load %arg4[%c0_21, %c0_22] : memref<1x128xf32, #tpu.memory_space<vmem>>, vector<1x128xf32>
      tpu.vector_store %arg4[%c0_21, %c0_22], %31 {strides = array<i32>} : memref<1x128xf32, #tpu.memory_space<vmem>>, vector<1x128xf32>,
      %cst_23 = arith.constant 0.000000e+00 : f32
      %33 = vector.broadcast %cst_23 : f32 to vector<1x128xf32>
      %c0_24 = arith.constant 0 : index
      %c0_25 = arith.constant 0 : index
      %34 = vector.load %arg5[%c0_24, %c0_25] : memref<1x128xf32, #tpu.memory_space<vmem>>, vector<1x128xf32>
      tpu.vector_store %arg5[%c0_24, %c0_25], %33 {strides = array<i32>} : memref<1x128xf32, #tpu.memory_space<vmem>>, vector<1x128xf32>,
    } else {
    }
    %c0_12 = arith.constant 0 : index
    %c0_13 = arith.constant 0 : index
    %23 = vector.load %arg4[%c0_12, %c0_13] : memref<1x128xf32, #tpu.memory_space<vmem>>, vector<1x128xf32>
    %24 = vector.broadcast %14 : vector<1x1xf32> to vector<1x128xf32>
    %25 = arith.addf %23, %24 : vector<1x128xf32>
    %c0_14 = arith.constant 0 : index
    %c0_15 = arith.constant 0 : index
    %26 = vector.load %arg4[%c0_14, %c0_15] : memref<1x128xf32, #tpu.memory_space<vmem>>, vector<1x128xf32>
    tpu.vector_store %arg4[%c0_14, %c0_15], %25 {strides = array<i32>} : memref<1x128xf32, #tpu.memory_space<vmem>>, vector<1x128xf32>,
    %c0_16 = arith.constant 0 : index
    %c0_17 = arith.constant 0 : index
    %27 = vector.load %arg5[%c0_16, %c0_17] : memref<1x128xf32, #tpu.memory_space<vmem>>, vector<1x128xf32>
    %28 = vector.broadcast %19 : vector<1x1xf32> to vector<1x128xf32>
    %29 = arith.addf %27, %28 : vector<1x128xf32>
    %c0_18 = arith.constant 0 : index
    %c0_19 = arith.constant 0 : index
    %30 = vector.load %arg5[%c0_18, %c0_19] : memref<1x128xf32, #tpu.memory_space<vmem>>, vector<1x128xf32>
    tpu.vector_store %arg5[%c0_18, %c0_19], %29 {strides = array<i32>} : memref<1x128xf32, #tpu.memory_space<vmem>>, vector<1x128xf32>,
    return
  }
  func.func @transform_0(%arg0: i32) -> (i32, i32) {
    %c0_i32 = arith.constant 0 : i32
    %c0_i32_0 = arith.constant 0 : i32
    return %arg0, %c0_i32 : i32, i32
  }
  func.func @transform_1(%arg0: i32) -> (i32, i32) {
    %c0_i32 = arith.constant 0 : i32
    %c0_i32_0 = arith.constant 0 : i32
    %c0_i32_1 = arith.constant 0 : i32
    return %c0_i32, %c0_i32_0 : i32, i32
  }
  func.func @transform_2(%arg0: i32) -> (i32, i32) {
    %c0_i32 = arith.constant 0 : i32
    %c0_i32_0 = arith.constant 0 : i32
    %c0_i32_1 = arith.constant 0 : i32
    return %c0_i32, %c0_i32_0 : i32, i32
  }
  func.func @transform_3(%arg0: i32) -> (i32, i32) {
    %c0_i32 = arith.constant 0 : i32
    %c0_i32_0 = arith.constant 0 : i32
    %c0_i32_1 = arith.constant 0 : i32
    return %c0_i32, %c0_i32_0 : i32, i32
  }
  func.func @transform_4(%arg0: i32) -> (i32, i32) {
    %c0_i32 = arith.constant 0 : i32
    %c0_i32_0 = arith.constant 0 : i32
    %c0_i32_1 = arith.constant 0 : i32
    return %c0_i32, %c0_i32_0 : i32, i32
  }
}

</mosaic_0001>

<bundles_post_ra>
// kernel: tpu_custom_call.1
= control target key start
LH: loop header
LB: loop body
LE: loop exit
PB: predicated region body
PF: predicated region fallthrough
CT: control target
= control target key end

     0   :  { %10 = vsyncpa [#allocation3], 0  ;;  %s9137_s0 = inlined_call_operand.vmem [shape: f32[256,4], index: 0, kind: input, shape index: {}]   ;;  %s9138_s1 = inlined_call_operand.vmem [shape: f32[1,1024], index: 1, kind: input, shape index: {}]   ;;  %s9139_s2 = inlined_call_operand.vmem [shape: f32[4,1024], index: 2, kind: input, shape index: {}]   ;;  %s9140_s3 = inlined_call_operand.hbm [shape: f32[1,128], index: 3, kind: output, shape index: {0}]   ;;  %s9141_s4 = inlined_call_operand.hbm [shape: f32[1,128], index: 4, kind: output, shape index: {1}]  }
   0x1   :  { %11 = vsyncpa [#allocation5], 0  ;;  %s6950_s15 = smov 0  }
   0x2 LB: > { %s6956_s16 = sadd.s32 4294967295, %s6919_s15   ;;  %p6046_p0 = scmp.ge.s32.totalorder %s6919_s15, 1  ;;  %s6919_s15 = sphi %s6950_s15, %s17_s15  }
   0x3   : > { %p158_p1 = scmp.lt.s32.totalorder %s6919_s15, 3 }
   0x5   : > { %p159_p2 = pnand %p6046_p0, %p158_p1 }
   0x7   : > { %162 = sbr.rel (%p159_p2) target bundleno = 1275 (0x4fb), region = 32 }
   0xe   : > { %v202_v0 = vld [vmem:[%s9139_s2] sm:$0xff]  ;;  %vm304_vm0 = vcmask 1043456   ;;  %v203_v1 = vld [vmem:[%s9139_s2 + $0x8] sm:$0xff]  ;;  %s6047_s21 = sshll.u32 %s6956_s16, 4  ;;  %v9181_v5 = vmov 0.0   ;;  %vm255_vm1 = vcmask 31744  }
   0xf   : > { %v251_v2 = vcombine.high %v202_v0, %v202_v0  ;;  %v305_v3 = vsel %vm304_vm0, %v202_v0, 0  ;;  %v252_v4 = vcombine.high %v203_v1, %v203_v1  ;;  %387 = vmatprep.mubr.f32.mxu0 %v9181_v5  ;;  %v309_v6 = vsel %vm304_vm0, %v203_v1, 0  ;;  %1587 = vmatprep.mubr.f32.mxu1 %v9181_v5  ;;  %p180_p3 = scmp.lt.s32.totalorder %s6047_s21, 31  ;;  %p6049_p4 = scmp.ne.s32.totalorder %s6956_s16, 0 }
  0x10   : > { %v6971_v7 = vand.u32 4294901760, %v305_v3  ;;  %v6975_v10 = vand.u32 4294901760, %v309_v6 }
  0x11   : > { %v307_v8 = vsel %vm304_vm0, %v251_v2, 0  ;;  %v311_v9 = vsel %vm304_vm0, %v252_v4, 0  ;;  %s9352_s21 = smov (!%p180_p3, %s6047_s21), 31 }
  0x12   : > { %v6977_v11 = vand.u32 4294901760, %v307_v8  ;;  %v6980_v12 = vsub.f32 %v305_v3, %v6971_v7  ;;  %v6982_v13 = vand.u32 4294901760, %v311_v9  ;;  %v6985_v14 = vsub.f32 %v309_v6, %v6975_v10  ;;  %s6048_s22 = sshll.u32 %s9352_s21, 3 }
  0x13   : > { %s6995_s25 = scalar_lea.vmem %s9137_s0, %s6048_s22 }
  0x14   : > { %322 = vmatprep.subr.mxu0 %v6977_v11  ;;  %1522 = vmatprep.subr.mxu1 %v6982_v13  ;;  %v6990_v15 = vsub.f32 %v307_v8, %v6977_v11  ;;  %v6998_v16 = vsub.f32 %v311_v9, %v6982_v13  ;;  %v185_v17 = vld [vmem:[%s6995_s25] sm:$0xff]  ;;  %v9143_v18 = vand.u32 4294901760, %v6980_v12  ;;  %v186_v19 = vld [vmem:[%s6995_s25 + $0x8] sm:$0xff]  ;;  %v187_v20 = vld [vmem:[%s6995_s25 + $0x10] sm:$0xff]  ;;  %v9142_v27 = vand.u32 4294901760, %v6985_v14 }
  0x15   : > { %324 = vmatpush1.msra.mxu0 %v6971_v7  ;;  %1524 = vmatpush1.msra.mxu1 %v6975_v10  ;;  %v257_v22 = vsel %vm255_vm1, %v185_v17, 0  ;;  %v188_v24 = vld [vmem:[%s6995_s25 + $0x18] sm:$0xff]  ;;  %v260_v26 = vsel %vm255_vm1, %v186_v19, 0  ;;  %v263_v28 = vsel %vm255_vm1, %v187_v20, 0  ;;  %v189_v32 = vld [vmem:[%s6995_s25 + $0x20] sm:$0xff]  ;;  %v190_v37 = vld [vmem:[%s6995_s25 + $0x28] sm:$0xff] }
  0x16   : > { %v9145_v21 = vand.u32 4294901760, %v6990_v15  ;;  %v9144_v23 = vand.u32 4294901760, %v6998_v16  ;;  %v7010_v25 = vand.u32 4294901760, %v257_v22  ;;  %v7021_v31 = vand.u32 4294901760, %v260_v26  ;;  %v191_v56 = vld [vmem:[%s6995_s25 + $0x30] sm:$0xff]  ;;  %v192_v62 = vld [vmem:[%s6995_s25 + $0x38] sm:$0xff] }
  0x17   : > { %v573_v34 = vsub.f32 %v6980_v12, %v9143_v18  ;;  %v7030_v35 = vand.u32 4294901760, %v263_v28  ;;  %v266_v36 = vsel %vm255_vm1, %v188_v24, 0  ;;  %v1773_v43 = vsub.f32 %v6985_v14, %v9142_v27  ;;  %v193_v8 = vld [vmem:[%s6995_s25 + $0x40] sm:$0xff] }
  0x18   : > { %v567_v29 = vsub.f32 %v6990_v15, %v9145_v21  ;;  %v1767_v30 = vsub.f32 %v6998_v16, %v9144_v23  ;;  %9215 = vst [vmem:[#allocation8_spill] sm:$0xff] %v7021_v31  ;;  %v7025_v33 = vsub.f32 %v257_v22, %v7010_v25  ;;  %v7035_v40 = vsub.f32 %v260_v26, %v7021_v31  ;;  %v194_v26 = vld [vmem:[%s6995_s25 + $0x48] sm:$0xff] }
  0x19   : > { %9216 = vst [vmem:[#allocation9_spill] sm:$0xff] %v7030_v35  ;;  %v7037_v41 = vand.u32 4294901760, %v266_v36  ;;  %v7046_v44 = vsub.f32 %v263_v28, %v7030_v35  ;;  %v269_v45 = vsel %vm255_vm1, %v189_v32, 0  ;;  %v272_v47 = vsel %vm255_vm1, %v190_v37, 0 }
  0x1a   : > { %v568_v38 = vand.u32 4294901760, %v567_v29  ;;  %v1768_v39 = vand.u32 4294901760, %v1767_v30  ;;  %v7040_v42 = vand.u32 4294901760, %v7025_v33  ;;  %v7050_v46 = vand.u32 4294901760, %v7035_v40 }
  0x1b   : > { %9217 = vst [vmem:[#allocation10_spill] sm:$0xff] %v7037_v41  ;;  %v7056_v49 = vand.u32 4294901760, %v7046_v44  ;;  %v7059_v50 = vsub.f32 %v266_v36, %v7037_v41  ;;  %v7061_v51 = vand.u32 4294901760, %v269_v45  ;;  %v574_v52 = vand.u32 4294901760, %v573_v34  ;;  %v195_v36 = vld [vmem:[%s6995_s25 + $0x50] sm:$0xff] }
  0x1c   : > { %569 = vmatprep.subr.mxu0 %v568_v38  ;;  %1769 = vmatprep.subr.mxu1 %v1768_v39  ;;  %v391_v48 = vsub.f32 %v7025_v33, %v7040_v42  ;;  %v402_v53 = vsub.f32 %v7035_v40, %v7050_v46  ;;  %v1774_v55 = vand.u32 4294901760, %v1773_v43  ;;  %v7068_v57 = vand.u32 4294901760, %v272_v47 }
  0x1d   : > { %9218 = vst [vmem:[#allocation11_spill] sm:$0xff] %v7061_v51  ;;  %v413_v59 = vsub.f32 %v7046_v44, %v7056_v49  ;;  %v7077_v60 = vand.u32 4294901760, %v7059_v50  ;;  %v7080_v61 = vsub.f32 %v269_v45, %v7061_v51  ;;  %v275_v63 = vsel %vm255_vm1, %v191_v56, 0 }
  0x1e   : > { %v7065_v54 = vand.u32 4294901760, %v391_v48  ;;  %9219 = vst [vmem:[#allocation12_spill] sm:$0xff] %v7068_v57  ;;  %v7072_v58 = vand.u32 4294901760, %v402_v53  ;;  %v7087_v0 = vsub.f32 %v272_v47, %v7068_v57  ;;  %v278_v1 = vsel %vm255_vm1, %v192_v62, 0 }
  0x1f   : > { %v7094_v2 = vand.u32 4294901760, %v413_v59  ;;  %v424_v3 = vsub.f32 %v7059_v50, %v7077_v60  ;;  %v7099_v4 = vand.u32 4294901760, %v7080_v61  ;;  %v7101_v6 = vand.u32 4294901760, %v275_v63 }
  0x20   : > { %393 = vmatmul.mubr.f32.vlgmr.msra.gmra.mrb[0].mxu0 %v7065_v54  ;;  %1593 = vmatmul.mubr.f32.vlgmr.msra.gmra.mrb[0].mxu1 %v7065_v54  ;;  %v7106_v9 = vand.u32 4294901760, %v278_v1  ;;  %v7115_v20 = vand.u32 4294901760, %v7087_v0  ;;  %v281_v24 = vsel %vm255_vm1, %v193_v8, 0  ;;  %v284_v37 = vsel %vm255_vm1, %v194_v26, 0 }
  0x21   : > { %575 = vmatpush1.msra.mxu0 %v574_v52  ;;  %398 = vmatprep.mubr.f32.mxu0 %v9181_v5  ;;  %9220 = vst [vmem:[#allocation13_spill] sm:$0xff] %v7094_v2  ;;  %9221 = vst [vmem:[#allocation14_spill] sm:$0xff] %v7101_v6  ;;  %v7110_v17 = vand.u32 4294901760, %v424_v3  ;;  %v435_v19 = vsub.f32 %v7080_v61, %v7099_v4  ;;  %v7118_v22 = vsub.f32 %v275_v63, %v7101_v6  ;;  %v196_v52 = vld [vmem:[%s6995_s25 + $0x58] sm:$0xff] }
  0x22   : > { %1598 = vmatprep.mubr.f32.mxu1 %v9181_v5  ;;  %1775 = vmatpush1.msra.mxu1 %v1774_v55  ;;  %9222 = vst [vmem:[#allocation15_spill] sm:$0xff] %v7106_v9  ;;  %v7125_v28 = vsub.f32 %v278_v1, %v7106_v9  ;;  %v446_v30 = vsub.f32 %v7087_v0, %v7115_v20  ;;  %v7136_v34 = vand.u32 4294901760, %v281_v24  ;;  %v287_v39 = vsel %vm255_vm1, %v195_v36, 0  ;;  %v197_v1 = vld [vmem:[%s6995_s25 + $0x60] sm:$0xff]  ;;  %v198_v36 = vld [vmem:[%s6995_s25 + $0x68] sm:$0xff] }
  0x23   : > { %753 = vmatprep.subr.mxu0 %v6990_v15  ;;  %1953 = vmatprep.subr.mxu1 %v6998_v16  ;;  %9223 = vst [vmem:[#allocation16_spill] sm:$0xff] %v7110_v17  ;;  %v7129_v29 = vand.u32 4294901760, %v435_v19  ;;  %v7134_v32 = vand.u32 4294901760, %v7118_v22  ;;  %v7155_v48 = vand.u32 4294901760, %v284_v37  ;;  %v7162_v55 = vand.u32 4294901760, %v287_v39 }
  0x24   : > { %404 = vmatmul.mubr.f32.gmra.mrb[2].mxu0 %v7072_v58  ;;  %1604 = vmatmul.mubr.f32.gmra.mrb[2].mxu1 %v7072_v58  ;;  %9225 = vst [vmem:[#allocation18_spill] sm:$0xff] %v7136_v34  ;;  %v7143_v38 = vand.u32 4294901760, %v7125_v28  ;;  %v7148_v43 = vand.u32 4294901760, %v446_v30  ;;  %v7153_v47 = vsub.f32 %v281_v24, %v7136_v34  ;;  %v290_v63 = vsel %vm255_vm1, %v196_v52, 0 }
  0x25   : > { %409 = vmatprep.mubr.f32.mxu0 %v9181_v5  ;;  %1609 = vmatprep.mubr.f32.mxu1 %v9181_v5  ;;  %9224 = vst [vmem:[#allocation17_spill] sm:$0xff] %v7129_v29  ;;  %v457_v45 = vsub.f32 %v7118_v22, %v7134_v32  ;;  %9227 = vst [vmem:[#allocation20_spill] sm:$0xff] %v7155_v48  ;;  %v7172_v62 = vsub.f32 %v284_v37, %v7155_v48  ;;  %v7178_v3 = vand.u32 4294901760, %v290_v63 }
  0x26   : > { %9226 = vst [vmem:[#allocation19_spill] sm:$0xff] %v7148_v43  ;;  %v468_v53 = vsub.f32 %v7125_v28, %v7143_v38  ;;  %9228 = vst [vmem:[#allocation21_spill] sm:$0xff] %v7162_v55  ;;  %v7169_v59 = vand.u32 4294901760, %v7153_v47  ;;  %v293_v8 = vsel %vm255_vm1, %v197_v1, 0  ;;  %v7191_v30 = vsub.f32 %v287_v39, %v7162_v55 }
  0x27   : > { %v7166_v56 = vand.u32 4294901760, %v457_v45  ;;  %9230 = vst [vmem:[#allocation23_spill] sm:$0xff] %v7178_v3  ;;  %v7188_v26 = vand.u32 4294901760, %v7172_v62  ;;  %v7197_v37 = vsub.f32 %v290_v63, %v7178_v3  ;;  %v7199_v45 = vand.u32 4294901760, %v293_v8  ;;  %v199_v63 = vld [vmem:[%s6995_s25 + $0x70] sm:$0xff] }
  0x28   : > { %415 = vmatmul.mubr.f32.gmra.mrb[4].mxu0 %v7094_v2  ;;  %1615 = vmatmul.mubr.f32.gmra.mrb[4].mxu1 %v7094_v2  ;;  %v7183_v19 = vand.u32 4294901760, %v468_v53  ;;  %v479_v24 = vsub.f32 %v7153_v47, %v7169_v59  ;;  %v7208_v53 = vand.u32 4294901760, %v7191_v30  ;;  %v296_v1 = vsel %vm255_vm1, %v198_v36, 0 }
  0x29   : > { %420 = vmatprep.mubr.f32.mxu0 %v9181_v5  ;;  %1620 = vmatprep.mubr.f32.mxu1 %v9181_v5  ;;  %9229 = vst [vmem:[#allocation22_spill] sm:$0xff] %v7166_v56  ;;  %9232 = vst [vmem:[#allocation25_spill] sm:$0xff] %v7199_v45  ;;  %v490_v39 = vsub.f32 %v7172_v62, %v7188_v26  ;;  %v7215_v27 = vsub.f32 %v293_v8, %v7199_v45  ;;  %v7217_v18 = vand.u32 4294901760, %v296_v1  ;;  %v200_v8 = vld [vmem:[%s6995_s25 + $0x78] sm:$0xff] }
  0x2a   : > { %9231 = vst [vmem:[#allocation24_spill] sm:$0xff] %v7183_v19  ;;  %v7203_v52 = vand.u32 4294901760, %v479_v24  ;;  %v501_v23 = vsub.f32 %v7191_v30, %v7208_v53  ;;  %v7226_v36 = vand.u32 4294901760, %v7197_v37  ;;  %v299_v21 = vsel %vm255_vm1, %v199_v63, 0 }
  0x2b   : > { %9234 = vst [vmem:[#allocation27_spill] sm:$0xff] %v7217_v18  ;;  %v7221_v24 = vand.u32 4294901760, %v490_v39  ;;  %v7244_v63 = vsub.f32 %v296_v1, %v7217_v18 }
  0x2c   : > { %426 = vmatmul.mubr.f32.gmra.mrb[6].mxu0 %v7110_v17  ;;  %1626 = vmatmul.mubr.f32.gmra.mrb[6].mxu1 %v7110_v17  ;;  %9233 = vst [vmem:[#allocation26_spill] sm:$0xff] %v7203_v52  ;;  %v7236_v39 = vand.u32 4294901760, %v501_v23 }
  0x2d   : > { %431 = vmatprep.mubr.f32.mxu0 %v9181_v5  ;;  %1631 = vmatprep.mubr.f32.mxu1 %v9181_v5  ;;  %9235 = vst [vmem:[#allocation28_spill] sm:$0xff] %v7221_v24  ;;  %v7259_v1 = vand.u32 4294901760, %v7244_v63 }
  0x2e   : > { %9237 = vst [vmem:[#allocation30_spill] sm:$0xff] %v7236_v39 }
  0x2f   : > { %9240 = vst [vmem:[#allocation33_spill] sm:$0xff] %v7259_v1 }
  0x30   : > { %437 = vmatmul.mubr.f32.gmra.mrb[8].mxu0 %v7129_v29  ;;  %1637 = vmatmul.mubr.f32.gmra.mrb[8].mxu1 %v7129_v29 }
  0x31   : > { %442 = vmatprep.mubr.f32.mxu0 %v9181_v5  ;;  %1642 = vmatprep.mubr.f32.mxu1 %v9181_v5 }
  0x34   : > { %448 = vmatmul.mubr.f32.gmra.mrb[10].mxu0 %v7148_v43  ;;  %1648 = vmatmul.mubr.f32.gmra.mrb[10].mxu1 %v7148_v43  ;;  %v302_v43 = vsel %vm255_vm1, %v200_v8, 0 }
  0x35   : > { %453 = vmatprep.mubr.f32.mxu0 %v9181_v5  ;;  %1653 = vmatprep.mubr.f32.mxu1 %v9181_v5  ;;  %v7261_v17 = vand.u32 4294901760, %v302_v43 }
  0x37   : > { %9241 = vst [vmem:[#allocation34_spill] sm:$0xff] %v7261_v17 }
  0x38   : > { %459 = vmatmul.mubr.f32.gmra.mrb[12].mxu0 %v7166_v56  ;;  %1659 = vmatmul.mubr.f32.gmra.mrb[12].mxu1 %v7166_v56  ;;  %v7241_v56 = vand.u32 4294901760, %v7215_v27 }
  0x39   : > { %464 = vmatprep.mubr.f32.mxu0 %v9181_v5  ;;  %1664 = vmatprep.mubr.f32.mxu1 %v9181_v5 }
  0x3a   : > { %9238 = vst [vmem:[#allocation31_spill] sm:$0xff] %v7241_v56 }
  0x3c   : > { %470 = vmatmul.mubr.f32.gmra.mrb[14].mxu0 %v7183_v19  ;;  %1670 = vmatmul.mubr.f32.gmra.mrb[14].mxu1 %v7183_v19  ;;  %v7232_v19 = vand.u32 4294901760, %v299_v21 }
  0x3d   : > { %475 = vmatprep.mubr.f32.mxu0 %v9181_v5  ;;  %1675 = vmatprep.mubr.f32.mxu1 %v9181_v5 }
  0x3e   : > { %9236 = vst [vmem:[#allocation29_spill] sm:$0xff] %v7232_v19  ;;  %v7250_v29 = vsub.f32 %v299_v21, %v7232_v19 }
  0x40   : > { %481 = vmatmul.mubr.f32.gmra.mrb[16].mxu0 %v7203_v52  ;;  %1681 = vmatmul.mubr.f32.gmra.mrb[16].mxu1 %v7203_v52  ;;  %v512_v52 = vsub.f32 %v7197_v37, %v7226_v36  ;;  %v7272_v8 = vand.u32 4294901760, %v7250_v29 }
  0x41   : > { %486 = vmatprep.mubr.f32.mxu0 %v9181_v5  ;;  %1686 = vmatprep.mubr.f32.mxu1 %v9181_v5 }
  0x42   : > { %v7254_v23 = vand.u32 4294901760, %v512_v52  ;;  %v534_v52 = vsub.f32 %v7244_v63, %v7259_v1  ;;  %9243 = vst [vmem:[#allocation36_spill] sm:$0xff] %v7272_v8 }
  0x44   : > { %492 = vmatmul.mubr.f32.gmra.mrb[18].mxu0 %v7221_v24  ;;  %1692 = vmatmul.mubr.f32.gmra.mrb[18].mxu1 %v7221_v24  ;;  %9239 = vst [vmem:[#allocation32_spill] sm:$0xff] %v7254_v23  ;;  %v523_v24 = vsub.f32 %v7215_v27, %v7241_v56 }
  0x45   : > { %497 = vmatprep.mubr.f32.mxu0 %v9181_v5  ;;  %1697 = vmatprep.mubr.f32.mxu1 %v9181_v5 }
  0x46   : > { %v7267_v21 = vand.u32 4294901760, %v523_v24  ;;  %v545_v24 = vsub.f32 %v7250_v29, %v7272_v8 }
  0x48   : > { %503 = vmatmul.mubr.f32.gmra.mrb[20].mxu0 %v7236_v39  ;;  %1703 = vmatmul.mubr.f32.gmra.mrb[20].mxu1 %v7236_v39  ;;  %9242 = vst [vmem:[#allocation35_spill] sm:$0xff] %v7267_v21  ;;  %v7275_v39 = vsub.f32 %v302_v43, %v7261_v17  ;;  %v7292_v43 = vand.u32 4294901760, %v545_v24  ;;  %v9245_v24 = vand.u32 4294901760, %v6990_v15  ;;  %v9247_v15 = vand.u32 4294901760, %v6980_v12 }
  0x49   : > { %508 = vmatprep.mubr.f32.mxu0 %v9181_v5  ;;  %1708 = vmatprep.mubr.f32.mxu1 %v9181_v5 }
  0x4a   : > { %v7286_v2 = vand.u32 4294901760, %v7275_v39 }
  0x4c   : > { %514 = vmatmul.mubr.f32.gmra.mrb[22].mxu0 %v7254_v23  ;;  %1714 = vmatmul.mubr.f32.gmra.mrb[22].mxu1 %v7254_v23  ;;  %v7281_v23 = vand.u32 4294901760, %v534_v52  ;;  %9244 = vst [vmem:[#allocation37_spill] sm:$0xff] %v7286_v2  ;;  %v556_v52 = vsub.f32 %v7275_v39, %v7286_v2 }
  0x4d   : > { %519 = vmatprep.mubr.f32.mxu0 %v9181_v5  ;;  %1719 = vmatprep.mubr.f32.mxu1 %v9181_v5 }
  0x50   : > { %525 = vmatmul.mubr.f32.gmra.mrb[24].mxu0 %v7267_v21  ;;  %1725 = vmatmul.mubr.f32.gmra.mrb[24].mxu1 %v7267_v21  ;;  %v7300_v21 = vand.u32 4294901760, %v556_v52  ;;  %v9246_v52 = vand.u32 4294901760, %v6998_v16  ;;  %v9248_v16 = vand.u32 4294901760, %v6985_v14 }
  0x51   : > { %530 = vmatprep.mubr.f32.mxu0 %v9181_v5  ;;  %1730 = vmatprep.mubr.f32.mxu1 %v9181_v5 }
  0x54   : > { %536 = vmatmul.mubr.f32.gmra.mrb[26].mxu0 %v7281_v23  ;;  %1736 = vmatmul.mubr.f32.gmra.mrb[26].mxu1 %v7281_v23 }
  0x55   : > { %541 = vmatprep.mubr.f32.mxu0 %v9181_v5  ;;  %1741 = vmatprep.mubr.f32.mxu1 %v9181_v5 }
  0x58   : > { %547 = vmatmul.mubr.f32.gmra.mrb[28].mxu0 %v7292_v43  ;;  %1747 = vmatmul.mubr.f32.gmra.mrb[28].mxu1 %v7292_v43 }
  0x59   : > { %552 = vmatprep.mubr.f32.mxu0 %v9181_v5  ;;  %1752 = vmatprep.mubr.f32.mxu1 %v9181_v5 }
  0x5c   : > { %558 = vmatmul.mubr.f32.gmra.mrb[30].mxu0 %v7300_v21  ;;  %1758 = vmatmul.mubr.f32.gmra.mrb[30].mxu1 %v7300_v21 }
  0x5d   : > { %638 = vmatprep.mubr.f32.mxu0 %v9181_v5  ;;  %1838 = vmatprep.mubr.f32.mxu1 %v9181_v5 }
  0x60   : > { %640 = vmatmul.mubr.f32.vlgmr.msra.gmra.mrb[0].mxu0 %v7010_v25  ;;  %1840 = vmatmul.mubr.f32.vlgmr.msra.gmra.mrb[0].mxu1 %v7010_v25 }
  0x61   : > { %756 = vmatpush1.msra.mxu0 %v6980_v12  ;;  %645 = vmatprep.mubr.f32.mxu0 %v9181_v5  ;;  %v7516_v12 = vld [vmem:[%s9139_s2 + $0x18] sm:$0xff] }
  0x62   : > { %1845 = vmatprep.mubr.f32.mxu1 %v9181_v5  ;;  %1956 = vmatpush1.msra.mxu1 %v6985_v14  ;;  %v254_v14 = vcombine.high %v7516_v12, %v7516_v12 }
  0x63   : > { %949 = vmatprep.subr.mxu0 %v6977_v11  ;;  %2149 = vmatprep.subr.mxu1 %v6982_v13 }
  0x64   : > { %647 = vmatmul.mubr.f32.gmra.mrb[2].mxu0 %v7021_v31  ;;  %1847 = vmatmul.mubr.f32.gmra.mrb[2].mxu1 %v7021_v31 }
  0x65   : > { %652 = vmatprep.mubr.f32.mxu0 %v9181_v5  ;;  %1852 = vmatprep.mubr.f32.mxu1 %v9181_v5 }
  0x68   : > { %654 = vmatmul.mubr.f32.gmra.mrb[4].mxu0 %v7030_v35  ;;  %1854 = vmatmul.mubr.f32.gmra.mrb[4].mxu1 %v7030_v35 }
  0x69   : > { %659 = vmatprep.mubr.f32.mxu0 %v9181_v5  ;;  %1859 = vmatprep.mubr.f32.mxu1 %v9181_v5 }
  0x6c   : > { %661 = vmatmul.mubr.f32.gmra.mrb[6].mxu0 %v7037_v41  ;;  %1861 = vmatmul.mubr.f32.gmra.mrb[6].mxu1 %v7037_v41 }
  0x6d   : > { %666 = vmatprep.mubr.f32.mxu0 %v9181_v5  ;;  %1866 = vmatprep.mubr.f32.mxu1 %v9181_v5 }
  0x70   : > { %668 = vmatmul.mubr.f32.gmra.mrb[8].mxu0 %v7061_v51  ;;  %1868 = vmatmul.mubr.f32.gmra.mrb[8].mxu1 %v7061_v51 }
  0x71   : > { %673 = vmatprep.mubr.f32.mxu0 %v9181_v5  ;;  %1873 = vmatprep.mubr.f32.mxu1 %v9181_v5 }
  0x74   : > { %675 = vmatmul.mubr.f32.gmra.mrb[10].mxu0 %v7068_v57  ;;  %1875 = vmatmul.mubr.f32.gmra.mrb[10].mxu1 %v7068_v57 }
  0x75   : > { %680 = vmatprep.mubr.f32.mxu0 %v9181_v5  ;;  %1880 = vmatprep.mubr.f32.mxu1 %v9181_v5 }
  0x78   : > { %682 = vmatmul.mubr.f32.gmra.mrb[12].mxu0 %v7101_v6  ;;  %1882 = vmatmul.mubr.f32.gmra.mrb[12].mxu1 %v7101_v6 }
  0x79   : > { %687 = vmatprep.mubr.f32.mxu0 %v9181_v5  ;;  %1887 = vmatprep.mubr.f32.mxu1 %v9181_v5 }
  0x7c   : > { %689 = vmatmul.mubr.f32.gmra.mrb[14].mxu0 %v7106_v9  ;;  %1889 = vmatmul.mubr.f32.gmra.mrb[14].mxu1 %v7106_v9 }
  0x7d   : > { %694 = vmatprep.mubr.f32.mxu0 %v9181_v5  ;;  %1894 = vmatprep.mubr.f32.mxu1 %v9181_v5 }
  0x80   : > { %696 = vmatmul.mubr.f32.gmra.mrb[16].mxu0 %v7136_v34  ;;  %1896 = vmatmul.mubr.f32.gmra.mrb[16].mxu1 %v7136_v34 }
  0x81   : > { %701 = vmatprep.mubr.f32.mxu0 %v9181_v5  ;;  %1901 = vmatprep.mubr.f32.mxu1 %v9181_v5 }
  0x84   : > { %703 = vmatmul.mubr.f32.gmra.mrb[18].mxu0 %v7155_v48  ;;  %1903 = vmatmul.mubr.f32.gmra.mrb[18].mxu1 %v7155_v48 }
  0x85   : > { %708 = vmatprep.mubr.f32.mxu0 %v9181_v5  ;;  %1908 = vmatprep.mubr.f32.mxu1 %v9181_v5 }
  0x88   : > { %710 = vmatmul.mubr.f32.gmra.mrb[20].mxu0 %v7162_v55  ;;  %1910 = vmatmul.mubr.f32.gmra.mrb[20].mxu1 %v7162_v55 }
  0x89   : > { %715 = vmatprep.mubr.f32.mxu0 %v9181_v5  ;;  %1915 = vmatprep.mubr.f32.mxu1 %v9181_v5 }
  0x8c   : > { %717 = vmatmul.mubr.f32.gmra.mrb[22].mxu0 %v7178_v3  ;;  %1917 = vmatmul.mubr.f32.gmra.mrb[22].mxu1 %v7178_v3 }
  0x8d   : > { %722 = vmatprep.mubr.f32.mxu0 %v9181_v5  ;;  %1922 = vmatprep.mubr.f32.mxu1 %v9181_v5 }
  0x90   : > { %724 = vmatmul.mubr.f32.gmra.mrb[24].mxu0 %v7199_v45  ;;  %1924 = vmatmul.mubr.f32.gmra.mrb[24].mxu1 %v7199_v45 }
  0x91   : > { %729 = vmatprep.mubr.f32.mxu0 %v9181_v5  ;;  %1929 = vmatprep.mubr.f32.mxu1 %v9181_v5 }
  0x94   : > { %731 = vmatmul.mubr.f32.gmra.mrb[26].mxu0 %v7217_v18  ;;  %1931 = vmatmul.mubr.f32.gmra.mrb[26].mxu1 %v7217_v18 }
  0x95   : > { %736 = vmatprep.mubr.f32.mxu0 %v9181_v5  ;;  %1936 = vmatprep.mubr.f32.mxu1 %v9181_v5 }
  0x98   : > { %738 = vmatmul.mubr.f32.gmra.mrb[28].mxu0 %v7232_v19  ;;  %1938 = vmatmul.mubr.f32.gmra.mrb[28].mxu1 %v7232_v19 }
  0x99   : > { %743 = vmatprep.mubr.f32.mxu0 %v9181_v5  ;;  %1943 = vmatprep.mubr.f32.mxu1 %v9181_v5 }
  0x9c   : > { %745 = vmatmul.mubr.f32.gmra.mrb[30].mxu0 %v7261_v17  ;;  %1945 = vmatmul.mubr.f32.gmra.mrb[30].mxu1 %v7261_v17 }
  0x9d   : > { %819 = vmatprep.mubr.f32.mxu0 %v9181_v5  ;;  %2019 = vmatprep.mubr.f32.mxu1 %v9181_v5 }
  0xa0   : > { %822 = vmatmul.mubr.f32.vlgmr.msra.gmra.mrb[0].mxu0 %v7025_v33  ;;  %2022 = vmatmul.mubr.f32.vlgmr.msra.gmra.mrb[0].mxu1 %v7025_v33 }
  0xa1   : > { %951 = vmatpush1.msra.mxu0 %v6971_v7  ;;  %827 = vmatprep.mubr.f32.mxu0 %v9181_v5 }
  0xa2   : > { %2027 = vmatprep.mubr.f32.mxu1 %v9181_v5  ;;  %2151 = vmatpush1.msra.mxu1 %v6975_v10 }
  0xa3   : > { %1162 = vmatprep.subr.mxu0 %v9245_v24  ;;  %2362 = vmatprep.subr.mxu1 %v9246_v52  ;;  %v319_v52 = vsel %vm304_vm0, %v254_v14, 0 }
  0xa4   : > { %830 = vmatmul.mubr.f32.gmra.mrb[2].mxu0 %v7035_v40  ;;  %2030 = vmatmul.mubr.f32.gmra.mrb[2].mxu1 %v7035_v40 }
  0xa5   : > { %835 = vmatprep.mubr.f32.mxu0 %v9181_v5  ;;  %2035 = vmatprep.mubr.f32.mxu1 %v9181_v5 }
  0xa8   : > { %838 = vmatmul.mubr.f32.gmra.mrb[4].mxu0 %v7046_v44  ;;  %2038 = vmatmul.mubr.f32.gmra.mrb[4].mxu1 %v7046_v44 }
  0xa9   : > { %843 = vmatprep.mubr.f32.mxu0 %v9181_v5  ;;  %2043 = vmatprep.mubr.f32.mxu1 %v9181_v5 }
  0xac   : > { %846 = vmatmul.mubr.f32.gmra.mrb[6].mxu0 %v7059_v50  ;;  %2046 = vmatmul.mubr.f32.gmra.mrb[6].mxu1 %v7059_v50 }
  0xad   : > { %851 = vmatprep.mubr.f32.mxu0 %v9181_v5  ;;  %2051 = vmatprep.mubr.f32.mxu1 %v9181_v5 }
  0xb0   : > { %854 = vmatmul.mubr.f32.gmra.mrb[8].mxu0 %v7080_v61  ;;  %2054 = vmatmul.mubr.f32.gmra.mrb[8].mxu1 %v7080_v61 }
  0xb1   : > { %859 = vmatprep.mubr.f32.mxu0 %v9181_v5  ;;  %2059 = vmatprep.mubr.f32.mxu1 %v9181_v5 }
  0xb4   : > { %862 = vmatmul.mubr.f32.gmra.mrb[10].mxu0 %v7087_v0  ;;  %2062 = vmatmul.mubr.f32.gmra.mrb[10].mxu1 %v7087_v0 }
  0xb5   : > { %867 = vmatprep.mubr.f32.mxu0 %v9181_v5  ;;  %2067 = vmatprep.mubr.f32.mxu1 %v9181_v5 }
  0xb8   : > { %870 = vmatmul.mubr.f32.gmra.mrb[12].mxu0 %v7118_v22  ;;  %2070 = vmatmul.mubr.f32.gmra.mrb[12].mxu1 %v7118_v22 }
  0xb9   : > { %875 = vmatprep.mubr.f32.mxu0 %v9181_v5  ;;  %2075 = vmatprep.mubr.f32.mxu1 %v9181_v5 }
  0xbc   : > { %878 = vmatmul.mubr.f32.gmra.mrb[14].mxu0 %v7125_v28  ;;  %2078 = vmatmul.mubr.f32.gmra.mrb[14].mxu1 %v7125_v28 }
  0xbd   : > { %883 = vmatprep.mubr.f32.mxu0 %v9181_v5  ;;  %2083 = vmatprep.mubr.f32.mxu1 %v9181_v5 }
  0xc0   : > { %886 = vmatmul.mubr.f32.gmra.mrb[16].mxu0 %v7153_v47  ;;  %2086 = vmatmul.mubr.f32.gmra.mrb[16].mxu1 %v7153_v47 }
  0xc1   : > { %891 = vmatprep.mubr.f32.mxu0 %v9181_v5  ;;  %2091 = vmatprep.mubr.f32.mxu1 %v9181_v5 }
  0xc4   : > { %894 = vmatmul.mubr.f32.gmra.mrb[18].mxu0 %v7172_v62  ;;  %2094 = vmatmul.mubr.f32.gmra.mrb[18].mxu1 %v7172_v62 }
  0xc5   : > { %899 = vmatprep.mubr.f32.mxu0 %v9181_v5  ;;  %2099 = vmatprep.mubr.f32.mxu1 %v9181_v5 }
  0xc8   : > { %902 = vmatmul.mubr.f32.gmra.mrb[20].mxu0 %v7191_v30  ;;  %2102 = vmatmul.mubr.f32.gmra.mrb[20].mxu1 %v7191_v30 }
  0xc9   : > { %907 = vmatprep.mubr.f32.mxu0 %v9181_v5  ;;  %2107 = vmatprep.mubr.f32.mxu1 %v9181_v5 }
  0xcc   : > { %910 = vmatmul.mubr.f32.gmra.mrb[22].mxu0 %v7197_v37  ;;  %2110 = vmatmul.mubr.f32.gmra.mrb[22].mxu1 %v7197_v37 }
  0xcd   : > { %915 = vmatprep.mubr.f32.mxu0 %v9181_v5  ;;  %2115 = vmatprep.mubr.f32.mxu1 %v9181_v5 }
  0xd0   : > { %918 = vmatmul.mubr.f32.gmra.mrb[24].mxu0 %v7215_v27  ;;  %2118 = vmatmul.mubr.f32.gmra.mrb[24].mxu1 %v7215_v27 }
  0xd1   : > { %923 = vmatprep.mubr.f32.mxu0 %v9181_v5  ;;  %2123 = vmatprep.mubr.f32.mxu1 %v9181_v5 }
  0xd4   : > { %926 = vmatmul.mubr.f32.gmra.mrb[26].mxu0 %v7244_v63  ;;  %2126 = vmatmul.mubr.f32.gmra.mrb[26].mxu1 %v7244_v63 }
  0xd5   : > { %931 = vmatprep.mubr.f32.mxu0 %v9181_v5  ;;  %2131 = vmatprep.mubr.f32.mxu1 %v9181_v5 }
  0xd8   : > { %934 = vmatmul.mubr.f32.gmra.mrb[28].mxu0 %v7250_v29  ;;  %2134 = vmatmul.mubr.f32.gmra.mrb[28].mxu1 %v7250_v29 }
  0xd9   : > { %939 = vmatprep.mubr.f32.mxu0 %v9181_v5  ;;  %2139 = vmatprep.mubr.f32.mxu1 %v9181_v5 }
  0xdc   : > { %942 = vmatmul.mubr.f32.gmra.mrb[30].mxu0 %v7275_v39  ;;  %2142 = vmatmul.mubr.f32.gmra.mrb[30].mxu1 %v7275_v39 }
  0xdd   : > { %1014 = vmatprep.mubr.f32.mxu0 %v9181_v5  ;;  %2214 = vmatprep.mubr.f32.mxu1 %v9181_v5 }
  0xe0   : > { %1018 = vmatmul.mubr.f32.vlgmr.msra.gmra.mrb[0].mxu0 %v7040_v42  ;;  %2218 = vmatmul.mubr.f32.vlgmr.msra.gmra.mrb[0].mxu1 %v7040_v42 }
  0xe1   : > { %1166 = vmatpush1.msra.mxu0 %v9247_v15  ;;  %1023 = vmatprep.mubr.f32.mxu0 %v9181_v5 }
  0xe2   : > { %2223 = vmatprep.mubr.f32.mxu1 %v9181_v5  ;;  %2366 = vmatpush1.msra.mxu1 %v9248_v16  ;;  %v7534_v16 = vand.u32 4294901760, %v319_v52 }
  0xe3   : > { %1343 = vmatprep.subr.mxu0 %v6977_v11  ;;  %2543 = vmatprep.subr.mxu1 %v6982_v13  ;;  %v7511_v11 = vld [vmem:[%s9139_s2 + $0x10] sm:$0xff] }
  0xe4   : > { %1027 = vmatmul.mubr.f32.gmra.mrb[2].mxu0 %v7050_v46  ;;  %2227 = vmatmul.mubr.f32.gmra.mrb[2].mxu1 %v7050_v46  ;;  %v253_v13 = vcombine.high %v7511_v11, %v7511_v11 }
  0xe5   : > { %1032 = vmatprep.mubr.f32.mxu0 %v9181_v5  ;;  %2232 = vmatprep.mubr.f32.mxu1 %v9181_v5 }
  0xe6   : > { %v315_v24 = vsel %vm304_vm0, %v253_v13, 0 }
  0xe7   : > { %v7532_v15 = vand.u32 4294901760, %v315_v24 }
  0xe8   : > { %1036 = vmatmul.mubr.f32.gmra.mrb[4].mxu0 %v7056_v49  ;;  %2236 = vmatmul.mubr.f32.gmra.mrb[4].mxu1 %v7056_v49 }
  0xe9   : > { %1041 = vmatprep.mubr.f32.mxu0 %v9181_v5  ;;  %2241 = vmatprep.mubr.f32.mxu1 %v9181_v5 }
  0xec   : > { %1045 = vmatmul.mubr.f32.gmra.mrb[6].mxu0 %v7077_v60  ;;  %2245 = vmatmul.mubr.f32.gmra.mrb[6].mxu1 %v7077_v60 }
  0xed   : > { %1050 = vmatprep.mubr.f32.mxu0 %v9181_v5  ;;  %2250 = vmatprep.mubr.f32.mxu1 %v9181_v5 }
  0xf0   : > { %1054 = vmatmul.mubr.f32.gmra.mrb[8].mxu0 %v7099_v4  ;;  %2254 = vmatmul.mubr.f32.gmra.mrb[8].mxu1 %v7099_v4 }
  0xf1   : > { %1059 = vmatprep.mubr.f32.mxu0 %v9181_v5  ;;  %2259 = vmatprep.mubr.f32.mxu1 %v9181_v5 }
  0xf4   : > { %1063 = vmatmul.mubr.f32.gmra.mrb[10].mxu0 %v7115_v20  ;;  %2263 = vmatmul.mubr.f32.gmra.mrb[10].mxu1 %v7115_v20 }
  0xf5   : > { %1068 = vmatprep.mubr.f32.mxu0 %v9181_v5  ;;  %2268 = vmatprep.mubr.f32.mxu1 %v9181_v5 }
  0xf8   : > { %1072 = vmatmul.mubr.f32.gmra.mrb[12].mxu0 %v7134_v32  ;;  %2272 = vmatmul.mubr.f32.gmra.mrb[12].mxu1 %v7134_v32 }
  0xf9   : > { %1077 = vmatprep.mubr.f32.mxu0 %v9181_v5  ;;  %2277 = vmatprep.mubr.f32.mxu1 %v9181_v5 }
  0xfc   : > { %1081 = vmatmul.mubr.f32.gmra.mrb[14].mxu0 %v7143_v38  ;;  %2281 = vmatmul.mubr.f32.gmra.mrb[14].mxu1 %v7143_v38 }
  0xfd   : > { %1086 = vmatprep.mubr.f32.mxu0 %v9181_v5  ;;  %2286 = vmatprep.mubr.f32.mxu1 %v9181_v5 }
 0x100   : > { %1090 = vmatmul.mubr.f32.gmra.mrb[16].mxu0 %v7169_v59  ;;  %2290 = vmatmul.mubr.f32.gmra.mrb[16].mxu1 %v7169_v59 }
 0x101   : > { %1095 = vmatprep.mubr.f32.mxu0 %v9181_v5  ;;  %2295 = vmatprep.mubr.f32.mxu1 %v9181_v5 }
 0x104   : > { %1099 = vmatmul.mubr.f32.gmra.mrb[18].mxu0 %v7188_v26  ;;  %2299 = vmatmul.mubr.f32.gmra.mrb[18].mxu1 %v7188_v26 }
 0x105   : > { %1104 = vmatprep.mubr.f32.mxu0 %v9181_v5  ;;  %2304 = vmatprep.mubr.f32.mxu1 %v9181_v5 }
 0x108   : > { %1108 = vmatmul.mubr.f32.gmra.mrb[20].mxu0 %v7208_v53  ;;  %2308 = vmatmul.mubr.f32.gmra.mrb[20].mxu1 %v7208_v53 }
 0x109   : > { %1113 = vmatprep.mubr.f32.mxu0 %v9181_v5  ;;  %2313 = vmatprep.mubr.f32.mxu1 %v9181_v5 }
 0x10c   : > { %1117 = vmatmul.mubr.f32.gmra.mrb[22].mxu0 %v7226_v36  ;;  %2317 = vmatmul.mubr.f32.gmra.mrb[22].mxu1 %v7226_v36 }
 0x10d   : > { %1122 = vmatprep.mubr.f32.mxu0 %v9181_v5  ;;  %2322 = vmatprep.mubr.f32.mxu1 %v9181_v5 }
 0x110   : > { %1126 = vmatmul.mubr.f32.gmra.mrb[24].mxu0 %v7241_v56  ;;  %2326 = vmatmul.mubr.f32.gmra.mrb[24].mxu1 %v7241_v56 }
 0x111   : > { %1131 = vmatprep.mubr.f32.mxu0 %v9181_v5  ;;  %2331 = vmatprep.mubr.f32.mxu1 %v9181_v5 }
 0x114   : > { %1135 = vmatmul.mubr.f32.gmra.mrb[26].mxu0 %v7259_v1  ;;  %2335 = vmatmul.mubr.f32.gmra.mrb[26].mxu1 %v7259_v1 }
 0x115   : > { %1140 = vmatprep.mubr.f32.mxu0 %v9181_v5  ;;  %2340 = vmatprep.mubr.f32.mxu1 %v9181_v5 }
 0x118   : > { %1144 = vmatmul.mubr.f32.gmra.mrb[28].mxu0 %v7272_v8  ;;  %2344 = vmatmul.mubr.f32.gmra.mrb[28].mxu1 %v7272_v8 }
 0x119   : > { %1149 = vmatprep.mubr.f32.mxu0 %v9181_v5  ;;  %2349 = vmatprep.mubr.f32.mxu1 %v9181_v5 }
 0x11c   : > { %1153 = vmatmul.mubr.f32.gmra.mrb[30].mxu0 %v7286_v2  ;;  %2353 = vmatmul.mubr.f32.gmra.mrb[30].mxu1 %v7286_v2 }
 0x11d   : > { %1229 = vmatprep.mubr.f32.mxu0 %v9181_v5  ;;  %2429 = vmatprep.mubr.f32.mxu1 %v9181_v5 }
 0x120   : > { %1231 = vmatmul.mubr.f32.vlgmr.msra.gmra.mrb[0].mxu0 %v7010_v25  ;;  %2431 = vmatmul.mubr.f32.vlgmr.msra.gmra.mrb[0].mxu1 %v7010_v25 }
 0x121   : > { %1345 = vmatpush1.msra.mxu0 %v6971_v7  ;;  %1236 = vmatprep.mubr.f32.mxu0 %v9181_v5  ;;  %v7593_v7 = vsub.f32 %v315_v24, %v7532_v15  ;;  %v7610_v24 = vsel %vm304_vm0, %v7511_v11, 0 }
 0x122   : > { %2436 = vmatprep.mubr.f32.mxu1 %v9181_v5  ;;  %2545 = vmatpush1.msra.mxu1 %v6975_v10  ;;  %v7596_v10 = vsub.f32 %v319_v52, %v7534_v16  ;;  %v7614_v52 = vsel %vm304_vm0, %v7516_v12, 0  ;;  %v7627_v11 = vand.u32 4294901760, %v7610_v24 }
 0x123   : > { %2722 = vmatprep.subr.mxu0 %v7532_v15  ;;  %3922 = vmatprep.subr.mxu1 %v7534_v16  ;;  %v9174_v13 = vand.u32 4294901760, %v7593_v7  ;;  %v7630_v12 = vand.u32 4294901760, %v7614_v52 }
 0x124   : > { %1238 = vmatmul.mubr.f32.gmra.mrb[2].mxu0 %v7021_v31  ;;  %2438 = vmatmul.mubr.f32.gmra.mrb[2].mxu1 %v7021_v31  ;;  %v9249_v2 = vand.u32 4294901760, %v7596_v10  ;;  %9250 = vst [vmem:[#allocation38_spill] sm:$0xff] %v7627_v11 }
 0x125   : > { %1243 = vmatprep.mubr.f32.mxu0 %v9181_v5  ;;  %2443 = vmatprep.mubr.f32.mxu1 %v9181_v5  ;;  %v2967_v14 = vsub.f32 %v7593_v7, %v9174_v13  ;;  %9251 = vst [vmem:[#allocation39_spill] sm:$0xff] %v7630_v12 }
 0x126   : > { %v4167_v8 = vsub.f32 %v7596_v10, %v9249_v2  ;;  %v7686_v2 = vsub.f32 %v7610_v24, %v7627_v11 }
 0x127   : > { %v2968_v1 = vand.u32 4294901760, %v2967_v14 }
 0x128   : > { %1245 = vmatmul.mubr.f32.gmra.mrb[4].mxu0 %v7030_v35  ;;  %2445 = vmatmul.mubr.f32.gmra.mrb[4].mxu1 %v7030_v35  ;;  %v4168_v13 = vand.u32 4294901760, %v4167_v8  ;;  %v9178_v8 = vand.u32 4294901760, %v7686_v2 }
 0x129   : > { %1250 = vmatprep.mubr.f32.mxu0 %v9181_v5  ;;  %2450 = vmatprep.mubr.f32.mxu1 %v9181_v5 }
 0x12a   : > { %v2973_v14 = vsub.f32 %v7686_v2, %v9178_v8 }
 0x12c   : > { %1252 = vmatmul.mubr.f32.gmra.mrb[6].mxu0 %v7037_v41  ;;  %2452 = vmatmul.mubr.f32.gmra.mrb[6].mxu1 %v7037_v41 }
 0x12d   : > { %1257 = vmatprep.mubr.f32.mxu0 %v9181_v5  ;;  %2457 = vmatprep.mubr.f32.mxu1 %v9181_v5 }
 0x130   : > { %1259 = vmatmul.mubr.f32.gmra.mrb[8].mxu0 %v7061_v51  ;;  %2459 = vmatmul.mubr.f32.gmra.mrb[8].mxu1 %v7061_v51 }
 0x131   : > { %1264 = vmatprep.mubr.f32.mxu0 %v9181_v5  ;;  %2464 = vmatprep.mubr.f32.mxu1 %v9181_v5 }
 0x134   : > { %1266 = vmatmul.mubr.f32.gmra.mrb[10].mxu0 %v7068_v57  ;;  %2466 = vmatmul.mubr.f32.gmra.mrb[10].mxu1 %v7068_v57 }
 0x135   : > { %1271 = vmatprep.mubr.f32.mxu0 %v9181_v5  ;;  %2471 = vmatprep.mubr.f32.mxu1 %v9181_v5 }
 0x138   : > { %1273 = vmatmul.mubr.f32.gmra.mrb[12].mxu0 %v7101_v6  ;;  %2473 = vmatmul.mubr.f32.gmra.mrb[12].mxu1 %v7101_v6 }
 0x139   : > { %1278 = vmatprep.mubr.f32.mxu0 %v9181_v5  ;;  %2478 = vmatprep.mubr.f32.mxu1 %v9181_v5 }
 0x13c   : > { %1280 = vmatmul.mubr.f32.gmra.mrb[14].mxu0 %v7106_v9  ;;  %2480 = vmatmul.mubr.f32.gmra.mrb[14].mxu1 %v7106_v9 }
 0x13d   : > { %1285 = vmatprep.mubr.f32.mxu0 %v9181_v5  ;;  %2485 = vmatprep.mubr.f32.mxu1 %v9181_v5 }
 0x140   : > { %1287 = vmatmul.mubr.f32.gmra.mrb[16].mxu0 %v7136_v34  ;;  %2487 = vmatmul.mubr.f32.gmra.mrb[16].mxu1 %v7136_v34 }
 0x141   : > { %1292 = vmatprep.mubr.f32.mxu0 %v9181_v5  ;;  %2492 = vmatprep.mubr.f32.mxu1 %v9181_v5 }
 0x144   : > { %1294 = vmatmul.mubr.f32.gmra.mrb[18].mxu0 %v7155_v48  ;;  %2494 = vmatmul.mubr.f32.gmra.mrb[18].mxu1 %v7155_v48 }
 0x145   : > { %1299 = vmatprep.mubr.f32.mxu0 %v9181_v5  ;;  %2499 = vmatprep.mubr.f32.mxu1 %v9181_v5 }
 0x148   : > { %1301 = vmatmul.mubr.f32.gmra.mrb[20].mxu0 %v7162_v55  ;;  %2501 = vmatmul.mubr.f32.gmra.mrb[20].mxu1 %v7162_v55 }
 0x149   : > { %1306 = vmatprep.mubr.f32.mxu0 %v9181_v5  ;;  %2506 = vmatprep.mubr.f32.mxu1 %v9181_v5 }
 0x14c   : > { %1308 = vmatmul.mubr.f32.gmra.mrb[22].mxu0 %v7178_v3  ;;  %2508 = vmatmul.mubr.f32.gmra.mrb[22].mxu1 %v7178_v3 }
 0x14d   : > { %1313 = vmatprep.mubr.f32.mxu0 %v9181_v5  ;;  %2513 = vmatprep.mubr.f32.mxu1 %v9181_v5 }
 0x150   : > { %1315 = vmatmul.mubr.f32.gmra.mrb[24].mxu0 %v7199_v45  ;;  %2515 = vmatmul.mubr.f32.gmra.mrb[24].mxu1 %v7199_v45 }
 0x151   : > { %1320 = vmatprep.mubr.f32.mxu0 %v9181_v5  ;;  %2520 = vmatprep.mubr.f32.mxu1 %v9181_v5 }
 0x154   : > { %1322 = vmatmul.mubr.f32.gmra.mrb[26].mxu0 %v7217_v18  ;;  %2522 = vmatmul.mubr.f32.gmra.mrb[26].mxu1 %v7217_v18 }
 0x155   : > { %1327 = vmatprep.mubr.f32.mxu0 %v9181_v5  ;;  %2527 = vmatprep.mubr.f32.mxu1 %v9181_v5 }
 0x158   : > { %1329 = vmatmul.mubr.f32.gmra.mrb[28].mxu0 %v7232_v19  ;;  %2529 = vmatmul.mubr.f32.gmra.mrb[28].mxu1 %v7232_v19 }
 0x159   : > { %1334 = vmatprep.mubr.f32.mxu0 %v9181_v5  ;;  %2534 = vmatprep.mubr.f32.mxu1 %v9181_v5 }
 0x15c   : > { %1336 = vmatmul.mubr.f32.gmra.mrb[30].mxu0 %v7261_v17  ;;  %2536 = vmatmul.mubr.f32.gmra.mrb[30].mxu1 %v7261_v17 }
 0x15d   : > { %1408 = vmatprep.mubr.f32.mxu0 %v9181_v5  ;;  %2608 = vmatprep.mubr.f32.mxu1 %v9181_v5 }
 0x160   : > { %1410 = vmatmul.mubr.f32.vlgmr.msra.gmra.mrb[0].mxu0 %v7010_v25  ;;  %2610 = vmatmul.mubr.f32.vlgmr.msra.gmra.mrb[0].mxu1 %v7010_v25 }
 0x161   : > { %2724 = vmatpush1.msra.mxu0 %v7627_v11  ;;  %1415 = vmatprep.mubr.f32.mxu0 %v9181_v5 }
 0x162   : > { %2615 = vmatprep.mubr.f32.mxu1 %v9181_v5  ;;  %3924 = vmatpush1.msra.mxu1 %v7630_v12 }
 0x163   : > { %2969 = vmatprep.subr.mxu0 %v2968_v1  ;;  %4169 = vmatprep.subr.mxu1 %v4168_v13  ;;  %v7692_v1 = vsub.f32 %v7614_v52, %v7630_v12  ;;  %v2974_v52 = vand.u32 4294901760, %v2973_v14  ;;  %v9252_v14 = vld [vmem:[#allocation13_spill] sm:$0xff] }
 0x164   : > { %1417 = vmatmul.mubr.f32.gmra.mrb[2].mxu0 %v7021_v31  ;;  %2617 = vmatmul.mubr.f32.gmra.mrb[2].mxu1 %v7021_v31 }
 0x165   : > { %1422 = vmatprep.mubr.f32.mxu0 %v9181_v5  ;;  %2622 = vmatprep.mubr.f32.mxu1 %v9181_v5  ;;  %v9177_v13 = vand.u32 4294901760, %v7692_v1 }
 0x167   : > { %v4173_v24 = vsub.f32 %v7692_v1, %v9177_v13 }
 0x168   : > { %1424 = vmatmul.mubr.f32.gmra.mrb[4].mxu0 %v7030_v35  ;;  %2624 = vmatmul.mubr.f32.gmra.mrb[4].mxu1 %v7030_v35 }
 0x169   : > { %1429 = vmatprep.mubr.f32.mxu0 %v9181_v5  ;;  %2629 = vmatprep.mubr.f32.mxu1 %v9181_v5  ;;  %v4174_v56 = vand.u32 4294901760, %v4173_v24  ;;  %v9256_v24 = vld [vmem:[#allocation22_spill] sm:$0xff] }
 0x16c   : > { %1431 = vmatmul.mubr.f32.gmra.mrb[6].mxu0 %v7037_v41  ;;  %2631 = vmatmul.mubr.f32.gmra.mrb[6].mxu1 %v7037_v41 }
 0x16d   : > { %1436 = vmatprep.mubr.f32.mxu0 %v9181_v5  ;;  %2636 = vmatprep.mubr.f32.mxu1 %v9181_v5 }
 0x170   : > { %1438 = vmatmul.mubr.f32.gmra.mrb[8].mxu0 %v7061_v51  ;;  %2638 = vmatmul.mubr.f32.gmra.mrb[8].mxu1 %v7061_v51 }
 0x171   : > { %1443 = vmatprep.mubr.f32.mxu0 %v9181_v5  ;;  %2643 = vmatprep.mubr.f32.mxu1 %v9181_v5 }
 0x174   : > { %1445 = vmatmul.mubr.f32.gmra.mrb[10].mxu0 %v7068_v57  ;;  %2645 = vmatmul.mubr.f32.gmra.mrb[10].mxu1 %v7068_v57 }
 0x175   : > { %1450 = vmatprep.mubr.f32.mxu0 %v9181_v5  ;;  %2650 = vmatprep.mubr.f32.mxu1 %v9181_v5 }
 0x178   : > { %1452 = vmatmul.mubr.f32.gmra.mrb[12].mxu0 %v7101_v6  ;;  %2652 = vmatmul.mubr.f32.gmra.mrb[12].mxu1 %v7101_v6 }
 0x179   : > { %1457 = vmatprep.mubr.f32.mxu0 %v9181_v5  ;;  %2657 = vmatprep.mubr.f32.mxu1 %v9181_v5 }
 0x17c   : > { %1459 = vmatmul.mubr.f32.gmra.mrb[14].mxu0 %v7106_v9  ;;  %2659 = vmatmul.mubr.f32.gmra.mrb[14].mxu1 %v7106_v9 }
 0x17d   : > { %1464 = vmatprep.mubr.f32.mxu0 %v9181_v5  ;;  %2664 = vmatprep.mubr.f32.mxu1 %v9181_v5 }
 0x180   : > { %1466 = vmatmul.mubr.f32.gmra.mrb[16].mxu0 %v7136_v34  ;;  %2666 = vmatmul.mubr.f32.gmra.mrb[16].mxu1 %v7136_v34 }
 0x181   : > { %1471 = vmatprep.mubr.f32.mxu0 %v9181_v5  ;;  %2671 = vmatprep.mubr.f32.mxu1 %v9181_v5 }
 0x184   : > { %1473 = vmatmul.mubr.f32.gmra.mrb[18].mxu0 %v7155_v48  ;;  %2673 = vmatmul.mubr.f32.gmra.mrb[18].mxu1 %v7155_v48 }
 0x185   : > { %1478 = vmatprep.mubr.f32.mxu0 %v9181_v5  ;;  %2678 = vmatprep.mubr.f32.mxu1 %v9181_v5 }
 0x188   : > { %1480 = vmatmul.mubr.f32.gmra.mrb[20].mxu0 %v7162_v55  ;;  %2680 = vmatmul.mubr.f32.gmra.mrb[20].mxu1 %v7162_v55 }
 0x189   : > { %1485 = vmatprep.mubr.f32.mxu0 %v9181_v5  ;;  %2685 = vmatprep.mubr.f32.mxu1 %v9181_v5 }
 0x18c   : > { %1487 = vmatmul.mubr.f32.gmra.mrb[22].mxu0 %v7178_v3  ;;  %2687 = vmatmul.mubr.f32.gmra.mrb[22].mxu1 %v7178_v3 }
 0x18d   : > { %1492 = vmatprep.mubr.f32.mxu0 %v9181_v5  ;;  %2692 = vmatprep.mubr.f32.mxu1 %v9181_v5 }
 0x190   : > { %1494 = vmatmul.mubr.f32.gmra.mrb[24].mxu0 %v7199_v45  ;;  %2694 = vmatmul.mubr.f32.gmra.mrb[24].mxu1 %v7199_v45 }
 0x191   : > { %1499 = vmatprep.mubr.f32.mxu0 %v9181_v5  ;;  %2699 = vmatprep.mubr.f32.mxu1 %v9181_v5 }
 0x194   : > { %1501 = vmatmul.mubr.f32.gmra.mrb[26].mxu0 %v7217_v18  ;;  %2701 = vmatmul.mubr.f32.gmra.mrb[26].mxu1 %v7217_v18 }
 0x195   : > { %1506 = vmatprep.mubr.f32.mxu0 %v9181_v5  ;;  %2706 = vmatprep.mubr.f32.mxu1 %v9181_v5 }
 0x198   : > { %1508 = vmatmul.mubr.f32.gmra.mrb[28].mxu0 %v7232_v19  ;;  %2708 = vmatmul.mubr.f32.gmra.mrb[28].mxu1 %v7232_v19 }
 0x199   : > { %1513 = vmatprep.mubr.f32.mxu0 %v9181_v5  ;;  %2713 = vmatprep.mubr.f32.mxu1 %v9181_v5 }
 0x19c   : > { %1515 = vmatmul.mubr.f32.gmra.mrb[30].mxu0 %v7261_v17  ;;  %2715 = vmatmul.mubr.f32.gmra.mrb[30].mxu1 %v7261_v17 }
 0x19d   : > { %2787 = vmatprep.mubr.f32.mxu0 %v9181_v5  ;;  %3987 = vmatprep.mubr.f32.mxu1 %v9181_v5 }
 0x1a0   : > { %2793 = vmatmul.mubr.f32.vlgmr.msra.gmra.mrb[32].mxu0 %v7065_v54  ;;  %3993 = vmatmul.mubr.f32.vlgmr.msra.gmra.mrb[32].mxu1 %v7065_v54  ;;  %v9253_v54 = vld [vmem:[#allocation16_spill] sm:$0xff] }
 0x1a1   : > { %2975 = vmatpush1.msra.mxu0 %v2974_v52  ;;  %2798 = vmatprep.mubr.f32.mxu0 %v9181_v5  ;;  %v9257_v52 = vld [vmem:[#allocation24_spill] sm:$0xff] }
 0x1a2   : > { %3998 = vmatprep.mubr.f32.mxu1 %v9181_v5  ;;  %4175 = vmatpush1.msra.mxu1 %v4174_v56  ;;  %v9255_v56 = vld [vmem:[#allocation19_spill] sm:$0xff] }
 0x1a3   : > { %3153 = vmatprep.subr.mxu0 %v7593_v7  ;;  %4353 = vmatprep.subr.mxu1 %v7596_v10 }
 0x1a4   : > { %2804 = vmatmul.mubr.f32.gmra.mrb[34].mxu0 %v7072_v58  ;;  %4004 = vmatmul.mubr.f32.gmra.mrb[34].mxu1 %v7072_v58  ;;  %v9254_v58 = vld [vmem:[#allocation17_spill] sm:$0xff] }
 0x1a5   : > { %2809 = vmatprep.mubr.f32.mxu0 %v9181_v5  ;;  %4009 = vmatprep.mubr.f32.mxu1 %v9181_v5 }
 0x1a8   : > { %2815 = vmatmul.mubr.f32.gmra.mrb[36].mxu0 %v9252_v14  ;;  %4015 = vmatmul.mubr.f32.gmra.mrb[36].mxu1 %v9252_v14  ;;  %v9258_v14 = vld [vmem:[#allocation26_spill] sm:$0xff] }
 0x1a9   : > { %2820 = vmatprep.mubr.f32.mxu0 %v9181_v5  ;;  %4020 = vmatprep.mubr.f32.mxu1 %v9181_v5 }
 0x1ac   : > { %2826 = vmatmul.mubr.f32.gmra.mrb[38].mxu0 %v9253_v54  ;;  %4026 = vmatmul.mubr.f32.gmra.mrb[38].mxu1 %v9253_v54  ;;  %v9259_v54 = vld [vmem:[#allocation28_spill] sm:$0xff] }
 0x1ad   : > { %2831 = vmatprep.mubr.f32.mxu0 %v9181_v5  ;;  %4031 = vmatprep.mubr.f32.mxu1 %v9181_v5 }
 0x1b0   : > { %2837 = vmatmul.mubr.f32.gmra.mrb[40].mxu0 %v9254_v58  ;;  %4037 = vmatmul.mubr.f32.gmra.mrb[40].mxu1 %v9254_v58  ;;  %v9260_v58 = vld [vmem:[#allocation30_spill] sm:$0xff] }
 0x1b1   : > { %2842 = vmatprep.mubr.f32.mxu0 %v9181_v5  ;;  %4042 = vmatprep.mubr.f32.mxu1 %v9181_v5 }
 0x1b4   : > { %2848 = vmatmul.mubr.f32.gmra.mrb[42].mxu0 %v9255_v56  ;;  %4048 = vmatmul.mubr.f32.gmra.mrb[42].mxu1 %v9255_v56  ;;  %v9261_v56 = vld [vmem:[#allocation32_spill] sm:$0xff] }
 0x1b5   : > { %2853 = vmatprep.mubr.f32.mxu0 %v9181_v5  ;;  %4053 = vmatprep.mubr.f32.mxu1 %v9181_v5 }
 0x1b8   : > { %2859 = vmatmul.mubr.f32.gmra.mrb[44].mxu0 %v9256_v24  ;;  %4059 = vmatmul.mubr.f32.gmra.mrb[44].mxu1 %v9256_v24  ;;  %v9262_v24 = vld [vmem:[#allocation35_spill] sm:$0xff] }
 0x1b9   : > { %2864 = vmatprep.mubr.f32.mxu0 %v9181_v5  ;;  %4064 = vmatprep.mubr.f32.mxu1 %v9181_v5 }
 0x1bc   : > { %2870 = vmatmul.mubr.f32.gmra.mrb[46].mxu0 %v9257_v52  ;;  %4070 = vmatmul.mubr.f32.gmra.mrb[46].mxu1 %v9257_v52 }
 0x1bd   : > { %2875 = vmatprep.mubr.f32.mxu0 %v9181_v5  ;;  %4075 = vmatprep.mubr.f32.mxu1 %v9181_v5 }
 0x1c0   : > { %2881 = vmatmul.mubr.f32.gmra.mrb[48].mxu0 %v9258_v14  ;;  %4081 = vmatmul.mubr.f32.gmra.mrb[48].mxu1 %v9258_v14 }
 0x1c1   : > { %2886 = vmatprep.mubr.f32.mxu0 %v9181_v5  ;;  %4086 = vmatprep.mubr.f32.mxu1 %v9181_v5 }
 0x1c4   : > { %2892 = vmatmul.mubr.f32.gmra.mrb[50].mxu0 %v9259_v54  ;;  %4092 = vmatmul.mubr.f32.gmra.mrb[50].mxu1 %v9259_v54 }
 0x1c5   : > { %2897 = vmatprep.mubr.f32.mxu0 %v9181_v5  ;;  %4097 = vmatprep.mubr.f32.mxu1 %v9181_v5 }
 0x1c8   : > { %2903 = vmatmul.mubr.f32.gmra.mrb[52].mxu0 %v9260_v58  ;;  %4103 = vmatmul.mubr.f32.gmra.mrb[52].mxu1 %v9260_v58 }
 0x1c9   : > { %2908 = vmatprep.mubr.f32.mxu0 %v9181_v5  ;;  %4108 = vmatprep.mubr.f32.mxu1 %v9181_v5 }
 0x1cc   : > { %2914 = vmatmul.mubr.f32.gmra.mrb[54].mxu0 %v9261_v56  ;;  %4114 = vmatmul.mubr.f32.gmra.mrb[54].mxu1 %v9261_v56 }
 0x1cd   : > { %2919 = vmatprep.mubr.f32.mxu0 %v9181_v5  ;;  %4119 = vmatprep.mubr.f32.mxu1 %v9181_v5 }
 0x1d0   : > { %2925 = vmatmul.mubr.f32.gmra.mrb[56].mxu0 %v9262_v24  ;;  %4125 = vmatmul.mubr.f32.gmra.mrb[56].mxu1 %v9262_v24 }
 0x1d1   : > { %2930 = vmatprep.mubr.f32.mxu0 %v9181_v5  ;;  %4130 = vmatprep.mubr.f32.mxu1 %v9181_v5 }
 0x1d4   : > { %2936 = vmatmul.mubr.f32.gmra.mrb[58].mxu0 %v7281_v23  ;;  %4136 = vmatmul.mubr.f32.gmra.mrb[58].mxu1 %v7281_v23  ;;  %v9263_v23 = vand.u32 4294901760, %v7593_v7 }
 0x1d5   : > { %2941 = vmatprep.mubr.f32.mxu0 %v9181_v5  ;;  %4141 = vmatprep.mubr.f32.mxu1 %v9181_v5 }
 0x1d8   : > { %2947 = vmatmul.mubr.f32.gmra.mrb[60].mxu0 %v7292_v43  ;;  %4147 = vmatmul.mubr.f32.gmra.mrb[60].mxu1 %v7292_v43  ;;  %v207_v43 = vlaneseq }
 0x1d9   : > { %2952 = vmatprep.mubr.f32.mxu0 %v9181_v5  ;;  %4152 = vmatprep.mubr.f32.mxu1 %v9181_v5 }
 0x1dc   : > { %2958 = vmatmul.mubr.f32.gmra.mrb[62].mxu0 %v7300_v21  ;;  %4158 = vmatmul.mubr.f32.gmra.mrb[62].mxu1 %v7300_v21  ;;  %v9264_v21 = vand.u32 4294901760, %v7596_v10 }
 0x1dd   : > { %3038 = vmatprep.mubr.f32.mxu0 %v9181_v5  ;;  %4238 = vmatprep.mubr.f32.mxu1 %v9181_v5 }
 0x1e0   : > { %3040 = vmatmul.mubr.f32.vlgmr.msra.gmra.mrb[32].mxu0 %v7010_v25  ;;  %4240 = vmatmul.mubr.f32.vlgmr.msra.gmra.mrb[32].mxu1 %v7010_v25 }
 0x1e1   : > { %3156 = vmatpush1.msra.mxu0 %v7686_v2  ;;  %3045 = vmatprep.mubr.f32.mxu0 %v9181_v5 }
 0x1e2   : > { %4245 = vmatprep.mubr.f32.mxu1 %v9181_v5  ;;  %4356 = vmatpush1.msra.mxu1 %v7692_v1 }
 0x1e3   : > { %3349 = vmatprep.subr.mxu0 %v7532_v15  ;;  %4549 = vmatprep.subr.mxu1 %v7534_v16 }
 0x1e4   : > { %3047 = vmatmul.mubr.f32.gmra.mrb[34].mxu0 %v7021_v31  ;;  %4247 = vmatmul.mubr.f32.gmra.mrb[34].mxu1 %v7021_v31 }
 0x1e5   : > { %3052 = vmatprep.mubr.f32.mxu0 %v9181_v5  ;;  %4252 = vmatprep.mubr.f32.mxu1 %v9181_v5 }
 0x1e8   : > { %3054 = vmatmul.mubr.f32.gmra.mrb[36].mxu0 %v7030_v35  ;;  %4254 = vmatmul.mubr.f32.gmra.mrb[36].mxu1 %v7030_v35 }
 0x1e9   : > { %3059 = vmatprep.mubr.f32.mxu0 %v9181_v5  ;;  %4259 = vmatprep.mubr.f32.mxu1 %v9181_v5 }
 0x1ec   : > { %3061 = vmatmul.mubr.f32.gmra.mrb[38].mxu0 %v7037_v41  ;;  %4261 = vmatmul.mubr.f32.gmra.mrb[38].mxu1 %v7037_v41 }
 0x1ed   : > { %3066 = vmatprep.mubr.f32.mxu0 %v9181_v5  ;;  %4266 = vmatprep.mubr.f32.mxu1 %v9181_v5 }
 0x1f0   : > { %3068 = vmatmul.mubr.f32.gmra.mrb[40].mxu0 %v7061_v51  ;;  %4268 = vmatmul.mubr.f32.gmra.mrb[40].mxu1 %v7061_v51 }
 0x1f1   : > { %3073 = vmatprep.mubr.f32.mxu0 %v9181_v5  ;;  %4273 = vmatprep.mubr.f32.mxu1 %v9181_v5 }
 0x1f4   : > { %3075 = vmatmul.mubr.f32.gmra.mrb[42].mxu0 %v7068_v57  ;;  %4275 = vmatmul.mubr.f32.gmra.mrb[42].mxu1 %v7068_v57 }
 0x1f5   : > { %3080 = vmatprep.mubr.f32.mxu0 %v9181_v5  ;;  %4280 = vmatprep.mubr.f32.mxu1 %v9181_v5 }
 0x1f8   : > { %3082 = vmatmul.mubr.f32.gmra.mrb[44].mxu0 %v7101_v6  ;;  %4282 = vmatmul.mubr.f32.gmra.mrb[44].mxu1 %v7101_v6 }
 0x1f9   : > { %3087 = vmatprep.mubr.f32.mxu0 %v9181_v5  ;;  %4287 = vmatprep.mubr.f32.mxu1 %v9181_v5 }
 0x1fc   : > { %3089 = vmatmul.mubr.f32.gmra.mrb[46].mxu0 %v7106_v9  ;;  %4289 = vmatmul.mubr.f32.gmra.mrb[46].mxu1 %v7106_v9 }
 0x1fd   : > { %3094 = vmatprep.mubr.f32.mxu0 %v9181_v5  ;;  %4294 = vmatprep.mubr.f32.mxu1 %v9181_v5 }
 0x200   : > { %3096 = vmatmul.mubr.f32.gmra.mrb[48].mxu0 %v7136_v34  ;;  %4296 = vmatmul.mubr.f32.gmra.mrb[48].mxu1 %v7136_v34 }
 0x201   : > { %3101 = vmatprep.mubr.f32.mxu0 %v9181_v5  ;;  %4301 = vmatprep.mubr.f32.mxu1 %v9181_v5 }
 0x204   : > { %3103 = vmatmul.mubr.f32.gmra.mrb[50].mxu0 %v7155_v48  ;;  %4303 = vmatmul.mubr.f32.gmra.mrb[50].mxu1 %v7155_v48 }
 0x205   : > { %3108 = vmatprep.mubr.f32.mxu0 %v9181_v5  ;;  %4308 = vmatprep.mubr.f32.mxu1 %v9181_v5 }
 0x208   : > { %3110 = vmatmul.mubr.f32.gmra.mrb[52].mxu0 %v7162_v55  ;;  %4310 = vmatmul.mubr.f32.gmra.mrb[52].mxu1 %v7162_v55 }
 0x209   : > { %3115 = vmatprep.mubr.f32.mxu0 %v9181_v5  ;;  %4315 = vmatprep.mubr.f32.mxu1 %v9181_v5 }
 0x20c   : > { %3117 = vmatmul.mubr.f32.gmra.mrb[54].mxu0 %v7178_v3  ;;  %4317 = vmatmul.mubr.f32.gmra.mrb[54].mxu1 %v7178_v3 }
 0x20d   : > { %3122 = vmatprep.mubr.f32.mxu0 %v9181_v5  ;;  %4322 = vmatprep.mubr.f32.mxu1 %v9181_v5 }
 0x210   : > { %3124 = vmatmul.mubr.f32.gmra.mrb[56].mxu0 %v7199_v45  ;;  %4324 = vmatmul.mubr.f32.gmra.mrb[56].mxu1 %v7199_v45 }
 0x211   : > { %3129 = vmatprep.mubr.f32.mxu0 %v9181_v5  ;;  %4329 = vmatprep.mubr.f32.mxu1 %v9181_v5 }
 0x214   : > { %3131 = vmatmul.mubr.f32.gmra.mrb[58].mxu0 %v7217_v18  ;;  %4331 = vmatmul.mubr.f32.gmra.mrb[58].mxu1 %v7217_v18 }
 0x215   : > { %3136 = vmatprep.mubr.f32.mxu0 %v9181_v5  ;;  %4336 = vmatprep.mubr.f32.mxu1 %v9181_v5 }
 0x218   : > { %3138 = vmatmul.mubr.f32.gmra.mrb[60].mxu0 %v7232_v19  ;;  %4338 = vmatmul.mubr.f32.gmra.mrb[60].mxu1 %v7232_v19 }
 0x219   : > { %3143 = vmatprep.mubr.f32.mxu0 %v9181_v5  ;;  %4343 = vmatprep.mubr.f32.mxu1 %v9181_v5 }
 0x21c   : > { %3145 = vmatmul.mubr.f32.gmra.mrb[62].mxu0 %v7261_v17  ;;  %4345 = vmatmul.mubr.f32.gmra.mrb[62].mxu1 %v7261_v17  ;;  %v9266_v17 = vmov 0.0  }
 0x21d   : > { %3219 = vmatprep.mubr.f32.mxu0 %v9181_v5  ;;  %4419 = vmatprep.mubr.f32.mxu1 %v9181_v5 }
 0x220   : > { %3222 = vmatmul.mubr.f32.vlgmr.msra.gmra.mrb[32].mxu0 %v7025_v33  ;;  %4422 = vmatmul.mubr.f32.vlgmr.msra.gmra.mrb[32].mxu1 %v7025_v33  ;;  %v7864_v33 = vshrl.u32 %v207_v43, 7 }
 0x221   : > { %3351 = vmatpush1.msra.mxu0 %v7627_v11  ;;  %3227 = vmatprep.mubr.f32.mxu0 %v9181_v5 }
 0x222   : > { %4427 = vmatprep.mubr.f32.mxu1 %v9181_v5  ;;  %4551 = vmatpush1.msra.mxu1 %v7630_v12  ;;  %9265 = vst [vmem:[#allocation13_spill] sm:$0xff] %v7864_v33  ;;  %v217_v7 = vsub.s32 2, %v7864_v33  ;;  %v213_v10 = vsub.s32 1, %v7864_v33  ;;  %v221_v52 = vsub.s32 3, %v7864_v33 }
 0x223   : > { %3562 = vmatprep.subr.mxu0 %v9263_v23  ;;  %4762 = vmatprep.subr.mxu1 %v9264_v21 }
 0x224   : > { %3230 = vmatmul.mubr.f32.gmra.mrb[34].mxu0 %v7035_v40  ;;  %4430 = vmatmul.mubr.f32.gmra.mrb[34].mxu1 %v7035_v40  ;;  %v209_v40 = vsub.s32 0, %v7864_v33 }
 0x225   : > { %3235 = vmatprep.mubr.f32.mxu0 %v9181_v5  ;;  %4435 = vmatprep.mubr.f32.mxu1 %v9181_v5 }
 0x228   : > { %3238 = vmatmul.mubr.f32.gmra.mrb[36].mxu0 %v7046_v44  ;;  %4438 = vmatmul.mubr.f32.gmra.mrb[36].mxu1 %v7046_v44  ;;  %v201_v44 = vld [vmem:[%s9138_s1] sm:$0xff] }
 0x229   : > { %3243 = vmatprep.mubr.f32.mxu0 %v9181_v5  ;;  %4443 = vmatprep.mubr.f32.mxu1 %v9181_v5  ;;  %v7883_v14 = vrot.slane %v201_v44, %v217_v7  ;;  %v7887_v54 = vrot.slane %v201_v44, %v213_v10  ;;  %v7889_v58 = vrot.slane %v201_v44, %v221_v52 }
 0x22c   : > { %3246 = vmatmul.mubr.f32.gmra.mrb[38].mxu0 %v7059_v50  ;;  %4446 = vmatmul.mubr.f32.gmra.mrb[38].mxu1 %v7059_v50  ;;  %v7881_v50 = vrot.slane %v201_v44, %v209_v40 }
 0x22d   : > { %3251 = vmatprep.mubr.f32.mxu0 %v9181_v5  ;;  %4451 = vmatprep.mubr.f32.mxu1 %v9181_v5 }
 0x230   : > { %3254 = vmatmul.mubr.f32.gmra.mrb[40].mxu0 %v7080_v61  ;;  %4454 = vmatmul.mubr.f32.gmra.mrb[40].mxu1 %v7080_v61 }
 0x231   : > { %3259 = vmatprep.mubr.f32.mxu0 %v9181_v5  ;;  %4459 = vmatprep.mubr.f32.mxu1 %v9181_v5 }
 0x233   : > { %v1411_v56 = vpop.f32.mrb[0].mxu0  ;;  %v2611_v24 = vpop.f32.mrb[0].mxu1 }
 0x234   : > { %v6056_v23 = vadd.f32 %v1411_v56, %v7881_v50  ;;  %v6088_v21 = vadd.f32 %v2611_v24, %v7883_v14  ;;  %v1413_v43 = vpop.f32.mrb[1].mxu0  ;;  %v2613_v61 = vpop.f32.mrb[1].mxu1  ;;  %3262 = vmatmul.mubr.f32.gmra.mrb[42].mxu0 %v7087_v0  ;;  %4462 = vmatmul.mubr.f32.gmra.mrb[42].mxu1 %v7087_v0 }
 0x235   : > { %v6057_v40 = vadd.f32 %v1413_v43, %v7887_v54  ;;  %v6089_v7 = vadd.f32 %v2613_v61, %v7889_v58  ;;  %3267 = vmatprep.mubr.f32.mxu0 %v9181_v5  ;;  %4467 = vmatprep.mubr.f32.mxu1 %v9181_v5 }
 0x236   : > { %vm5121_vm2 = vcmp.gt.f32.partialorder %v6056_v23, 0.0  ;;  %v5249_v44 = vmul.f32 0.2, %v6056_v23  ;;  %vm5123_vm3 = vcmp.gt.f32.partialorder %v6088_v21, 0.0  ;;  %v5251_v10 = vmul.f32 0.2, %v6088_v21 }
 0x237   : > { %vm5122_vm4 = vcmp.gt.f32.partialorder %v6057_v40, 0.0  ;;  %v5250_v52 = vmul.f32 0.2, %v6057_v40  ;;  %v5252_v56 = vmul.f32 0.2, %v6089_v7  ;;  %vm5124_vm5 = vcmp.gt.f32.partialorder %v6089_v7, 0.0 }
 0x238   : > { %v5377_v24 = vsel %vm5121_vm2, %v6056_v23, %v5249_v44  ;;  %v5379_v13 = vsel %vm5123_vm3, %v6088_v21, %v5251_v10  ;;  %v1418_v8 = vpop.f32.mrb[2].mxu0  ;;  %v2618_v0 = vpop.f32.mrb[2].mxu1  ;;  %3270 = vmatmul.mubr.f32.gmra.mrb[44].mxu0 %v7118_v22  ;;  %4470 = vmatmul.mubr.f32.gmra.mrb[44].mxu1 %v7118_v22 }
 0x239   : > { %v5670_v43 = vmul.f32 %v5377_v24, %v5377_v24  ;;  %v5378_v61 = vsel %vm5122_vm4, %v6057_v40, %v5250_v52  ;;  %v1420_v33 = vpop.f32.mrb[3].mxu0  ;;  %v2620_v5 = vpop.f32.mrb[3].mxu1  ;;  %3275 = vmatprep.mubr.f32.mxu0 %v9266_v17  ;;  %v7902_v19 = vmul.f32 %v5379_v13, %v5379_v13  ;;  %v6058_v23 = vadd.f32 %v1418_v8, %v7881_v50 }
 0x23a   : > { %v5505_v18 = vadd.f32 %v5378_v61, %v5377_v24  ;;  %v5671_v45 = vmul.f32 %v5378_v61, %v5378_v61  ;;  %4475 = vmatprep.mubr.f32.mxu1 %v9266_v17  ;;  %v7906_v21 = vsel %vm5124_vm5, %v6089_v7, %v5252_v56  ;;  %v6090_v44 = vadd.f32 %v2618_v0, %v7883_v14 }
 0x23b   : > { %v6059_v22 = vadd.f32 %v1420_v33, %v7887_v54  ;;  %v6091_v40 = vadd.f32 %v2620_v5, %v7889_v58  ;;  %v1425_v10 = vpop.f32.mrb[4].mxu0  ;;  %v2625_v52 = vpop.f32.mrb[4].mxu1  ;;  %vm5129_vm6 = vcmp.gt.f32.partialorder %v6058_v23, 0.0  ;;  %v5257_v24 = vmul.f32 0.2, %v6058_v23 }
 0x23c   : > { %v7911_v3 = vadd.f32 %v5671_v45, %v5670_v43  ;;  %v5506_v55 = vadd.f32 %v5505_v18, %v5379_v13  ;;  %v1427_v61 = vpop.f32.mrb[5].mxu0  ;;  %v2627_v48 = vpop.f32.mrb[5].mxu1  ;;  %3278 = vmatmul.mubr.f32.gmra.mrb[46].mxu0 %v7125_v28  ;;  %4478 = vmatmul.mubr.f32.gmra.mrb[46].mxu1 %v7125_v28  ;;  %vm5131_vm7 = vcmp.gt.f32.partialorder %v6090_v44, 0.0  ;;  %v5259_v8 = vmul.f32 0.2, %v6090_v44 }
 0x23d   : > { %vm5130_vm8 = vcmp.gt.f32.partialorder %v6059_v22, 0.0  ;;  %v5258_v7 = vmul.f32 0.2, %v6059_v22  ;;  %3283 = vmatprep.mubr.f32.mxu0 %v9266_v17  ;;  %4483 = vmatprep.mubr.f32.mxu1 %v9266_v17  ;;  %v5385_v18 = vsel %vm5129_vm6, %v6058_v23, %v5257_v24  ;;  %vm5132_vm9 = vcmp.gt.f32.partialorder %v6091_v40, 0.0 }
 0x23e   : > { %v7918_v5 = vadd.f32 %v5506_v55, %v7906_v21  ;;  %v5260_v45 = vmul.f32 0.2, %v6091_v40  ;;  %v5678_v13 = vmul.f32 %v5385_v18, %v5385_v18  ;;  %v5387_v33 = vsel %vm5131_vm7, %v6090_v44, %v5259_v8 }
 0x23f   : > { %v5386_v56 = vsel %vm5130_vm8, %v6059_v22, %v5258_v7  ;;  %v6060_v0 = vadd.f32 %v1425_v10, %v7881_v50  ;;  %v1432_v28 = vpop.f32.mrb[6].mxu0  ;;  %v2632_v43 = vpop.f32.mrb[6].mxu1  ;;  %v5680_v34 = vmul.f32 %v5387_v33, %v5387_v33  ;;  %v6092_v24 = vadd.f32 %v2625_v52, %v7883_v14 }
 0x240   : > { %9267 = vst [vmem:[#allocation16_spill] sm:$0xff] %v7918_v5  ;;  %v5514_v9 = vadd.f32 %v5386_v56, %v5385_v18  ;;  %v5679_v6 = vmul.f32 %v5386_v56, %v5386_v56  ;;  %v5388_v57 = vsel %vm5132_vm9, %v6091_v40, %v5260_v45  ;;  %v1434_v51 = vpop.f32.mrb[7].mxu0  ;;  %v2634_v41 = vpop.f32.mrb[7].mxu1  ;;  %3286 = vmatmul.mubr.f32.gmra.mrb[48].mxu0 %v7153_v47 }
 0x241   : > { %v5681_v55 = vmul.f32 %v5388_v57, %v5388_v57  ;;  %vm5137_vm10 = vcmp.gt.f32.partialorder %v6060_v0, 0.0  ;;  %v5265_v23 = vmul.f32 0.2, %v6060_v0  ;;  %4486 = vmatmul.mubr.f32.gmra.mrb[48].mxu1 %v7153_v47  ;;  %3291 = vmatprep.mubr.f32.mxu0 %v9266_v17  ;;  %v6061_v10 = vadd.f32 %v1427_v61, %v7887_v54 }
 0x242   : > { %v5807_v44 = vadd.f32 %v5679_v6, %v5678_v13  ;;  %v5515_v22 = vadd.f32 %v5514_v9, %v5387_v33  ;;  %v6093_v8 = vadd.f32 %v2627_v48, %v7889_v58  ;;  %4491 = vmatprep.mubr.f32.mxu1 %v9266_v17  ;;  %vm5139_vm11 = vcmp.gt.f32.partialorder %v6092_v24, 0.0 }
 0x243   : > { %v5393_v40 = vsel %vm5137_vm10, %v6060_v0, %v5265_v23  ;;  %v5267_v7 = vmul.f32 0.2, %v6092_v24  ;;  %v6062_v18 = vadd.f32 %v1432_v28, %v7881_v50  ;;  %v1439_v45 = vpop.f32.mrb[8].mxu0  ;;  %v2639_v56 = vpop.f32.mrb[8].mxu1  ;;  %vm5138_vm12 = vcmp.gt.f32.partialorder %v6061_v10, 0.0 }
 0x244   : > { %v7929_v52 = vadd.f32 %v5515_v22, %v5388_v57  ;;  %v5808_v47 = vadd.f32 %v5807_v44, %v5680_v34  ;;  %v5686_v5 = vmul.f32 %v5393_v40, %v5393_v40  ;;  %v1441_v6 = vpop.f32.mrb[9].mxu0  ;;  %v7931_v9 = vpop.f32.mrb[9].mxu1  ;;  %3294 = vmatmul.mubr.f32.gmra.mrb[50].mxu0 %v7172_v62  ;;  %v5266_v61 = vmul.f32 0.2, %v6061_v10 }
 0x245   : > { %v5395_v48 = vsel %vm5139_vm11, %v6092_v24, %v5267_v7  ;;  %vm5140_vm13 = vcmp.gt.f32.partialorder %v6093_v8, 0.0  ;;  %v5268_v13 = vmul.f32 0.2, %v6093_v8  ;;  %4494 = vmatmul.mubr.f32.gmra.mrb[50].mxu1 %v7172_v62  ;;  %3299 = vmatprep.mubr.f32.mxu0 %v9266_v17  ;;  %vm5145_vm14 = vcmp.gt.f32.partialorder %v6062_v18, 0.0 }
 0x246   : > { %9268 = vst [vmem:[#allocation17_spill] sm:$0xff] %v7929_v52  ;;  %v7936_v33 = vadd.f32 %v5808_v47, %v5681_v55  ;;  %v5688_v57 = vmul.f32 %v5395_v48, %v5395_v48  ;;  %v5273_v34 = vmul.f32 0.2, %v6062_v18  ;;  %4499 = vmatprep.mubr.f32.mxu1 %v9266_v17  ;;  %v5394_v0 = vsel %vm5138_vm12, %v6061_v10, %v5266_v61 }
 0x247   : > { %v5396_v28 = vsel %vm5140_vm13, %v6093_v8, %v5268_v13  ;;  %v6094_v23 = vadd.f32 %v2632_v43, %v7883_v14  ;;  %v6063_v24 = vadd.f32 %v1434_v51, %v7887_v54  ;;  %v7941_v44 = vpop.f32.mrb[10].mxu0  ;;  %v7943_v22 = vpop.f32.mrb[10].mxu1  ;;  %v5523_v62 = vadd.f32 %v5394_v0, %v5393_v40 }
 0x248   : > { %9269 = vst [vmem:[#allocation19_spill] sm:$0xff] %v7936_v33  ;;  %v5687_v7 = vmul.f32 %v5394_v0, %v5394_v0  ;;  %v5689_v52 = vmul.f32 %v5396_v28, %v5396_v28  ;;  %v5401_v55 = vsel %vm5145_vm14, %v6062_v18, %v5273_v34  ;;  %v7945_v47 = vpop.f32.mrb[11].mxu0  ;;  %v7947_v33 = vpop.f32.mrb[11].mxu1  ;;  %3302 = vmatmul.mubr.f32.gmra.mrb[52].mxu0 %v7191_v30 }
 0x249   : > { %v5694_v10 = vmul.f32 %v5401_v55, %v5401_v55  ;;  %vm5147_vm15 = vcmp.gt.f32.partialorder %v6094_v23, 0.0  ;;  %v5275_v8 = vmul.f32 0.2, %v6094_v23  ;;  %vm5146_vm0 = vcmp.gt.f32.partialorder %v6063_v24, 0.0  ;;  %4502 = vmatmul.mubr.f32.gmra.mrb[52].mxu1 %v7191_v30  ;;  %3307 = vmatprep.mubr.f32.mxu0 %v9266_v17 }
 0x24a   : > { %v5816_v51 = vadd.f32 %v5687_v7, %v5686_v5  ;;  %v5524_v43 = vadd.f32 %v5523_v62, %v5395_v48  ;;  %v5274_v40 = vmul.f32 0.2, %v6063_v24  ;;  %v6095_v61 = vadd.f32 %v2634_v41, %v7889_v58  ;;  %4507 = vmatprep.mubr.f32.mxu1 %v9266_v17 }
 0x24b   : > { %v5403_v18 = vsel %vm5147_vm15, %v6094_v23, %v5275_v8  ;;  %v6064_v13 = vadd.f32 %v1439_v45, %v7881_v50  ;;  %v6096_v34 = vadd.f32 %v2639_v56, %v7883_v14  ;;  %v6065_v0 = vadd.f32 %v1441_v6, %v7887_v54  ;;  %v7957_v35 = vpop.f32.mrb[12].mxu0  ;;  %v7959_v31 = vpop.f32.mrb[12].mxu1 }
 0x24c   : > { %v7961_v30 = vadd.f32 %v5524_v43, %v5396_v28  ;;  %v5817_v5 = vadd.f32 %v5816_v51, %v5688_v57  ;;  %v5696_v48 = vmul.f32 %v5403_v18, %v5403_v18  ;;  %v5402_v62 = vsel %vm5146_vm0, %v6063_v24, %v5274_v40  ;;  %v7964_v41 = vpop.f32.mrb[13].mxu0  ;;  %v7966_v7 = vpop.f32.mrb[13].mxu1  ;;  %3310 = vmatmul.mubr.f32.gmra.mrb[54].mxu0 %v7197_v37 }
 0x24d   : > { %v5532_v45 = vadd.f32 %v5402_v62, %v5401_v55  ;;  %v5695_v56 = vmul.f32 %v5402_v62, %v5402_v62  ;;  %vm5148_vm1 = vcmp.gt.f32.partialorder %v6095_v61, 0.0  ;;  %v5276_v6 = vmul.f32 0.2, %v6095_v61  ;;  %4510 = vmatmul.mubr.f32.gmra.mrb[54].mxu1 %v7197_v37  ;;  %3315 = vmatprep.mubr.f32.mxu0 %v9266_v17 }
 0x24e   : > { %9270 = vst [vmem:[#allocation22_spill] sm:$0xff] %v7961_v30  ;;  %v7971_v28 = vadd.f32 %v5817_v5, %v5689_v52  ;;  %vm5153_vm2 = vcmp.gt.f32.partialorder %v6064_v13, 0.0  ;;  %v5281_v57 = vmul.f32 0.2, %v6064_v13  ;;  %vm5155_vm3 = vcmp.gt.f32.partialorder %v6096_v34, 0.0  ;;  %4515 = vmatprep.mubr.f32.mxu1 %v9266_v17 }
 0x24f   : > { %v5825_v23 = vadd.f32 %v5695_v56, %v5694_v10  ;;  %v5404_v24 = vsel %vm5148_vm1, %v6095_v61, %v5276_v6  ;;  %v5533_v8 = vadd.f32 %v5532_v45, %v5403_v18  ;;  %v5283_v51 = vmul.f32 0.2, %v6096_v34  ;;  %v7974_v43 = vpop.f32.mrb[14].mxu0  ;;  %v7976_v55 = vpop.f32.mrb[14].mxu1 }
 0x250   : > { %9271 = vst [vmem:[#allocation24_spill] sm:$0xff] %v7971_v28  ;;  %v5697_v40 = vmul.f32 %v5404_v24, %v5404_v24  ;;  %v5409_v62 = vsel %vm5153_vm2, %v6064_v13, %v5281_v57  ;;  %vm5154_vm4 = vcmp.gt.f32.partialorder %v6065_v0, 0.0  ;;  %v5282_v37 = vmul.f32 0.2, %v6065_v0  ;;  %v7978_v30 = vpop.f32.mrb[15].mxu0  ;;  %v7980_v52 = vpop.f32.mrb[15].mxu1  ;;  %3318 = vmatmul.mubr.f32.gmra.mrb[56].mxu0 %v7215_v27 }
 0x251   : > { %v7983_v5 = vadd.f32 %v5533_v8, %v5404_v24  ;;  %v5826_v10 = vadd.f32 %v5825_v23, %v5696_v48  ;;  %v5702_v61 = vmul.f32 %v5409_v62, %v5409_v62  ;;  %v5411_v18 = vsel %vm5155_vm3, %v6096_v34, %v5283_v51  ;;  %4518 = vmatmul.mubr.f32.gmra.mrb[56].mxu1 %v7215_v27 }
 0x252   : > { %v5704_v45 = vmul.f32 %v5411_v18, %v5411_v18  ;;  %v5410_v56 = vsel %vm5154_vm4, %v6065_v0, %v5282_v37  ;;  %v6097_v13 = vadd.f32 %v7931_v9, %v7889_v58  ;;  %v6066_v6 = vadd.f32 %v7941_v44, %v7881_v50  ;;  %3323 = vmatprep.mubr.f32.mxu0 %v9266_v17 }
 0x253   : > { %9272 = vst [vmem:[#allocation26_spill] sm:$0xff] %v7983_v5  ;;  %v7992_v57 = vadd.f32 %v5826_v10, %v5697_v40  ;;  %v5541_v24 = vadd.f32 %v5410_v56, %v5409_v62  ;;  %v5703_v8 = vmul.f32 %v5410_v56, %v5410_v56  ;;  %v6098_v48 = vadd.f32 %v7943_v22, %v7883_v14  ;;  %v7996_v34 = vpop.f32.mrb[16].mxu0  ;;  %v7998_v27 = vpop.f32.mrb[16].mxu1 }
 0x254   : > { %4523 = vmatprep.mubr.f32.mxu1 %v9266_v17  ;;  %vm5156_vm5 = vcmp.gt.f32.partialorder %v6097_v13, 0.0  ;;  %v5284_v9 = vmul.f32 0.2, %v6097_v13  ;;  %vm5161_vm6 = vcmp.gt.f32.partialorder %v6066_v6, 0.0  ;;  %v5289_v0 = vmul.f32 0.2, %v6066_v6  ;;  %3326 = vmatmul.mubr.f32.gmra.mrb[58].mxu0 %v7244_v63 }
 0x255   : > { %9273 = vst [vmem:[#allocation28_spill] sm:$0xff] %v7992_v57  ;;  %v5834_v44 = vadd.f32 %v5703_v8, %v5702_v61  ;;  %v5542_v23 = vadd.f32 %v5541_v24, %v5411_v18  ;;  %vm5163_vm7 = vcmp.gt.f32.partialorder %v6098_v48, 0.0  ;;  %v5291_v51 = vmul.f32 0.2, %v6098_v48  ;;  %v8002_v40 = vpop.f32.mrb[17].mxu0  ;;  %v8004_v62 = vpop.f32.mrb[17].mxu1  ;;  %4526 = vmatmul.mubr.f32.gmra.mrb[58].mxu1 %v7244_v63  ;;  %3331 = vmatprep.mubr.f32.mxu0 %v9266_v17 }
 0x256   : > { %v5412_v22 = vsel %vm5156_vm5, %v6097_v13, %v5284_v9  ;;  %v5417_v37 = vsel %vm5161_vm6, %v6066_v6, %v5289_v0  ;;  %v6067_v10 = vadd.f32 %v7945_v47, %v7887_v54  ;;  %v6099_v56 = vadd.f32 %v7947_v33, %v7889_v58  ;;  %4531 = vmatprep.mubr.f32.mxu1 %v9266_v17 }
 0x257   : > { %v8013_v61 = vadd.f32 %v5542_v23, %v5412_v22  ;;  %v5705_v18 = vmul.f32 %v5412_v22, %v5412_v22  ;;  %v5835_v24 = vadd.f32 %v5834_v44, %v5704_v45  ;;  %v5710_v8 = vmul.f32 %v5417_v37, %v5417_v37  ;;  %v8015_v57 = vpop.f32.mrb[18].mxu0  ;;  %v8017_v63 = vpop.f32.mrb[18].mxu1 }
 0x258   : > { %v5419_v13 = vsel %vm5163_vm7, %v6098_v48, %v5291_v51  ;;  %vm5162_vm8 = vcmp.gt.f32.partialorder %v6067_v10, 0.0  ;;  %v5290_v6 = vmul.f32 0.2, %v6067_v10  ;;  %vm5164_vm9 = vcmp.gt.f32.partialorder %v6099_v56, 0.0  ;;  %v8020_v47 = vpop.f32.mrb[19].mxu0  ;;  %v8022_v9 = vpop.f32.mrb[19].mxu1  ;;  %3334 = vmatmul.mubr.f32.gmra.mrb[60].mxu0 %v7250_v29 }
 0x259   : > { %9274 = vst [vmem:[#allocation30_spill] sm:$0xff] %v8013_v61  ;;  %v8025_v33 = vadd.f32 %v5835_v24, %v5705_v18  ;;  %v5712_v0 = vmul.f32 %v5419_v13, %v5419_v13  ;;  %v5292_v45 = vmul.f32 0.2, %v6099_v56  ;;  %v6068_v44 = vadd.f32 %v7957_v35, %v7881_v50  ;;  %4534 = vmatmul.mubr.f32.gmra.mrb[60].mxu1 %v7250_v29 }
 0x25a   : > { %3339 = vmatprep.mubr.f32.mxu0 %v9266_v17  ;;  %v5418_v48 = vsel %vm5162_vm8, %v6067_v10, %v5290_v6  ;;  %v6100_v23 = vadd.f32 %v7959_v31, %v7883_v14  ;;  %v6069_v51 = vadd.f32 %v7964_v41, %v7887_v54  ;;  %v6101_v22 = vadd.f32 %v7966_v7, %v7889_v58 }
 0x25b   : > { %9275 = vst [vmem:[#allocation32_spill] sm:$0xff] %v8025_v33  ;;  %4539 = vmatprep.mubr.f32.mxu1 %v9266_v17  ;;  %v5550_v18 = vadd.f32 %v5418_v48, %v5417_v37  ;;  %v5711_v24 = vmul.f32 %v5418_v48, %v5418_v48  ;;  %v5420_v35 = vsel %vm5164_vm9, %v6099_v56, %v5292_v45  ;;  %vm5169_vm10 = vcmp.gt.f32.partialorder %v6068_v44, 0.0  ;;  %v8039_v29 = vpop.f32.mrb[20].mxu0  ;;  %v8041_v33 = vpop.f32.mrb[20].mxu1 }
 0x25c   : > { %v5713_v10 = vmul.f32 %v5420_v35, %v5420_v35  ;;  %v5297_v6 = vmul.f32 0.2, %v6068_v44  ;;  %vm5171_vm11 = vcmp.gt.f32.partialorder %v6100_v23, 0.0  ;;  %v5299_v31 = vmul.f32 0.2, %v6100_v23  ;;  %v8043_v28 = vpop.f32.mrb[21].mxu0  ;;  %3342 = vmatmul.mubr.f32.gmra.mrb[62].mxu0 %v7275_v39 }
 0x25d   : > { %v5843_v41 = vadd.f32 %v5711_v24, %v5710_v8  ;;  %v5551_v7 = vadd.f32 %v5550_v18, %v5419_v13  ;;  %vm5170_vm12 = vcmp.gt.f32.partialorder %v6069_v51, 0.0  ;;  %v5298_v37 = vmul.f32 0.2, %v6069_v51  ;;  %v8046_v48 = vpop.f32.mrb[21].mxu1  ;;  %4542 = vmatmul.mubr.f32.gmra.mrb[62].mxu1 %v7275_v39  ;;  %3414 = vmatprep.mubr.f32.mxu0 %v9266_v17 }
 0x25e   : > { %v5425_v56 = vsel %vm5169_vm10, %v6068_v44, %v5297_v6  ;;  %v5427_v45 = vsel %vm5171_vm11, %v6100_v23, %v5299_v31  ;;  %vm5172_vm13 = vcmp.gt.f32.partialorder %v6101_v22, 0.0  ;;  %v5300_v61 = vmul.f32 0.2, %v6101_v22  ;;  %4614 = vmatprep.mubr.f32.mxu1 %v9266_v17 }
 0x25f   : > { %v8052_v5 = vadd.f32 %v5551_v7, %v5420_v35  ;;  %v5844_v12 = vadd.f32 %v5843_v41, %v5712_v0  ;;  %v5718_v8 = vmul.f32 %v5425_v56, %v5425_v56  ;;  %v5720_v13 = vmul.f32 %v5427_v45, %v5427_v45  ;;  %v8054_v18 = vpop.f32.mrb[22].mxu0  ;;  %v8056_v24 = vpop.f32.mrb[22].mxu1 }
 0x260   : > { %v5426_v39 = vsel %vm5170_vm12, %v6069_v51, %v5298_v37  ;;  %v5428_v11 = vsel %vm5172_vm13, %v6101_v22, %v5300_v61  ;;  %v6070_v44 = vadd.f32 %v7974_v43, %v7881_v50  ;;  %v6102_v23 = vadd.f32 %v7976_v55, %v7883_v14  ;;  %v8063_v6 = vpop.f32.mrb[23].mxu0  ;;  %v8065_v35 = vpop.f32.mrb[23].mxu1  ;;  %3418 = vmatmul.mubr.f32.vlgmr.msra.gmra.mrb[32].mxu0 %v7040_v42 }
 0x261   : > { %v8068_v0 = vadd.f32 %v5844_v12, %v5713_v10  ;;  %v5559_v31 = vadd.f32 %v5426_v39, %v5425_v56  ;;  %v5719_v41 = vmul.f32 %v5426_v39, %v5426_v39  ;;  %v5721_v7 = vmul.f32 %v5428_v11, %v5428_v11  ;;  %4618 = vmatmul.mubr.f32.vlgmr.msra.gmra.mrb[32].mxu1 %v7040_v42 }
 0x262   : > { %v9277_v51 = vand.u32 4294901760, %v7686_v2  ;;  %vm5177_vm14 = vcmp.gt.f32.partialorder %v6070_v44, 0.0  ;;  %v5305_v61 = vmul.f32 0.2, %v6070_v44  ;;  %vm5179_vm15 = vcmp.gt.f32.partialorder %v6102_v23, 0.0  ;;  %3423 = vmatprep.mubr.f32.mxu0 %v9266_v17  ;;  %4623 = vmatprep.mubr.f32.mxu1 %v9266_v17 }
 0x263   : > { %9276 = vst [vmem:[#allocation35_spill] sm:$0xff] %v8068_v0  ;;  %v5307_v43 = vmul.f32 0.2, %v6102_v23  ;;  %v5852_v55 = vadd.f32 %v5719_v41, %v5718_v8  ;;  %v5560_v22 = vadd.f32 %v5559_v31, %v5427_v45  ;;  %v6071_v12 = vadd.f32 %v7978_v30, %v7887_v54  ;;  %v8078_v37 = vpop.f32.mrb[24].mxu0  ;;  %v8080_v2 = vpop.f32.mrb[24].mxu1 }
 0x264   : > { %3566 = vmatpush1.msra.mxu0 %v9277_v51  ;;  %v6103_v10 = vadd.f32 %v7980_v52, %v7889_v58  ;;  %v5433_v56 = vsel %vm5177_vm14, %v6070_v44, %v5305_v61  ;;  %v6072_v42 = vadd.f32 %v7996_v34, %v7881_v50  ;;  %v6104_v45 = vadd.f32 %v7998_v27, %v7883_v14  ;;  %v8087_v8 = vpop.f32.mrb[25].mxu0  ;;  %v8089_v30 = vpop.f32.mrb[25].mxu1 }
 0x265   : > { %v5435_v39 = vsel %vm5179_vm15, %v6102_v23, %v5307_v43  ;;  %3427 = vmatmul.mubr.f32.gmra.mrb[34].mxu0 %v7050_v46  ;;  %v8092_v52 = vadd.f32 %v5560_v22, %v5428_v11  ;;  %v5853_v31 = vadd.f32 %v5852_v55, %v5720_v13  ;;  %v5726_v41 = vmul.f32 %v5433_v56, %v5433_v56 }
 0x266   : > { %v5728_v51 = vmul.f32 %v5435_v39, %v5435_v39  ;;  %v9279_v44 = vand.u32 4294901760, %v7692_v1  ;;  %vm5178_vm0 = vcmp.gt.f32.partialorder %v6071_v12, 0.0  ;;  %v5306_v23 = vmul.f32 0.2, %v6071_v12  ;;  %4627 = vmatmul.mubr.f32.gmra.mrb[34].mxu1 %v7050_v46  ;;  %3432 = vmatprep.mubr.f32.mxu0 %v9266_v17 }
 0x267   : > { %9278 = vst [vmem:[#allocation40_spill] sm:$0xff] %v8092_v52  ;;  %vm5180_vm1 = vcmp.gt.f32.partialorder %v6103_v10, 0.0  ;;  %v5308_v34 = vmul.f32 0.2, %v6103_v10  ;;  %v8098_v27 = vadd.f32 %v5853_v31, %v5721_v7  ;;  %vm5185_vm2 = vcmp.gt.f32.partialorder %v6072_v42, 0.0  ;;  %v8100_v11 = vpop.f32.mrb[26].mxu0  ;;  %4632 = vmatprep.mubr.f32.mxu1 %v9266_v17  ;;  %3743 = vmatprep.subr.mxu0 %v7532_v15 }
 0x268   : > { %4766 = vmatpush1.msra.mxu1 %v9279_v44  ;;  %v5313_v61 = vmul.f32 0.2, %v6072_v42  ;;  %vm5187_vm3 = vcmp.gt.f32.partialorder %v6104_v45, 0.0  ;;  %v8102_v13 = vpop.f32.mrb[26].mxu1  ;;  %v5434_v1 = vsel %vm5178_vm0, %v6071_v12, %v5306_v23  ;;  %v5315_v55 = vmul.f32 0.2, %v6104_v45 }
 0x269   : > { %9280 = vst [vmem:[#allocation41_spill] sm:$0xff] %v8098_v27  ;;  %v5436_v43 = vsel %vm5180_vm1, %v6103_v10, %v5308_v34  ;;  %v6073_v46 = vadd.f32 %v8002_v40, %v7887_v54  ;;  %v8108_v22 = vpop.f32.mrb[27].mxu0  ;;  %v8110_v7 = vpop.f32.mrb[27].mxu1  ;;  %3436 = vmatmul.mubr.f32.gmra.mrb[36].mxu0 %v7056_v49  ;;  %4943 = vmatprep.subr.mxu1 %v7534_v16 }
 0x26a   : > { %v5568_v31 = vadd.f32 %v5434_v1, %v5433_v56  ;;  %v5727_v44 = vmul.f32 %v5434_v1, %v5434_v1  ;;  %v5729_v27 = vmul.f32 %v5436_v43, %v5436_v43  ;;  %v5441_v0 = vsel %vm5185_vm2, %v6072_v42, %v5313_v61  ;;  %3441 = vmatprep.mubr.f32.mxu0 %v9266_v17 }
 0x26b   : > { %v5734_v15 = vmul.f32 %v5441_v0, %v5441_v0  ;;  %v5443_v12 = vsel %vm5187_vm3, %v6104_v45, %v5315_v55  ;;  %vm5186_vm4 = vcmp.gt.f32.partialorder %v6073_v46, 0.0  ;;  %v5314_v40 = vmul.f32 0.2, %v6073_v46  ;;  %4636 = vmatmul.mubr.f32.gmra.mrb[36].mxu1 %v7056_v49  ;;  %v8120_v56 = vpop.f32.mrb[28].mxu0  ;;  %v8122_v1 = vpop.f32.mrb[28].mxu1 }
 0x26c   : > { %v5861_v10 = vadd.f32 %v5727_v44, %v5726_v41  ;;  %v5569_v23 = vadd.f32 %v5568_v31, %v5435_v39  ;;  %v5736_v34 = vmul.f32 %v5443_v12, %v5443_v12  ;;  %v6105_v16 = vadd.f32 %v8004_v62, %v7889_v58  ;;  %4641 = vmatprep.mubr.f32.mxu1 %v9266_v17  ;;  %v8131_v39 = vpop.f32.mrb[29].mxu0  ;;  %v8133_v41 = vpop.f32.mrb[29].mxu1 }
 0x26d   : > { %v5442_v42 = vsel %vm5186_vm4, %v6073_v46, %v5314_v40  ;;  %v6074_v45 = vadd.f32 %v8015_v57, %v7881_v50  ;;  %v6106_v61 = vadd.f32 %v8017_v63, %v7883_v14  ;;  %v6075_v49 = vadd.f32 %v8020_v47, %v7887_v54  ;;  %3445 = vmatmul.mubr.f32.gmra.mrb[38].mxu0 %v7077_v60 }
 0x26e   : > { %v8136_v62 = vadd.f32 %v5569_v23, %v5436_v43  ;;  %v5862_v55 = vadd.f32 %v5861_v10, %v5728_v51  ;;  %v5577_v31 = vadd.f32 %v5442_v42, %v5441_v0  ;;  %v5735_v46 = vmul.f32 %v5442_v42, %v5442_v42  ;;  %3450 = vmatprep.mubr.f32.mxu0 %v9266_v17 }
 0x26f   : > { %vm5188_vm5 = vcmp.gt.f32.partialorder %v6105_v16, 0.0  ;;  %v5316_v57 = vmul.f32 0.2, %v6105_v16  ;;  %vm5193_vm6 = vcmp.gt.f32.partialorder %v6074_v45, 0.0  ;;  %v5321_v63 = vmul.f32 0.2, %v6074_v45  ;;  %4645 = vmatmul.mubr.f32.gmra.mrb[38].mxu1 %v7077_v60 }
 0x270   : > { %v8140_v47 = vadd.f32 %v5862_v55, %v5729_v27  ;;  %v5870_v44 = vadd.f32 %v5735_v46, %v5734_v15  ;;  %v5578_v40 = vadd.f32 %v5577_v31, %v5443_v12  ;;  %vm5195_vm7 = vcmp.gt.f32.partialorder %v6106_v61, 0.0  ;;  %v8142_v52 = vpop.f32.mrb[30].mxu0  ;;  %v8144_v43 = vpop.f32.mrb[30].mxu1  ;;  %4650 = vmatprep.mubr.f32.mxu1 %v9266_v17 }
 0x271   : > { %v5444_v0 = vsel %vm5188_vm5, %v6105_v16, %v5316_v57  ;;  %v5449_v51 = vsel %vm5193_vm6, %v6074_v45, %v5321_v63  ;;  %v5323_v10 = vmul.f32 0.2, %v6106_v61  ;;  %vm5194_vm8 = vcmp.gt.f32.partialorder %v6075_v49, 0.0  ;;  %v8147_v23 = vpop.f32.mrb[31].mxu0  ;;  %v8149_v42 = vpop.f32.mrb[31].mxu1  ;;  %3454 = vmatmul.mubr.f32.gmra.mrb[40].mxu0 %v7099_v4 }
 0x272   : > { %9281 = vst [vmem:[#allocation42_spill] sm:$0xff] %v8140_v47  ;;  %v8152_v60 = vadd.f32 %v5578_v40, %v5444_v0  ;;  %v5737_v27 = vmul.f32 %v5444_v0, %v5444_v0  ;;  %v5871_v15 = vadd.f32 %v5870_v44, %v5736_v34  ;;  %v5742_v12 = vmul.f32 %v5449_v51, %v5449_v51 }
 0x273   : > { %3459 = vmatprep.mubr.f32.mxu0 %v9266_v17  ;;  %v5451_v55 = vsel %vm5195_vm7, %v6106_v61, %v5323_v10  ;;  %v5322_v31 = vmul.f32 0.2, %v6075_v49  ;;  %v6107_v16 = vadd.f32 %v8022_v9, %v7889_v58  ;;  %v6076_v45 = vadd.f32 %v8039_v29, %v7881_v50  ;;  %4654 = vmatmul.mubr.f32.gmra.mrb[40].mxu1 %v7099_v4 }
 0x274   : > { %v8161_v46 = vadd.f32 %v5871_v15, %v5737_v27  ;;  %v5744_v57 = vmul.f32 %v5451_v55, %v5451_v55  ;;  %v6108_v34 = vadd.f32 %v8041_v33, %v7883_v14  ;;  %v6077_v63 = vadd.f32 %v8043_v28, %v7887_v54  ;;  %4659 = vmatprep.mubr.f32.mxu1 %v9266_v17 }
 0x275   : > { %v5450_v61 = vsel %vm5194_vm8, %v6075_v49, %v5322_v31  ;;  %vm5196_vm9 = vcmp.gt.f32.partialorder %v6107_v16, 0.0  ;;  %v5324_v9 = vmul.f32 0.2, %v6107_v16  ;;  %vm5201_vm10 = vcmp.gt.f32.partialorder %v6076_v45, 0.0  ;;  %3463 = vmatmul.mubr.f32.gmra.mrb[42].mxu0 %v7115_v20 }
 0x276   : > { %9282 = vst [vmem:[#allocation43_spill] sm:$0xff] %v8161_v46  ;;  %v5586_v29 = vadd.f32 %v5450_v61, %v5449_v51  ;;  %v5743_v4 = vmul.f32 %v5450_v61, %v5450_v61  ;;  %v5329_v44 = vmul.f32 0.2, %v6076_v45  ;;  %vm5203_vm11 = vcmp.gt.f32.partialorder %v6108_v34, 0.0  ;;  %3468 = vmatprep.mubr.f32.mxu0 %v9266_v17 }
 0x277   : > { %v5452_v40 = vsel %vm5196_vm9, %v6107_v16, %v5324_v9  ;;  %v5331_v33 = vmul.f32 0.2, %v6108_v34  ;;  %vm5202_vm12 = vcmp.gt.f32.partialorder %v6077_v63, 0.0  ;;  %v5330_v0 = vmul.f32 0.2, %v6077_v63  ;;  %4663 = vmatmul.mubr.f32.gmra.mrb[42].mxu1 %v7115_v20 }
 0x278   : > { %v5879_v28 = vadd.f32 %v5743_v4, %v5742_v12  ;;  %v5587_v10 = vadd.f32 %v5586_v29, %v5451_v55  ;;  %v5745_v49 = vmul.f32 %v5452_v40, %v5452_v40  ;;  %v5457_v27 = vsel %vm5201_vm10, %v6076_v45, %v5329_v44  ;;  %4668 = vmatprep.mubr.f32.mxu1 %v9266_v17 }
 0x279   : > { %v5750_v15 = vmul.f32 %v5457_v27, %v5457_v27  ;;  %v5459_v31 = vsel %vm5203_vm11, %v6108_v34, %v5331_v33  ;;  %v5458_v51 = vsel %vm5202_vm12, %v6077_v63, %v5330_v0  ;;  %v6109_v61 = vadd.f32 %v8046_v48, %v7889_v58  ;;  %3472 = vmatmul.mubr.f32.gmra.mrb[44].mxu0 %v7134_v32 }
 0x27a   : > { %v8176_v16 = vadd.f32 %v5587_v10, %v5452_v40  ;;  %v5880_v9 = vadd.f32 %v5879_v28, %v5744_v57  ;;  %v5752_v46 = vmul.f32 %v5459_v31, %v5459_v31  ;;  %v5595_v47 = vadd.f32 %v5458_v51, %v5457_v27  ;;  %3477 = vmatprep.mubr.f32.mxu0 %v9266_v17 }
 0x27b   : > { %v5751_v20 = vmul.f32 %v5458_v51, %v5458_v51  ;;  %vm5204_vm13 = vcmp.gt.f32.partialorder %v6109_v61, 0.0  ;;  %v5332_v12 = vmul.f32 0.2, %v6109_v61  ;;  %v6078_v55 = vadd.f32 %v8054_v18, %v7881_v50  ;;  %4672 = vmatmul.mubr.f32.gmra.mrb[44].mxu1 %v7134_v32 }
 0x27c   : > { %v8182_v45 = vadd.f32 %v5880_v9, %v5745_v49  ;;  %v5596_v48 = vadd.f32 %v5595_v47, %v5459_v31  ;;  %v6110_v34 = vadd.f32 %v8056_v24, %v7883_v14  ;;  %v6079_v57 = vadd.f32 %v8063_v6, %v7887_v54  ;;  %4677 = vmatprep.mubr.f32.mxu1 %v9266_v17 }
 0x27d   : > { %v5888_v63 = vadd.f32 %v5751_v20, %v5750_v15  ;;  %v5460_v29 = vsel %vm5204_vm13, %v6109_v61, %v5332_v12  ;;  %vm5209_vm14 = vcmp.gt.f32.partialorder %v6078_v55, 0.0  ;;  %v5337_v4 = vmul.f32 0.2, %v6078_v55  ;;  %3481 = vmatmul.mubr.f32.gmra.mrb[46].mxu0 %v7143_v38 }
 0x27e   : > { %9283 = vst [vmem:[#allocation44_spill] sm:$0xff] %v8182_v45  ;;  %v8190_v18 = vadd.f32 %v5596_v48, %v5460_v29  ;;  %v5753_v32 = vmul.f32 %v5460_v29, %v5460_v29  ;;  %vm5211_vm15 = vcmp.gt.f32.partialorder %v6110_v34, 0.0  ;;  %v5339_v44 = vmul.f32 0.2, %v6110_v34  ;;  %3486 = vmatprep.mubr.f32.mxu0 %v9266_v17 }
 0x27f   : > { %v5889_v47 = vadd.f32 %v5888_v63, %v5752_v46  ;;  %v5465_v24 = vsel %vm5209_vm14, %v6078_v55, %v5337_v4  ;;  %vm5210_vm0 = vcmp.gt.f32.partialorder %v6079_v57, 0.0  ;;  %v5338_v40 = vmul.f32 0.2, %v6079_v57  ;;  %4681 = vmatmul.mubr.f32.gmra.mrb[46].mxu1 %v7143_v38 }
 0x280   : > { %v5758_v6 = vmul.f32 %v5465_v24, %v5465_v24  ;;  %v5467_v33 = vsel %vm5211_vm15, %v6110_v34, %v5339_v44  ;;  %v6111_v0 = vadd.f32 %v8065_v35, %v7889_v58  ;;  %v6080_v28 = vadd.f32 %v8078_v37, %v7881_v50  ;;  %4686 = vmatprep.mubr.f32.mxu1 %v9266_v17 }
 0x281   : > { %v8199_v10 = vadd.f32 %v5889_v47, %v5753_v32  ;;  %v5760_v49 = vmul.f32 %v5467_v33, %v5467_v33  ;;  %v5466_v27 = vsel %vm5210_vm0, %v6079_v57, %v5338_v40  ;;  %v6112_v46 = vadd.f32 %v8080_v2, %v7883_v14  ;;  %3490 = vmatmul.mubr.f32.gmra.mrb[48].mxu0 %v7169_v59 }
 0x282   : > { %v5604_v38 = vadd.f32 %v5466_v27, %v5465_v24  ;;  %v5759_v15 = vmul.f32 %v5466_v27, %v5466_v27  ;;  %vm5212_vm1 = vcmp.gt.f32.partialorder %v6111_v0, 0.0  ;;  %v5340_v31 = vmul.f32 0.2, %v6111_v0  ;;  %3495 = vmatprep.mubr.f32.mxu0 %v9266_v17 }
 0x283   : > { %9284 = vst [vmem:[#allocation45_spill] sm:$0xff] %v8199_v10  ;;  %vm5217_vm2 = vcmp.gt.f32.partialorder %v6080_v28, 0.0  ;;  %v5345_v35 = vmul.f32 0.2, %v6080_v28  ;;  %vm5219_vm3 = vcmp.gt.f32.partialorder %v6112_v46, 0.0  ;;  %4690 = vmatmul.mubr.f32.gmra.mrb[48].mxu1 %v7169_v59  ;;  %v6081_v2 = vadd.f32 %v8087_v8, %v7887_v54 }
 0x284   : > { %v5347_v37 = vmul.f32 0.2, %v6112_v46  ;;  %v5897_v51 = vadd.f32 %v5759_v15, %v5758_v6  ;;  %v5468_v61 = vsel %vm5212_vm1, %v6111_v0, %v5340_v31  ;;  %v5605_v9 = vadd.f32 %v5604_v38, %v5467_v33  ;;  %4695 = vmatprep.mubr.f32.mxu1 %v9266_v17 }
 0x285   : > { %v5761_v20 = vmul.f32 %v5468_v61, %v5468_v61  ;;  %v5473_v12 = vsel %vm5217_vm2, %v6080_v28, %v5345_v35  ;;  %v6113_v48 = vadd.f32 %v8089_v30, %v7889_v58  ;;  %3499 = vmatmul.mubr.f32.gmra.mrb[50].mxu0 %v7188_v26  ;;  %vm5218_vm4 = vcmp.gt.f32.partialorder %v6081_v2, 0.0 }
 0x286   : > { %v5475_v55 = vsel %vm5219_vm3, %v6112_v46, %v5347_v37  ;;  %v8212_v34 = vadd.f32 %v5605_v9, %v5468_v61  ;;  %v5898_v57 = vadd.f32 %v5897_v51, %v5760_v49  ;;  %v5766_v59 = vmul.f32 %v5473_v12, %v5473_v12  ;;  %3504 = vmatprep.mubr.f32.mxu0 %v9266_v17 }
 0x287   : > { %v5768_v63 = vmul.f32 %v5475_v55, %v5475_v55  ;;  %v5346_v29 = vmul.f32 0.2, %v6081_v2  ;;  %vm5220_vm5 = vcmp.gt.f32.partialorder %v6113_v48, 0.0  ;;  %v5348_v8 = vmul.f32 0.2, %v6113_v48  ;;  %4699 = vmatmul.mubr.f32.gmra.mrb[50].mxu1 %v7188_v26 }
 0x288   : > { %v8216_v4 = vadd.f32 %v5898_v57, %v5761_v20  ;;  %v6082_v30 = vadd.f32 %v8100_v11, %v7881_v50  ;;  %v6114_v32 = vadd.f32 %v8102_v13, %v7883_v14  ;;  %v6083_v44 = vadd.f32 %v8108_v22, %v7887_v54  ;;  %4704 = vmatprep.mubr.f32.mxu1 %v9266_v17  ;;  %v9288_v57 = vld [vmem:[#allocation31_spill] sm:$0xff] }
 0x289   : > { %v5474_v47 = vsel %vm5218_vm4, %v6081_v2, %v5346_v29  ;;  %v5476_v24 = vsel %vm5220_vm5, %v6113_v48, %v5348_v8  ;;  %v6115_v40 = vadd.f32 %v8110_v7, %v7889_v58  ;;  %v6084_v26 = vadd.f32 %v8120_v56, %v7881_v50  ;;  %3508 = vmatmul.mubr.f32.gmra.mrb[52].mxu0 %v7208_v53 }
 0x28a   : > { %9285 = vst [vmem:[#allocation46_spill] sm:$0xff] %v8216_v4  ;;  %v5613_v6 = vadd.f32 %v5474_v47, %v5473_v12  ;;  %v5767_v11 = vmul.f32 %v5474_v47, %v5474_v47  ;;  %v5769_v33 = vmul.f32 %v5476_v24, %v5476_v24  ;;  %vm5225_vm6 = vcmp.gt.f32.partialorder %v6082_v30, 0.0  ;;  %3513 = vmatprep.mubr.f32.mxu0 %v9266_v17 }
 0x28b   : > { %v5353_v13 = vmul.f32 0.2, %v6082_v30  ;;  %vm5227_vm7 = vcmp.gt.f32.partialorder %v6114_v32, 0.0  ;;  %v5355_v22 = vmul.f32 0.2, %v6114_v32  ;;  %vm5226_vm8 = vcmp.gt.f32.partialorder %v6083_v44, 0.0  ;;  %4708 = vmatmul.mubr.f32.gmra.mrb[52].mxu1 %v7208_v53 }
 0x28c   : > { %v5906_v0 = vadd.f32 %v5767_v11, %v5766_v59  ;;  %v5614_v28 = vadd.f32 %v5613_v6, %v5475_v55  ;;  %v5354_v7 = vmul.f32 0.2, %v6083_v44  ;;  %vm5228_vm9 = vcmp.gt.f32.partialorder %v6115_v40, 0.0  ;;  %4713 = vmatprep.mubr.f32.mxu1 %v9266_v17 }
 0x28d   : > { %v5481_v56 = vsel %vm5225_vm6, %v6082_v30, %v5353_v13  ;;  %v5483_v49 = vsel %vm5227_vm7, %v6114_v32, %v5355_v22  ;;  %v5356_v27 = vmul.f32 0.2, %v6115_v40  ;;  %vm5233_vm10 = vcmp.gt.f32.partialorder %v6084_v26, 0.0  ;;  %3517 = vmatmul.mubr.f32.gmra.mrb[54].mxu0 %v7226_v36 }
 0x28e   : > { %v8234_v46 = vadd.f32 %v5614_v28, %v5476_v24  ;;  %v5907_v38 = vadd.f32 %v5906_v0, %v5768_v63  ;;  %v5774_v15 = vmul.f32 %v5481_v56, %v5481_v56  ;;  %v5776_v31 = vmul.f32 %v5483_v49, %v5483_v49  ;;  %3522 = vmatprep.mubr.f32.mxu0 %v9266_v17 }
 0x28f   : > { %v5482_v53 = vsel %vm5226_vm8, %v6083_v44, %v5354_v7  ;;  %v5484_v35 = vsel %vm5228_vm9, %v6115_v40, %v5356_v27  ;;  %v5361_v37 = vmul.f32 0.2, %v6084_v26  ;;  %v6116_v51 = vadd.f32 %v8122_v1, %v7883_v14  ;;  %4717 = vmatmul.mubr.f32.gmra.mrb[54].mxu1 %v7226_v36  ;;  %v9290_v40 = vld [vmem:[#allocation33_spill] sm:$0xff] }
 0x290   : > { %9286 = vst [vmem:[#allocation47_spill] sm:$0xff] %v8234_v46  ;;  %v8241_v61 = vadd.f32 %v5907_v38, %v5769_v33  ;;  %v5622_v9 = vadd.f32 %v5482_v53, %v5481_v56  ;;  %v5775_v2 = vmul.f32 %v5482_v53, %v5482_v53  ;;  %v5777_v20 = vmul.f32 %v5484_v35, %v5484_v35 }
 0x291   : > { %4722 = vmatprep.mubr.f32.mxu1 %v9266_v17  ;;  %v5489_v12 = vsel %vm5233_vm10, %v6084_v26, %v5361_v37  ;;  %vm5235_vm11 = vcmp.gt.f32.partialorder %v6116_v51, 0.0  ;;  %v5363_v55 = vmul.f32 0.2, %v6116_v51  ;;  %v6085_v48 = vadd.f32 %v8131_v39, %v7887_v54  ;;  %3526 = vmatmul.mubr.f32.gmra.mrb[56].mxu0 %v9288_v57 }
 0x292   : > { %9287 = vst [vmem:[#allocation48_spill] sm:$0xff] %v8241_v61  ;;  %v5915_v59 = vadd.f32 %v5775_v2, %v5774_v15  ;;  %v5623_v1 = vadd.f32 %v5622_v9, %v5483_v49  ;;  %v5782_v63 = vmul.f32 %v5489_v12, %v5489_v12  ;;  %v6117_v36 = vadd.f32 %v8133_v41, %v7889_v58  ;;  %v9292_v49 = vld [vmem:[#allocation36_spill] sm:$0xff] }
 0x293   : > { %3531 = vmatprep.mubr.f32.mxu0 %v9266_v17  ;;  %v5491_v29 = vsel %vm5235_vm11, %v6116_v51, %v5363_v55  ;;  %vm5234_vm12 = vcmp.gt.f32.partialorder %v6085_v48, 0.0  ;;  %v5362_v8 = vmul.f32 0.2, %v6085_v48  ;;  %v6086_v30 = vadd.f32 %v8142_v52, %v7881_v50  ;;  %4726 = vmatmul.mubr.f32.gmra.mrb[56].mxu1 %v9288_v57  ;;  %v9295_v51 = vld [vmem:[#allocation37_spill] sm:$0xff]  ;;  %v9299_v57 = vld [vmem:[#allocation39_spill] sm:$0xff] }
 0x294   : > { %v8254_v32 = vadd.f32 %v5623_v1, %v5484_v35  ;;  %v5916_v39 = vadd.f32 %v5915_v59, %v5776_v31  ;;  %v5784_v44 = vmul.f32 %v5491_v29, %v5491_v29  ;;  %vm5236_vm13 = vcmp.gt.f32.partialorder %v6117_v36, 0.0  ;;  %4731 = vmatprep.mubr.f32.mxu1 %v9266_v17  ;;  %v9300_v59 = vld [vmem:[#allocation8_spill] sm:$0xff]  ;;  %v9301_v1 = vld [vmem:[#allocation9_spill] sm:$0xff] }
 0x295   : > { %v5490_v47 = vsel %vm5234_vm12, %v6085_v48, %v5362_v8  ;;  %v5364_v24 = vmul.f32 0.2, %v6117_v36  ;;  %vm5241_vm14 = vcmp.gt.f32.partialorder %v6086_v30, 0.0  ;;  %v5369_v41 = vmul.f32 0.2, %v6086_v30  ;;  %3535 = vmatmul.mubr.f32.gmra.mrb[58].mxu0 %v9290_v40  ;;  %v9298_v48 = vld [vmem:[#allocation38_spill] sm:$0xff] }
 0x296   : > { %9289 = vst [vmem:[#allocation31_spill] sm:$0xff] %v8254_v32  ;;  %v8258_v26 = vadd.f32 %v5916_v39, %v5777_v20  ;;  %v5631_v6 = vadd.f32 %v5490_v47, %v5489_v12  ;;  %v5783_v11 = vmul.f32 %v5490_v47, %v5490_v47  ;;  %v6118_v50 = vadd.f32 %v8144_v43, %v7883_v14  ;;  %v9305_v8 = vld [vmem:[#allocation14_spill] sm:$0xff]  ;;  %v9309_v47 = vld [vmem:[#allocation21_spill] sm:$0xff] }
 0x297   : > { %3540 = vmatprep.mubr.f32.mxu0 %v9266_v17  ;;  %v5492_v52 = vsel %vm5236_vm13, %v6117_v36, %v5364_v24  ;;  %v5497_v33 = vsel %vm5241_vm14, %v6086_v30, %v5369_v41  ;;  %v6087_v13 = vadd.f32 %v8147_v23, %v7887_v54  ;;  %v6119_v22 = vadd.f32 %v8149_v42, %v7889_v58  ;;  %v9303_v36 = vld [vmem:[#allocation11_spill] sm:$0xff]  ;;  %v9307_v39 = vld [vmem:[#allocation18_spill] sm:$0xff]  ;;  %v9311_v41 = vld [vmem:[#allocation25_spill] sm:$0xff] }
 0x298   : > { %9291 = vst [vmem:[#allocation33_spill] sm:$0xff] %v8258_v26  ;;  %4735 = vmatmul.mubr.f32.gmra.mrb[58].mxu1 %v9290_v40  ;;  %v5924_v0 = vadd.f32 %v5783_v11, %v5782_v63  ;;  %v5632_v28 = vadd.f32 %v5631_v6, %v5491_v29  ;;  %v5785_v7 = vmul.f32 %v5492_v52, %v5492_v52  ;;  %vm5243_vm15 = vcmp.gt.f32.partialorder %v6118_v50, 0.0  ;;  %v9302_v63 = vld [vmem:[#allocation10_spill] sm:$0xff]  ;;  %v9304_v29 = vld [vmem:[#allocation12_spill] sm:$0xff]  ;;  %v9306_v30 = vld [vmem:[#allocation15_spill] sm:$0xff] }
 0x299   : > { %v5790_v56 = vmul.f32 %v5497_v33, %v5497_v33  ;;  %4740 = vmatprep.mubr.f32.mxu1 %v9266_v17  ;;  %v5371_v14 = vmul.f32 0.2, %v6118_v50  ;;  %vm5242_vm0 = vcmp.gt.f32.partialorder %v6087_v13, 0.0  ;;  %v5370_v43 = vmul.f32 0.2, %v6087_v13  ;;  %3544 = vmatmul.mubr.f32.gmra.mrb[60].mxu0 %v9292_v49  ;;  %v9310_v24 = vld [vmem:[#allocation23_spill] sm:$0xff] }
 0x29a   : > { %v8270_v27 = vadd.f32 %v5632_v28, %v5492_v52  ;;  %v5925_v54 = vadd.f32 %v5924_v0, %v5784_v44  ;;  %vm5244_vm1 = vcmp.gt.f32.partialorder %v6119_v22, 0.0  ;;  %v5372_v23 = vmul.f32 0.2, %v6119_v22  ;;  %3549 = vmatprep.mubr.f32.mxu0 %v9266_v17  ;;  %v9308_v44 = vld [vmem:[#allocation20_spill] sm:$0xff]  ;;  %v9312_v40 = vld [vmem:[#allocation27_spill] sm:$0xff]  ;;  %v9313_v6 = vld [vmem:[#allocation29_spill] sm:$0xff] }
 0x29b   : > { %v5673_v58 = vmul.f32 %v7906_v21, %v7906_v21  ;;  %v5499_v42 = vsel %vm5243_vm15, %v6118_v50, %v5371_v14  ;;  %v5498_v38 = vsel %vm5242_vm0, %v6087_v13, %v5370_v43  ;;  %v5799_v15 = vadd.f32 %v7911_v3, %v7902_v19  ;;  %v9314_v11 = vld [vmem:[#allocation34_spill] sm:$0xff] }
 0x29c   : > { %9293 = vst [vmem:[#allocation36_spill] sm:$0xff] %v8270_v27  ;;  %4744 = vmatmul.mubr.f32.gmra.mrb[60].mxu1 %v9292_v49  ;;  %v8278_v31 = vadd.f32 %v5925_v54, %v5785_v7  ;;  %v5640_v53 = vadd.f32 %v5498_v38, %v5497_v33  ;;  %v5791_v35 = vmul.f32 %v5498_v38, %v5498_v38  ;;  %v6852_v33 = vld [vmem:[%s9138_s1] sm:$0xff] }
 0x29d   : > { %4749 = vmatprep.mubr.f32.mxu1 %v9266_v17  ;;  %v5500_v37 = vsel %vm5244_vm1, %v6119_v22, %v5372_v23  ;;  %3553 = vmatmul.mubr.f32.gmra.mrb[62].mxu0 %v9295_v51  ;;  %v8282_v9 = vadd.f32 %v5799_v15, %v5673_v58  ;;  %v5792_v2 = vmul.f32 %v5499_v42, %v5499_v42 }
 0x29e   : > { %9294 = vst [vmem:[#allocation49_spill] sm:$0xff] %v8278_v31  ;;  %v5933_v21 = vadd.f32 %v5791_v35, %v5790_v56  ;;  %v5641_v20 = vadd.f32 %v5640_v53, %v5499_v42  ;;  %3629 = vmatprep.mubr.f32.mxu0 %v9266_v17  ;;  %v5793_v3 = vmul.f32 %v5500_v37, %v5500_v37 }
 0x2a0   : > { %4753 = vmatmul.mubr.f32.gmra.mrb[62].mxu1 %v9295_v51  ;;  %v8286_v12 = vadd.f32 %v5641_v20, %v5500_v37  ;;  %v5934_v19 = vadd.f32 %v5933_v21, %v5792_v2 }
 0x2a1   : > { %4829 = vmatprep.mubr.f32.mxu1 %v9266_v17  ;;  %3631 = vmatmul.mubr.f32.vlgmr.msra.gmra.mrb[32].mxu0 %v7010_v25 }
 0x2a2   : > { %9296 = vst [vmem:[#allocation37_spill] sm:$0xff] %v8286_v12  ;;  %v8290_v55 = vadd.f32 %v5934_v19, %v5793_v3  ;;  %3745 = vmatpush1.msra.mxu0 %v9298_v48  ;;  %3636 = vmatprep.mubr.f32.mxu0 %v9266_v17 }
 0x2a4   : > { %9297 = vst [vmem:[#allocation50_spill] sm:$0xff] %v8290_v55  ;;  %4831 = vmatmul.mubr.f32.vlgmr.msra.gmra.mrb[32].mxu1 %v7010_v25 }
 0x2a5   : > { %4836 = vmatprep.mubr.f32.mxu1 %v9266_v17  ;;  %4945 = vmatpush1.msra.mxu1 %v9299_v57 }
 0x2a6   : > { %3638 = vmatmul.mubr.f32.gmra.mrb[34].mxu0 %v9300_v59 }
 0x2a7   : > { %3643 = vmatprep.mubr.f32.mxu0 %v9266_v17 }
 0x2a8   : > { %4838 = vmatmul.mubr.f32.gmra.mrb[34].mxu1 %v9300_v59 }
 0x2a9   : > { %4843 = vmatprep.mubr.f32.mxu1 %v9266_v17 }
 0x2aa   : > { %3645 = vmatmul.mubr.f32.gmra.mrb[36].mxu0 %v9301_v1 }
 0x2ab   : > { %3650 = vmatprep.mubr.f32.mxu0 %v9266_v17 }
 0x2ac   : > { %4845 = vmatmul.mubr.f32.gmra.mrb[36].mxu1 %v9301_v1 }
 0x2ad   : > { %4850 = vmatprep.mubr.f32.mxu1 %v9266_v17 }
 0x2ae   : > { %3652 = vmatmul.mubr.f32.gmra.mrb[38].mxu0 %v9302_v63 }
 0x2af   : > { %3657 = vmatprep.mubr.f32.mxu0 %v9266_v17 }
 0x2b0   : > { %4852 = vmatmul.mubr.f32.gmra.mrb[38].mxu1 %v9302_v63 }
 0x2b1   : > { %4857 = vmatprep.mubr.f32.mxu1 %v9266_v17 }
 0x2b2   : > { %3659 = vmatmul.mubr.f32.gmra.mrb[40].mxu0 %v9303_v36 }
 0x2b3   : > { %3664 = vmatprep.mubr.f32.mxu0 %v9266_v17 }
 0x2b4   : > { %4859 = vmatmul.mubr.f32.gmra.mrb[40].mxu1 %v9303_v36 }
 0x2b5   : > { %4864 = vmatprep.mubr.f32.mxu1 %v9266_v17 }
 0x2b6   : > { %3666 = vmatmul.mubr.f32.gmra.mrb[42].mxu0 %v9304_v29 }
 0x2b7   : > { %3671 = vmatprep.mubr.f32.mxu0 %v9266_v17 }
 0x2b8   : > { %4866 = vmatmul.mubr.f32.gmra.mrb[42].mxu1 %v9304_v29 }
 0x2b9   : > { %4871 = vmatprep.mubr.f32.mxu1 %v9266_v17 }
 0x2ba   : > { %3673 = vmatmul.mubr.f32.gmra.mrb[44].mxu0 %v9305_v8 }
 0x2bb   : > { %3678 = vmatprep.mubr.f32.mxu0 %v9266_v17 }
 0x2bc   : > { %4873 = vmatmul.mubr.f32.gmra.mrb[44].mxu1 %v9305_v8 }
 0x2bd   : > { %4878 = vmatprep.mubr.f32.mxu1 %v9266_v17 }
 0x2be   : > { %3680 = vmatmul.mubr.f32.gmra.mrb[46].mxu0 %v9306_v30 }
 0x2bf   : > { %3685 = vmatprep.mubr.f32.mxu0 %v9266_v17 }
 0x2c0   : > { %4880 = vmatmul.mubr.f32.gmra.mrb[46].mxu1 %v9306_v30 }
 0x2c1   : > { %4885 = vmatprep.mubr.f32.mxu1 %v9266_v17 }
 0x2c2   : > { %3687 = vmatmul.mubr.f32.gmra.mrb[48].mxu0 %v9307_v39 }
 0x2c3   : > { %3692 = vmatprep.mubr.f32.mxu0 %v9266_v17 }
 0x2c4   : > { %4887 = vmatmul.mubr.f32.gmra.mrb[48].mxu1 %v9307_v39 }
 0x2c5   : > { %4892 = vmatprep.mubr.f32.mxu1 %v9266_v17 }
 0x2c6   : > { %3694 = vmatmul.mubr.f32.gmra.mrb[50].mxu0 %v9308_v44 }
 0x2c7   : > { %3699 = vmatprep.mubr.f32.mxu0 %v9266_v17 }
 0x2c8   : > { %4894 = vmatmul.mubr.f32.gmra.mrb[50].mxu1 %v9308_v44 }
 0x2c9   : > { %4899 = vmatprep.mubr.f32.mxu1 %v9266_v17 }
 0x2ca   : > { %3701 = vmatmul.mubr.f32.gmra.mrb[52].mxu0 %v9309_v47 }
 0x2cb   : > { %3706 = vmatprep.mubr.f32.mxu0 %v9266_v17 }
 0x2cc   : > { %4901 = vmatmul.mubr.f32.gmra.mrb[52].mxu1 %v9309_v47 }
 0x2cd   : > { %4906 = vmatprep.mubr.f32.mxu1 %v9266_v17 }
 0x2ce   : > { %3708 = vmatmul.mubr.f32.gmra.mrb[54].mxu0 %v9310_v24 }
 0x2cf   : > { %3713 = vmatprep.mubr.f32.mxu0 %v9266_v17 }
 0x2d0   : > { %4908 = vmatmul.mubr.f32.gmra.mrb[54].mxu1 %v9310_v24 }
 0x2d1   : > { %4913 = vmatprep.mubr.f32.mxu1 %v9266_v17 }
 0x2d2   : > { %3715 = vmatmul.mubr.f32.gmra.mrb[56].mxu0 %v9311_v41 }
 0x2d3   : > { %3720 = vmatprep.mubr.f32.mxu0 %v9266_v17 }
 0x2d4   : > { %4915 = vmatmul.mubr.f32.gmra.mrb[56].mxu1 %v9311_v41 }
 0x2d5   : > { %4920 = vmatprep.mubr.f32.mxu1 %v9266_v17 }
 0x2d6   : > { %3722 = vmatmul.mubr.f32.gmra.mrb[58].mxu0 %v9312_v40 }
 0x2d7   : > { %3727 = vmatprep.mubr.f32.mxu0 %v9266_v17 }
 0x2d8   : > { %4922 = vmatmul.mubr.f32.gmra.mrb[58].mxu1 %v9312_v40 }
 0x2d9   : > { %4927 = vmatprep.mubr.f32.mxu1 %v9266_v17 }
 0x2da   : > { %3729 = vmatmul.mubr.f32.gmra.mrb[60].mxu0 %v9313_v6 }
 0x2db   : > { %3734 = vmatprep.mubr.f32.mxu0 %v9266_v17 }
 0x2dc   : > { %4929 = vmatmul.mubr.f32.gmra.mrb[60].mxu1 %v9313_v6 }
 0x2dd   : > { %4934 = vmatprep.mubr.f32.mxu1 %v9266_v17 }
 0x2de   : > { %3736 = vmatmul.mubr.f32.gmra.mrb[62].mxu0 %v9314_v11 }
 0x2df   : > { %3808 = vmatprep.mubr.f32.mxu0 %v9266_v17 }
 0x2e0   : > { %4936 = vmatmul.mubr.f32.gmra.mrb[62].mxu1 %v9314_v11 }
 0x2e1   : > { %5008 = vmatprep.mubr.f32.mxu1 %v9266_v17 }
 0x2e2   : > { %3810 = vmatmul.mubr.f32.vlgmr.msra.gmra.mrb[32].mxu0 %v7010_v25 }
 0x2e3   : > { %3815 = vmatprep.mubr.f32.mxu0 %v9266_v17 }
 0x2e4   : > { %5010 = vmatmul.mubr.f32.vlgmr.msra.gmra.mrb[32].mxu1 %v7010_v25  ;;  %v9315_v25 = vld [vmem:[#allocation13_spill] sm:$0xff] }
 0x2e5   : > { %5015 = vmatprep.mubr.f32.mxu1 %v9266_v17  ;;  %v225_v50 = vsub.s32 4, %v9315_v25  ;;  %v229_v52 = vsub.s32 5, %v9315_v25  ;;  %v233_v22 = vsub.s32 6, %v9315_v25  ;;  %v237_v43 = vsub.s32 7, %v9315_v25 }
 0x2e6   : > { %3817 = vmatmul.mubr.f32.gmra.mrb[34].mxu0 %v9300_v59 }
 0x2e7   : > { %3822 = vmatprep.mubr.f32.mxu0 %v9266_v17  ;;  %v8424_v13 = vrot.slane %v6852_v33, %v225_v50  ;;  %v8427_v28 = vrot.slane %v6852_v33, %v229_v52  ;;  %v8430_v56 = vrot.slane %v6852_v33, %v233_v22  ;;  %v8436_v53 = vrot.slane %v6852_v33, %v237_v43 }
 0x2e8   : > { %5017 = vmatmul.mubr.f32.gmra.mrb[34].mxu1 %v9300_v59 }
 0x2e9   : > { %5022 = vmatprep.mubr.f32.mxu1 %v9266_v17 }
 0x2ea   : > { %3824 = vmatmul.mubr.f32.gmra.mrb[36].mxu0 %v9301_v1 }
 0x2eb   : > { %3829 = vmatprep.mubr.f32.mxu0 %v9266_v17 }
 0x2ec   : > { %5024 = vmatmul.mubr.f32.gmra.mrb[36].mxu1 %v9301_v1  ;;  %v9316_v1 = vld [vmem:[#allocation17_spill] sm:$0xff] }
 0x2ed   : > { %5029 = vmatprep.mubr.f32.mxu1 %v9266_v17 }
 0x2ee   : > { %3831 = vmatmul.mubr.f32.gmra.mrb[38].mxu0 %v9302_v63 }
 0x2ef   : > { %3836 = vmatprep.mubr.f32.mxu0 %v9266_v17 }
 0x2f0   : > { %5031 = vmatmul.mubr.f32.gmra.mrb[38].mxu1 %v9302_v63 }
 0x2f1   : > { %5036 = vmatprep.mubr.f32.mxu1 %v9266_v17 }
 0x2f2   : > { %3838 = vmatmul.mubr.f32.gmra.mrb[40].mxu0 %v9303_v36 }
 0x2f3   : > { %3843 = vmatprep.mubr.f32.mxu0 %v9266_v17 }
 0x2f4   : > { %5038 = vmatmul.mubr.f32.gmra.mrb[40].mxu1 %v9303_v36 }
 0x2f5   : > { %5043 = vmatprep.mubr.f32.mxu1 %v9266_v17 }
 0x2f6   : > { %3845 = vmatmul.mubr.f32.gmra.mrb[42].mxu0 %v9304_v29 }
 0x2f7   : > { %3850 = vmatprep.mubr.f32.mxu0 %v9266_v17 }
 0x2f8   : > { %5045 = vmatmul.mubr.f32.gmra.mrb[42].mxu1 %v9304_v29 }
 0x2f9   : > { %5050 = vmatprep.mubr.f32.mxu1 %v9266_v17 }
 0x2fa   : > { %3852 = vmatmul.mubr.f32.gmra.mrb[44].mxu0 %v9305_v8 }
 0x2fb   : > { %3857 = vmatprep.mubr.f32.mxu0 %v9266_v17 }
 0x2fc   : > { %5052 = vmatmul.mubr.f32.gmra.mrb[44].mxu1 %v9305_v8 }
 0x2fd   : > { %5057 = vmatprep.mubr.f32.mxu1 %v9266_v17 }
 0x2fe   : > { %3859 = vmatmul.mubr.f32.gmra.mrb[46].mxu0 %v9306_v30 }
 0x2ff   : > { %3864 = vmatprep.mubr.f32.mxu0 %v9266_v17 }
 0x300   : > { %5059 = vmatmul.mubr.f32.gmra.mrb[46].mxu1 %v9306_v30 }
 0x301   : > { %5064 = vmatprep.mubr.f32.mxu1 %v9266_v17 }
 0x302   : > { %3866 = vmatmul.mubr.f32.gmra.mrb[48].mxu0 %v9307_v39 }
 0x303   : > { %3871 = vmatprep.mubr.f32.mxu0 %v9266_v17 }
 0x304   : > { %5066 = vmatmul.mubr.f32.gmra.mrb[48].mxu1 %v9307_v39 }
 0x305   : > { %5071 = vmatprep.mubr.f32.mxu1 %v9266_v17 }
 0x306   : > { %3873 = vmatmul.mubr.f32.gmra.mrb[50].mxu0 %v9308_v44 }
 0x307   : > { %3878 = vmatprep.mubr.f32.mxu0 %v9266_v17 }
 0x308   : > { %5073 = vmatmul.mubr.f32.gmra.mrb[50].mxu1 %v9308_v44 }
 0x309   : > { %5078 = vmatprep.mubr.f32.mxu1 %v9266_v17 }
 0x30a   : > { %3880 = vmatmul.mubr.f32.gmra.mrb[52].mxu0 %v9309_v47 }
 0x30b   : > { %3885 = vmatprep.mubr.f32.mxu0 %v9266_v17 }
 0x30c   : > { %5080 = vmatmul.mubr.f32.gmra.mrb[52].mxu1 %v9309_v47 }
 0x30d   : > { %5085 = vmatprep.mubr.f32.mxu1 %v9266_v17 }
 0x30e   : > { %3887 = vmatmul.mubr.f32.gmra.mrb[54].mxu0 %v9310_v24 }
 0x30f   : > { %3892 = vmatprep.mubr.f32.mxu0 %v9266_v17 }
 0x310   : > { %5087 = vmatmul.mubr.f32.gmra.mrb[54].mxu1 %v9310_v24 }
 0x311   : > { %5092 = vmatprep.mubr.f32.mxu1 %v9266_v17 }
 0x312   : > { %3894 = vmatmul.mubr.f32.gmra.mrb[56].mxu0 %v9311_v41 }
 0x313   : > { %3899 = vmatprep.mubr.f32.mxu0 %v9266_v17 }
 0x314   : > { %5094 = vmatmul.mubr.f32.gmra.mrb[56].mxu1 %v9311_v41  ;;  %v9317_v41 = vld [vmem:[#allocation16_spill] sm:$0xff] }
 0x315   : > { %5099 = vmatprep.mubr.f32.mxu1 %v9266_v17 }
 0x316   : > { %3901 = vmatmul.mubr.f32.gmra.mrb[58].mxu0 %v9312_v40 }
 0x317   : > { %3906 = vmatprep.mubr.f32.mxu0 %v9266_v17 }
 0x318   : > { %5101 = vmatmul.mubr.f32.gmra.mrb[58].mxu1 %v9312_v40 }
 0x319   : > { %5106 = vmatprep.mubr.f32.mxu1 %v9266_v17 }
 0x31a   : > { %3908 = vmatmul.mubr.f32.gmra.mrb[60].mxu0 %v9313_v6 }
 0x31b   : > { %3913 = vmatprep.mubr.f32.mxu0 %v9266_v17 }
 0x31c   : > { %5108 = vmatmul.mubr.f32.gmra.mrb[60].mxu1 %v9313_v6 }
 0x31d   : > { %5113 = vmatprep.mubr.f32.mxu1 %v9266_v17 }
 0x31e   : > { %3915 = vmatmul.mubr.f32.gmra.mrb[62].mxu0 %v9314_v11 }
 0x320   : > { %5115 = vmatmul.mubr.f32.gmra.mrb[62].mxu1 %v9314_v11 }
 0x3b5   : > { %v3811_v0 = vpop.f32.mrb[32].mxu0 }
 0x3b6   : > { %v6120_v17 = vadd.f32 %v3811_v0, %v8424_v13  ;;  %v3813_v7 = vpop.f32.mrb[33].mxu0  ;;  %v9318_v0 = vld [vmem:[#allocation22_spill] sm:$0xff] }
 0x3b7   : > { %v5011_v14 = vpop.f32.mrb[32].mxu1  ;;  %v6121_v54 = vadd.f32 %v3813_v7, %v8427_v28 }
 0x3b8   : > { %v5013_v49 = vpop.f32.mrb[33].mxu1  ;;  %v5253_v58 = vmul.f32 0.2, %v6120_v17  ;;  %vm5125_vm2 = vcmp.gt.f32.partialorder %v6120_v17, 0.0  ;;  %v6152_v15 = vadd.f32 %v5011_v14, %v8430_v56 }
 0x3b9   : > { %v3818_v23 = vpop.f32.mrb[34].mxu0  ;;  %v5254_v2 = vmul.f32 0.2, %v6121_v54  ;;  %vm5126_vm5 = vcmp.gt.f32.partialorder %v6121_v54, 0.0  ;;  %v6153_v59 = vadd.f32 %v5013_v49, %v8436_v53 }
 0x3ba   : > { %v6122_v42 = vadd.f32 %v3818_v23, %v8424_v13  ;;  %v3820_v38 = vpop.f32.mrb[35].mxu0  ;;  %v5381_v20 = vsel %vm5125_vm2, %v6120_v17, %v5253_v58  ;;  %vm5127_vm4 = vcmp.gt.f32.partialorder %v6152_v15, 0.0  ;;  %v5255_v29 = vmul.f32 0.2, %v6152_v15 }
 0x3bb   : > { %v5018_v35 = vpop.f32.mrb[34].mxu1  ;;  %v6123_v19 = vadd.f32 %v3820_v38, %v8427_v28  ;;  %v5674_v39 = vmul.f32 %v5381_v20, %v5381_v20  ;;  %v5508_v40 = vadd.f32 %v9317_v41, %v5381_v20  ;;  %v5382_v52 = vsel %vm5126_vm5, %v6121_v54, %v5254_v2 }
 0x3bc   : > { %vm5133_vm3 = vcmp.gt.f32.partialorder %v6122_v42, 0.0  ;;  %v5261_v37 = vmul.f32 0.2, %v6122_v42  ;;  %v5020_v51 = vpop.f32.mrb[35].mxu1  ;;  %v8445_v44 = vadd.f32 %v5018_v35, %v8430_v56  ;;  %v5256_v33 = vmul.f32 0.2, %v6153_v59 }
 0x3bd   : > { %v3825_v21 = vpop.f32.mrb[36].mxu0  ;;  %v5262_v6 = vmul.f32 0.2, %v6123_v19  ;;  %vm5134_vm7 = vcmp.gt.f32.partialorder %v6123_v19, 0.0  ;;  %v8452_v22 = vadd.f32 %v5020_v51, %v8436_v53  ;;  %vm5128_vm9 = vcmp.gt.f32.partialorder %v6153_v59, 0.0 }
 0x3be   : > { %v5389_v3 = vsel %vm5133_vm3, %v6122_v42, %v5261_v37  ;;  %v6124_v48 = vadd.f32 %v3825_v21, %v8424_v13  ;;  %v3827_v57 = vpop.f32.mrb[37].mxu0  ;;  %v5383_v49 = vsel %vm5127_vm4, %v6152_v15, %v5255_v29  ;;  %vm5135_vm10 = vcmp.gt.f32.partialorder %v8445_v44, 0.0  ;;  %v9319_v15 = vld [vmem:[#allocation26_spill] sm:$0xff] }
 0x3bf   : > { %v8442_v63 = vadd.f32 %v9316_v1, %v5389_v3  ;;  %v5025_v36 = vpop.f32.mrb[36].mxu1  ;;  %v6125_v47 = vadd.f32 %v3827_v57, %v8427_v28  ;;  %v5263_v23 = vmul.f32 0.2, %v8445_v44  ;;  %v5509_v58 = vadd.f32 %v5508_v40, %v5382_v52 }
 0x3c0   : > { %vm5141_vm6 = vcmp.gt.f32.partialorder %v6124_v48, 0.0  ;;  %v5269_v8 = vmul.f32 0.2, %v6124_v48  ;;  %v5027_v30 = vpop.f32.mrb[37].mxu1  ;;  %v5390_v38 = vsel %vm5134_vm7, %v6123_v19, %v5262_v6  ;;  %v8461_v35 = vadd.f32 %v5025_v36, %v8430_v56 }
 0x3c1   : > { %v3832_v24 = vpop.f32.mrb[38].mxu0  ;;  %v5270_v54 = vmul.f32 0.2, %v6125_v47  ;;  %vm5142_vm11 = vcmp.gt.f32.partialorder %v6125_v47, 0.0  ;;  %v5682_v2 = vmul.f32 %v5389_v3, %v5389_v3  ;;  %v5264_v21 = vmul.f32 0.2, %v8452_v22 }
 0x3c2   : > { %v5397_v11 = vsel %vm5141_vm6, %v6124_v48, %v5269_v8  ;;  %v6126_v25 = vadd.f32 %v3832_v24, %v8424_v13  ;;  %v3834_v50 = vpop.f32.mrb[39].mxu0  ;;  %v8465_v20 = vadd.f32 %v5027_v30, %v8436_v53  ;;  %v5510_v36 = vadd.f32 %v5509_v58, %v5383_v49 }
 0x3c3   : > { %v8455_v17 = vadd.f32 %v9318_v0, %v5397_v11  ;;  %v5032_v7 = vpop.f32.mrb[38].mxu1  ;;  %v6127_v19 = vadd.f32 %v3834_v50, %v8427_v28  ;;  %v5683_v3 = vmul.f32 %v5390_v38, %v5390_v38  ;;  %v8477_v24 = vsel %vm5142_vm11, %v6125_v47, %v5270_v54 }
 0x3c4   : > { %vm5149_vm8 = vcmp.gt.f32.partialorder %v6126_v25, 0.0  ;;  %v5277_v14 = vmul.f32 0.2, %v6126_v25  ;;  %v5034_v43 = vpop.f32.mrb[39].mxu1  ;;  %v8471_v1 = vadd.f32 %v5032_v7, %v8430_v56  ;;  %v5384_v30 = vsel %vm5128_vm9, %v6153_v59, %v5256_v33 }
 0x3c5   : > { %v3839_v42 = vpop.f32.mrb[40].mxu0  ;;  %v5675_v41 = vmul.f32 %v5382_v52, %v5382_v52  ;;  %v8481_v6 = vmul.f32 0.2, %v8461_v35  ;;  %v8483_v50 = vmul.f32 %v5397_v11, %v5397_v11  ;;  %vm5143_vm13 = vcmp.gt.f32.partialorder %v8461_v35, 0.0 }
 0x3c6   : > { %v5405_v37 = vsel %vm5149_vm8, %v6126_v25, %v5277_v14  ;;  %v3841_v51 = vpop.f32.mrb[41].mxu0  ;;  %v6128_v29 = vadd.f32 %v3839_v42, %v8424_v13  ;;  %v5511_v25 = vadd.f32 %v5510_v36, %v5384_v30  ;;  %v8487_v14 = vmul.f32 0.2, %v8465_v20 }
 0x3c7   : > { %v8468_v48 = vadd.f32 %v9319_v15, %v5405_v37  ;;  %v5039_v57 = vpop.f32.mrb[40].mxu1  ;;  %v8490_v47 = vadd.f32 %v5034_v43, %v8436_v53  ;;  %v5801_v59 = vadd.f32 %v8282_v9, %v5674_v39  ;;  %v8495_v33 = vmul.f32 %v8477_v24, %v8477_v24  ;;  %v9320_v15 = vld [vmem:[#allocation30_spill] sm:$0xff] }
 0x3c8   : > { %v8475_v8 = vpop.f32.mrb[41].mxu1  ;;  %vm5157_vm12 = vcmp.gt.f32.partialorder %v6128_v29, 0.0  ;;  %v5285_v0 = vmul.f32 0.2, %v6128_v29  ;;  %v8498_v54 = vmul.f32 0.2, %v8471_v1  ;;  %5512 = vadd.xlane.f32.xlu0 %v5511_v25  ;;  %v5676_v43 = vmul.f32 %v5383_v49, %v5383_v49 }
 0x3c9   : > { %v3846_v40 = vpop.f32.mrb[42].mxu0  ;;  %v5278_v11 = vmul.f32 0.2, %v6127_v19  ;;  %vm5150_vm14 = vcmp.gt.f32.partialorder %v6127_v19, 0.0  ;;  %v5802_v55 = vadd.f32 %v5801_v59, %v5675_v41  ;;  %v8505_v39 = vmul.f32 %v5405_v37, %v5405_v37 }
 0x3ca   : > { %v3848_v7 = vpop.f32.mrb[43].mxu0  ;;  %v5413_v58 = vsel %vm5157_vm12, %v6128_v29, %v5285_v0  ;;  %v5677_v31 = vmul.f32 %v5384_v30, %v5384_v30  ;;  %vm5136_vm15 = vcmp.gt.f32.partialorder %v8452_v22, 0.0  ;;  %v5518_v26 = vadd.f32 %v8442_v63, %v5390_v38  ;;  %v9321_v63 = vld [vmem:[#allocation19_spill] sm:$0xff] }
 0x3cb   : > { %v5046_v52 = vpop.f32.mrb[42].mxu1  ;;  %v8503_v36 = vadd.f32 %v9320_v15, %v5413_v58  ;;  %v5803_v25 = vadd.f32 %v5802_v55, %v5676_v43  ;;  %v6129_v29 = vadd.f32 %v3841_v51, %v8427_v28  ;;  %v5391_v0 = vsel %vm5135_vm10, %v8445_v44, %v5263_v23 }
 0x3cc   : > { %v8500_v42 = vpop.f32.mrb[43].mxu1  ;;  %v6130_v49 = vadd.f32 %v3846_v40, %v8424_v13  ;;  %v8518_v37 = vsel %vm5150_vm14, %v6127_v19, %v5278_v11  ;;  %v8521_v30 = vadd.f32 %v5039_v57, %v8430_v56  ;;  %v5519_v59 = vadd.f32 %v5518_v26, %v5391_v0 }
 0x3cd   : > { %v3853_v9 = vpop.f32.mrb[44].mxu0  ;;  %v5810_v38 = vadd.f32 %v9321_v63, %v5682_v2  ;;  %v5804_v55 = vadd.f32 %v5803_v25, %v5677_v31  ;;  %v5392_v51 = vsel %vm5136_vm15, %v8452_v22, %v5264_v21  ;;  %vm5151_vm1 = vcmp.gt.f32.partialorder %v8471_v1, 0.0 }
 0x3ce   : > { %v8509_v61 = vpop.f32.mrb[45].mxu0  ;;  %vm5165_vm0 = vcmp.gt.f32.partialorder %v6130_v49, 0.0  ;;  %v5293_v43 = vmul.f32 0.2, %v6130_v49  ;;  %v8531_v23 = vmul.f32 0.2, %v8490_v47  ;;  %v5520_v19 = vadd.f32 %v5519_v59, %v5392_v51 }
 0x3cf   : > { %v8516_v41 = vpop.f32.mrb[44].mxu1  ;;  %v5684_v57 = vmul.f32 %v5391_v0, %v5391_v0  ;;  %v5811_v40 = vadd.f32 %v5810_v38, %v5683_v3  ;;  %v8537_v2 = vmul.f32 %v8518_v37, %v8518_v37  ;;  %5805 = vadd.xlane.f32.xlu1 %v5804_v55  ;;  %v5286_v31 = vmul.f32 0.2, %v6129_v29 }
 0x3d0   : > { %v8524_v15 = vpop.f32.mrb[45].mxu1  ;;  %v5421_v22 = vsel %vm5165_vm0, %v6130_v49, %v5293_v43  ;;  %v6131_v21 = vadd.f32 %v3848_v7, %v8427_v28  ;;  %vm5158_vm2 = vcmp.gt.f32.partialorder %v6129_v29, 0.0  ;;  %5521 = vadd.xlane.f32.xlu0 %v5520_v19  ;;  %v5685_v0 = vmul.f32 %v5392_v51, %v5392_v51 }
 0x3d1   : > { %v8527_v44 = vpop.f32.mrb[46].mxu0  ;;  %v8543_v25 = vadd.f32 %v8052_v5, %v5421_v22  ;;  %v5812_v3 = vadd.f32 %v5811_v40, %v5684_v57  ;;  %v8547_v63 = vmul.f32 %v5413_v58, %v5413_v58  ;;  %v8550_v38 = vmul.f32 0.2, %v8521_v30  ;;  %v9322_v40 = vld [vmem:[#allocation24_spill] sm:$0xff] }
 0x3d2   : > { %v8533_v26 = vpop.f32.mrb[47].mxu0  ;;  %v8554_v49 = vadd.f32 %v8475_v8, %v8436_v53  ;;  %vm5144_vm3 = vcmp.gt.f32.partialorder %v8465_v20, 0.0  ;;  %v5399_v5 = vsel %vm5143_vm13, %v8461_v35, %v8481_v6  ;;  %v5527_v58 = vadd.f32 %v8455_v17, %v8477_v24 }
 0x3d3   : > { %v8540_v11 = vpop.f32.mrb[46].mxu1  ;;  %v5813_v55 = vadd.f32 %v5812_v3, %v5685_v0  ;;  %v6132_v51 = vadd.f32 %v3853_v9, %v8424_v13  ;;  %v8569_v8 = vsel %vm5158_vm2, %v6129_v29, %v5286_v31  ;;  %v8572_v19 = vadd.f32 %v5046_v52, %v8430_v56 }
 0x3d4   : > { %v8545_v59 = vpop.f32.mrb[47].mxu1  ;;  %v5294_v57 = vmul.f32 0.2, %v6131_v21  ;;  %v5819_v0 = vadd.f32 %v9322_v40, %v8483_v50  ;;  %v5400_v17 = vsel %vm5144_vm3, %v8465_v20, %v8487_v14  ;;  %v5528_v35 = vadd.f32 %v5527_v58, %v5399_v5 }
 0x3d5   : > { %v8557_v7 = vpop.f32.mrb[48].mxu0  ;;  %5814 = vadd.xlane.f32.xlu1 %v5813_v55  ;;  %vm5173_vm4 = vcmp.gt.f32.partialorder %v6132_v51, 0.0  ;;  %v5301_v24 = vmul.f32 0.2, %v6132_v51  ;;  %vm5159_vm5 = vcmp.gt.f32.partialorder %v8521_v30, 0.0  ;;  %vm5166_vm6 = vcmp.gt.f32.partialorder %v6131_v21, 0.0 }
 0x3d6   : > { %v8566_v43 = vpop.f32.mrb[49].mxu0  ;;  %v8584_v52 = vmul.f32 0.2, %v8554_v49  ;;  %v5692_v9 = vmul.f32 %v5399_v5, %v5399_v5  ;;  %v5820_v50 = vadd.f32 %v5819_v0, %v8495_v33  ;;  %v8591_v31 = vadd.f32 %v8500_v42, %v8436_v53  ;;  %v9323_v5 = vld [vmem:[#allocation40_spill] sm:$0xff] }
 0x3d7   : > { %v8576_v3 = vpop.f32.mrb[48].mxu1  ;;  %v5529_v20 = vadd.f32 %v5528_v35, %v5400_v17  ;;  %v5429_v14 = vsel %vm5173_vm4, %v6132_v51, %v5301_v24  ;;  %v6133_v55 = vadd.f32 %v8509_v61, %v8427_v28  ;;  %v8599_v40 = vmul.f32 %v8569_v8, %v8569_v8 }
 0x3d8   : > { %v8580_v6 = vpop.f32.mrb[49].mxu1  ;;  %v8602_v12 = vadd.f32 %v9323_v5, %v5429_v14  ;;  %v5693_v33 = vmul.f32 %v5400_v17, %v5400_v17  ;;  %v5821_v0 = vadd.f32 %v5820_v50, %v5692_v9  ;;  %v8607_v42 = vmul.f32 0.2, %v8572_v19  ;;  %v9324_v5 = vld [vmem:[#allocation28_spill] sm:$0xff] }
 0x3d9   : > { %v8587_v29 = vpop.f32.mrb[50].mxu0  ;;  %v8609_v51 = vsel %vm5166_vm6, %v6131_v21, %v5294_v57  ;;  %5530 = vadd.xlane.f32.xlu0 %v5529_v20  ;;  %v8613_v61 = vadd.f32 %v8516_v41, %v8430_v56  ;;  %vm5152_vm7 = vcmp.gt.f32.partialorder %v8490_v47, 0.0  ;;  %v5407_v17 = vsel %vm5151_vm1, %v8471_v1, %v8498_v54 }
 0x3da   : > { %v8595_v58 = vpop.f32.mrb[51].mxu0  ;;  %v5822_v24 = vadd.f32 %v5821_v0, %v5693_v33  ;;  %v5536_v9 = vadd.f32 %v8468_v48, %v8518_v37  ;;  %v6134_v21 = vadd.f32 %v8527_v44, %v8424_v13  ;;  %v8628_v41 = vmul.f32 %v5421_v22, %v5421_v22 }
 0x3db   : > { %v8604_v4 = vpop.f32.mrb[50].mxu1  ;;  %v8631_v50 = vmul.f32 0.2, %v8591_v31  ;;  %v5302_v20 = vmul.f32 0.2, %v6133_v55  ;;  %v5828_v33 = vadd.f32 %v9324_v5, %v8505_v39  ;;  %v5408_v48 = vsel %vm5152_vm7, %v8490_v47, %v8531_v23 }
 0x3dc   : > { %v8616_v35 = vpop.f32.mrb[51].mxu1  ;;  %5823 = vadd.xlane.f32.xlu1 %v5822_v24  ;;  %v5537_v1 = vadd.f32 %v5536_v9, %v5407_v17  ;;  %vm5181_vm8 = vcmp.gt.f32.partialorder %v6134_v21, 0.0  ;;  %v5309_v54 = vmul.f32 0.2, %v6134_v21  ;;  %vm5167_vm9 = vcmp.gt.f32.partialorder %v8572_v19, 0.0 }
 0x3dd   : > { %v8626_v57 = vpop.f32.mrb[52].mxu0  ;;  %v8644_v44 = vmul.f32 %v8609_v51, %v8609_v51  ;;  %vm5174_vm10 = vcmp.gt.f32.partialorder %v6133_v55, 0.0  ;;  %v5700_v22 = vmul.f32 %v5407_v17, %v5407_v17  ;;  %v5829_v39 = vadd.f32 %v5828_v33, %v8537_v2 }
 0x3de   : > { %v8635_v0 = vpop.f32.mrb[53].mxu0  ;;  %v8650_v24 = vmul.f32 0.2, %v8613_v61  ;;  %v5538_v47 = vadd.f32 %v5537_v1, %v5408_v48  ;;  %v5437_v23 = vsel %vm5181_vm8, %v6134_v21, %v5309_v54  ;;  %v6135_v9 = vadd.f32 %v8533_v26, %v8427_v28  ;;  %v9325_v54 = vld [vmem:[#allocation32_spill] sm:$0xff] }
 0x3df   : > { %v8639_v37 = vpop.f32.mrb[52].mxu1  ;;  %v8658_v10 = vadd.f32 %v8524_v15, %v8436_v53  ;;  %v8661_v17 = vadd.f32 %v8136_v62, %v5437_v23  ;;  %v5701_v2 = vmul.f32 %v5408_v48, %v5408_v48  ;;  %v5830_v33 = vadd.f32 %v5829_v39, %v5700_v22 }
 0x3e0   : > { %v8647_v5 = vpop.f32.mrb[53].mxu1  ;;  %v8665_v45 = vmul.f32 %v5429_v14, %v5429_v14  ;;  %v8667_v1 = vsel %vm5174_vm10, %v6133_v55, %v5302_v20  ;;  %5539 = vadd.xlane.f32.xlu0 %v5538_v47  ;;  %v8671_v26 = vadd.f32 %v8540_v11, %v8430_v56  ;;  %vm5160_vm11 = vcmp.gt.f32.partialorder %v8554_v49, 0.0 }
 0x3e1   : > { %v8654_v27 = vpop.f32.mrb[54].mxu0  ;;  %v5831_v21 = vadd.f32 %v5830_v33, %v5701_v2  ;;  %v5415_v62 = vsel %vm5159_vm5, %v8521_v30, %v8550_v38  ;;  %v5545_v14 = vadd.f32 %v8503_v36, %v8569_v8  ;;  %v6136_v55 = vadd.f32 %v8557_v7, %v8424_v13 }
 0x3e2   : > { %v8663_v32 = vpop.f32.mrb[55].mxu0  ;;  %vm5182_vm12 = vcmp.gt.f32.partialorder %v6135_v9, 0.0  ;;  %v5310_v11 = vmul.f32 0.2, %v6135_v9  ;;  %v8688_v48 = vadd.f32 %v8545_v59, %v8436_v53  ;;  %v5837_v22 = vadd.f32 %v9325_v54, %v8547_v63 }
 0x3e3   : > { %v8674_v15 = vpop.f32.mrb[54].mxu1  ;;  %5832 = vadd.xlane.f32.xlu1 %v5831_v21  ;;  %v5416_v36 = vsel %vm5160_vm11, %v8554_v49, %v8584_v52  ;;  %v5546_v30 = vadd.f32 %v5545_v14, %v5415_v62  ;;  %vm5189_vm13 = vcmp.gt.f32.partialorder %v6136_v55, 0.0  ;;  %v5317_v38 = vmul.f32 0.2, %v6136_v55 }
 0x3e4   : > { %v8684_v20 = vpop.f32.mrb[55].mxu1  ;;  %vm5175_vm14 = vcmp.gt.f32.partialorder %v8613_v61, 0.0  ;;  %v8701_v59 = vmul.f32 %v8667_v1, %v8667_v1  ;;  %v8704_v8 = vmul.f32 0.2, %v8658_v10  ;;  %v5708_v63 = vmul.f32 %v5415_v62, %v5415_v62 }
 0x3e5   : > { %v8692_v39 = vpop.f32.mrb[56].mxu0  ;;  %v5838_v47 = vadd.f32 %v5837_v22, %v8599_v40  ;;  %v8710_v49 = vmul.f32 0.2, %v8671_v26  ;;  %v5547_v52 = vadd.f32 %v5546_v30, %v5416_v36  ;;  %v5445_v33 = vsel %vm5189_vm13, %v6136_v55, %v5317_v38 }
 0x3e6   : > { %v8696_v7 = vpop.f32.mrb[57].mxu0  ;;  %v6137_v21 = vadd.f32 %v8566_v43, %v8427_v28  ;;  %v8717_v54 = vsel %vm5182_vm12, %v6135_v9, %v5310_v11  ;;  %v8720_v46 = vadd.f32 %v8152_v60, %v5445_v33  ;;  %v5709_v62 = vmul.f32 %v5416_v36, %v5416_v36 }
 0x3e7   : > { %v8707_v2 = vpop.f32.mrb[56].mxu1  ;;  %v5839_v40 = vadd.f32 %v5838_v47, %v5708_v63  ;;  %v8727_v30 = vmul.f32 0.2, %v8688_v48  ;;  %5548 = vadd.xlane.f32.xlu0 %v5547_v52  ;;  %v8731_v43 = vadd.f32 %v8576_v3, %v8430_v56  ;;  %vm5168_vm15 = vcmp.gt.f32.partialorder %v8591_v31, 0.0  ;;  %v9327_v63 = vld [vmem:[#allocation35_spill] sm:$0xff] }
 0x3e8   : > { %9326 = vst [vmem:[#allocation38_spill] sm:$0xff] %v8707_v2  ;;  %v8714_v14 = vpop.f32.mrb[57].mxu1  ;;  %v8724_v2 = vmul.f32 %v5437_v23, %v5437_v23  ;;  %v5423_v55 = vsel %vm5167_vm9, %v8572_v19, %v8607_v42  ;;  %v5554_v23 = vadd.f32 %v8543_v25, %v8609_v51  ;;  %v6138_v11 = vadd.f32 %v8587_v29, %v8424_v13 }
 0x3e9   : > { %v8722_v22 = vpop.f32.mrb[58].mxu0  ;;  %v5840_v60 = vadd.f32 %v5839_v40, %v5709_v62  ;;  %v8748_v3 = vmul.f32 %v8717_v54, %v8717_v54  ;;  %vm5190_vm0 = vcmp.gt.f32.partialorder %v6137_v21, 0.0  ;;  %v5318_v38 = vmul.f32 0.2, %v6137_v21 }
 0x3ea   : > { %v8734_v9 = vpop.f32.mrb[59].mxu0  ;;  %v5846_v47 = vadd.f32 %v9327_v63, %v8628_v41  ;;  %v5424_v25 = vsel %vm5168_vm15, %v8591_v31, %v8631_v50  ;;  %v5555_v19 = vadd.f32 %v5554_v23, %v5423_v55  ;;  %vm5197_vm1 = vcmp.gt.f32.partialorder %v6138_v11, 0.0 }
 0x3eb   : > { %v8744_v36 = vpop.f32.mrb[58].mxu1  ;;  %5841 = vadd.xlane.f32.xlu1 %v5840_v60  ;;  %v5325_v29 = vmul.f32 0.2, %v6138_v11  ;;  %vm5183_vm2 = vcmp.gt.f32.partialorder %v8671_v26, 0.0  ;;  %v8760_v51 = vmul.f32 0.2, %v8731_v43  ;;  %v5716_v62 = vmul.f32 %v5423_v55, %v5423_v55 }
 0x3ec   : > { %v8752_v52 = vpop.f32.mrb[59].mxu1  ;;  %v5847_v40 = vadd.f32 %v5846_v47, %v8644_v44  ;;  %v6139_v41 = vadd.f32 %v8595_v58, %v8427_v28  ;;  %v8767_v63 = vmul.f32 %v5445_v33, %v5445_v33  ;;  %v8771_v31 = vadd.f32 %v8580_v6, %v8436_v53 }
 0x3ed   : > { %9328 = vst [vmem:[#allocation39_spill] sm:$0xff] %v8752_v52  ;;  %v8756_v42 = vpop.f32.mrb[60].mxu0  ;;  %v5556_v50 = vadd.f32 %v5555_v19, %v5424_v25  ;;  %v5453_v23 = vsel %vm5197_vm1, %v6138_v11, %v5325_v29  ;;  %v8776_v52 = vsel %vm5190_vm0, %v6137_v21, %v5318_v38  ;;  %v5717_v55 = vmul.f32 %v5424_v25, %v5424_v25 }
 0x3ee   : > { %9329 = vst [vmem:[#allocation8_spill] sm:$0xff] %v8756_v42  ;;  %v8765_v60 = vpop.f32.mrb[61].mxu0  ;;  %v8779_v44 = vadd.f32 %v8176_v16, %v5453_v23  ;;  %v5848_v58 = vadd.f32 %v5847_v40, %v5716_v62  ;;  %v8785_v33 = vadd.f32 %v8604_v4, %v8430_v56  ;;  %vm5198_vm3 = vcmp.gt.f32.partialorder %v6139_v41, 0.0 }
 0x3ef   : > { %v8773_v42 = vpop.f32.mrb[60].mxu1  ;;  %5557 = vadd.xlane.f32.xlu0 %v5556_v50  ;;  %v5326_v6 = vmul.f32 0.2, %v6139_v41  ;;  %vm5176_vm4 = vcmp.gt.f32.partialorder %v8658_v10, 0.0  ;;  %v5431_v16 = vsel %vm5175_vm14, %v8613_v61, %v8650_v24  ;;  %v5563_v38 = vadd.f32 %v8602_v12, %v8667_v1  ;;  %v9331_v61 = vld [vmem:[#allocation41_spill] sm:$0xff] }
 0x3f0   : > { %v8781_v47 = vpop.f32.mrb[61].mxu1  ;;  %v5849_v21 = vadd.f32 %v5848_v58, %v5717_v55  ;;  %v6140_v25 = vadd.f32 %v8626_v57, %v8424_v13  ;;  %v8802_v19 = vmul.f32 %v8776_v52, %v8776_v52  ;;  %v8805_v29 = vmul.f32 0.2, %v8771_v31 }
 0x3f1   : > { %v8788_v11 = vpop.f32.mrb[62].mxu0  ;;  %v8809_v62 = vadd.f32 %v8616_v35, %v8436_v53  ;;  %v5855_v24 = vadd.f32 %v9331_v61, %v8665_v45  ;;  %v5432_v57 = vsel %vm5176_vm4, %v8658_v10, %v8704_v8  ;;  %v5564_v1 = vadd.f32 %v5563_v38, %v5431_v16 }
 0x3f2   : > { %v8798_v4 = vpop.f32.mrb[63].mxu0  ;;  %5850 = vadd.xlane.f32.xlu1 %v5849_v21  ;;  %vm5205_vm5 = vcmp.gt.f32.partialorder %v6140_v25, 0.0  ;;  %v5333_v40 = vmul.f32 0.2, %v6140_v25  ;;  %vm5191_vm6 = vcmp.gt.f32.partialorder %v8731_v43, 0.0  ;;  %v8824_v35 = vsel %vm5198_vm3, %v6139_v41, %v5326_v6 }
 0x3f3   : > { %9330 = vst [vmem:[#allocation9_spill] sm:$0xff] %v8798_v4  ;;  %v8813_v12 = vpop.f32.mrb[62].mxu1  ;;  %v8821_v55 = vmul.f32 0.2, %v8785_v33  ;;  %v5724_v45 = vmul.f32 %v5431_v16, %v5431_v16  ;;  %v5856_v58 = vadd.f32 %v5855_v24, %v8701_v59  ;;  %v5565_v21 = vadd.f32 %v5564_v1, %v5432_v57  ;;  %v9333_v24 = vld [vmem:[#allocation42_spill] sm:$0xff] }
 0x3f4   : > { %v8817_v50 = vpop.f32.mrb[63].mxu1  ;;  %v5461_v61 = vsel %vm5205_vm5, %v6140_v25, %v5333_v40  ;;  %v8829_v10 = vadd.f32 %v8639_v37, %v8430_v56  ;;  %v6141_v8 = vadd.f32 %v8635_v0, %v8427_v28  ;;  %v8833_v38 = vmul.f32 %v5453_v23, %v5453_v23 }
 0x3f5   : > { %9332 = vst [vmem:[#allocation10_spill] sm:$0xff] %v8817_v50  ;;  %v8836_v50 = vadd.f32 %v8190_v18, %v5461_v61  ;;  %v5725_v4 = vmul.f32 %v5432_v57, %v5432_v57  ;;  %v5857_v41 = vadd.f32 %v5856_v58, %v5724_v45  ;;  %v8840_v6 = vmul.f32 %v8824_v35, %v8824_v35 }
 0x3f6   : > { %v8843_v59 = vmul.f32 0.2, %v8809_v62  ;;  %5566 = vadd.xlane.f32.xlu0 %v5565_v21  ;;  %v8847_v37 = vadd.f32 %v8647_v5, %v8436_v53  ;;  %vm5184_vm7 = vcmp.gt.f32.partialorder %v8688_v48, 0.0  ;;  %v5439_v18 = vsel %vm5183_vm2, %v8671_v26, %v8710_v49 }
 0x3f7   : > { %v5858_v0 = vadd.f32 %v5857_v41, %v5725_v4  ;;  %v5572_v23 = vadd.f32 %v8661_v17, %v8717_v54  ;;  %v6142_v16 = vadd.f32 %v8654_v27, %v8424_v13  ;;  %v8859_v25 = vmul.f32 0.2, %v8829_v10 }
 0x3f8   : > { %vm5206_vm8 = vcmp.gt.f32.partialorder %v6141_v8, 0.0  ;;  %v5334_v5 = vmul.f32 0.2, %v6141_v8  ;;  %v5864_v57 = vadd.f32 %v9333_v24, %v8724_v2  ;;  %v5440_v4 = vsel %vm5184_vm7, %v8688_v48, %v8727_v30 }
 0x3f9   : > { %5859 = vadd.xlane.f32.xlu1 %v5858_v0  ;;  %v5573_v1 = vadd.f32 %v5572_v23, %v5439_v18  ;;  %vm5213_vm9 = vcmp.gt.f32.partialorder %v6142_v16, 0.0  ;;  %v5341_v26 = vmul.f32 0.2, %v6142_v16  ;;  %vm5199_vm10 = vcmp.gt.f32.partialorder %v8785_v33, 0.0  ;;  %v9334_v23 = vld [vmem:[#allocation43_spill] sm:$0xff] }
 0x3fa   : > { %v8866_v17 = vmul.f32 %v5461_v61, %v5461_v61  ;;  %v5732_v27 = vmul.f32 %v5439_v18, %v5439_v18  ;;  %v5865_v49 = vadd.f32 %v5864_v57, %v8748_v3  ;;  %v6143_v54 = vadd.f32 %v8663_v32, %v8427_v28 }
 0x3fb   : > { %v8872_v40 = vmul.f32 0.2, %v8847_v37  ;;  %v5574_v2 = vadd.f32 %v5573_v1, %v5440_v4  ;;  %v5469_v45 = vsel %vm5213_vm9, %v6142_v16, %v5341_v26  ;;  %v8876_v48 = vadd.f32 %v8674_v15, %v8430_v56  ;;  %v9336_v1 = vld [vmem:[#allocation47_spill] sm:$0xff] }
 0x3fc   : > { %v8879_v30 = vsel %vm5206_vm8, %v6141_v8, %v5334_v5  ;;  %v8882_v58 = vadd.f32 %v8212_v34, %v5469_v45  ;;  %v5733_v21 = vmul.f32 %v5440_v4, %v5440_v4  ;;  %v5866_v3 = vadd.f32 %v5865_v49, %v5732_v27 }
 0x3fd   : > { %5575 = vadd.xlane.f32.xlu0 %v5574_v2  ;;  %vm5214_vm11 = vcmp.gt.f32.partialorder %v6143_v54, 0.0  ;;  %v5342_v32 = vmul.f32 0.2, %v6143_v54  ;;  %v8886_v61 = vadd.f32 %v8684_v20, %v8436_v53  ;;  %vm5192_vm12 = vcmp.gt.f32.partialorder %v8771_v31, 0.0 }
 0x3fe   : > { %v5867_v41 = vadd.f32 %v5866_v3, %v5733_v21  ;;  %v5447_v15 = vsel %vm5191_vm6, %v8731_v43, %v8760_v51  ;;  %v5581_v34 = vadd.f32 %v8720_v46, %v8776_v52  ;;  %v6144_v8 = vadd.f32 %v8692_v39, %v8424_v13 }
 0x3ff   : > { %v8899_v0 = vmul.f32 %v8879_v30, %v8879_v30  ;;  %v8901_v20 = vmul.f32 %v5469_v45, %v5469_v45  ;;  %v8904_v18 = vmul.f32 0.2, %v8876_v48  ;;  %v5873_v16 = vadd.f32 %v9334_v23, %v8767_v63 }
 0x400   : > { %5868 = vadd.xlane.f32.xlu1 %v5867_v41  ;;  %v5448_v43 = vsel %vm5192_vm12, %v8771_v31, %v8805_v29  ;;  %v5582_v46 = vadd.f32 %v5581_v34, %v5447_v15  ;;  %vm5221_vm13 = vcmp.gt.f32.partialorder %v6144_v8, 0.0  ;;  %v5349_v52 = vmul.f32 0.2, %v6144_v8  ;;  %v9335_v31 = vld [vmem:[#allocation38_spill] sm:$0xff] }
 0x401   : > { %vm5207_vm14 = vcmp.gt.f32.partialorder %v8829_v10, 0.0  ;;  %v8912_v39 = vsel %vm5214_vm11, %v6143_v54, %v5342_v32  ;;  %v5740_v51 = vmul.f32 %v5447_v15, %v5447_v15  ;;  %v5874_v5 = vadd.f32 %v5873_v16, %v8802_v19  ;;  %v9337_v15 = vld [vmem:[#allocation44_spill] sm:$0xff] }
 0x402   : > { %v6145_v24 = vadd.f32 %v8696_v7, %v8427_v28  ;;  %v8918_v63 = vmul.f32 0.2, %v8886_v61  ;;  %v5583_v57 = vadd.f32 %v5582_v46, %v5448_v43  ;;  %v5477_v4 = vsel %vm5221_vm13, %v6144_v8, %v5349_v52 }
 0x403   : > { %v8922_v29 = vadd.f32 %v9335_v31, %v8430_v56  ;;  %v8925_v26 = vadd.f32 %v9336_v1, %v5477_v4  ;;  %v5741_v27 = vmul.f32 %v5448_v43, %v5448_v43  ;;  %v5875_v49 = vadd.f32 %v5874_v5, %v5740_v51  ;;  %v9338_v43 = vld [vmem:[#allocation31_spill] sm:$0xff]  ;;  %v9340_v31 = vld [vmem:[#allocation8_spill] sm:$0xff] }
 0x404   : > { %vm5200_vm15 = vcmp.gt.f32.partialorder %v8809_v62, 0.0  ;;  %v8930_v19 = vmul.f32 %v8912_v39, %v8912_v39  ;;  %5584 = vadd.xlane.f32.xlu0 %v5583_v57  ;;  %vm5222_vm0 = vcmp.gt.f32.partialorder %v6145_v24, 0.0  ;;  %v5350_v7 = vmul.f32 0.2, %v6145_v24  ;;  %v9339_v51 = vld [vmem:[#allocation39_spill] sm:$0xff] }
 0x405   : > { %v8934_v54 = vadd.f32 %v8714_v14, %v8436_v53  ;;  %v5876_v2 = vadd.f32 %v5875_v49, %v5741_v27  ;;  %v5455_v45 = vsel %vm5199_vm10, %v8785_v33, %v8821_v55  ;;  %v5590_v21 = vadd.f32 %v8779_v44, %v8824_v35 }
 0x406   : > { %v6146_v3 = vadd.f32 %v8722_v22, %v8424_v13  ;;  %v8945_v32 = vmul.f32 0.2, %v8922_v29  ;;  %v5456_v41 = vsel %vm5200_vm15, %v8809_v62, %v8843_v59  ;;  %v8951_v14 = vadd.f32 %v8744_v36, %v8430_v56 }
 0x407   : > { %v5882_v34 = vadd.f32 %v9337_v15, %v8833_v38  ;;  %vm5215_vm1 = vcmp.gt.f32.partialorder %v8876_v48, 0.0  ;;  %5877 = vadd.xlane.f32.xlu1 %v5876_v2  ;;  %v8956_v44 = vsel %vm5222_vm0, %v6145_v24, %v5350_v7  ;;  %v5591_v33 = vadd.f32 %v5590_v21, %v5455_v45  ;;  %v9341_v2 = vld [vmem:[#allocation45_spill] sm:$0xff]  ;;  %v9342_v15 = vld [vmem:[#allocation36_spill] sm:$0xff] }
 0x408   : > { %vm5229_vm2 = vcmp.gt.f32.partialorder %v6146_v3, 0.0  ;;  %v5357_v22 = vmul.f32 0.2, %v6146_v3  ;;  %v8958_v55 = vmul.f32 %v5477_v4, %v5477_v4  ;;  %v5748_v35 = vmul.f32 %v5455_v45, %v5455_v45 }
 0x409   : > { %v5883_v62 = vadd.f32 %v5882_v34, %v8840_v6  ;;  %v6147_v36 = vadd.f32 %v8734_v9, %v8427_v28  ;;  %v8964_v59 = vmul.f32 0.2, %v8934_v54  ;;  %v5592_v38 = vadd.f32 %v5591_v33, %v5456_v41 }
 0x40a   : > { %v5485_v8 = vsel %vm5229_vm2, %v6146_v3, %v5357_v22  ;;  %v5749_v23 = vmul.f32 %v5456_v41, %v5456_v41  ;;  %v8968_v16 = vmul.f32 %v8956_v44, %v8956_v44  ;;  %vm5208_vm3 = vcmp.gt.f32.partialorder %v8847_v37, 0.0 }
 0x40b   : > { %v8971_v46 = vadd.f32 %v9338_v43, %v5485_v8  ;;  %v5884_v52 = vadd.f32 %v5883_v62, %v5748_v35  ;;  %5593 = vadd.xlane.f32.xlu0 %v5592_v38  ;;  %v8975_v6 = vmul.f32 0.2, %v8951_v14  ;;  %vm5230_vm4 = vcmp.gt.f32.partialorder %v6147_v36, 0.0 }
 0x40c   : > { %v5358_v9 = vmul.f32 0.2, %v6147_v36  ;;  %v8979_v5 = vadd.f32 %v9339_v51, %v8436_v53  ;;  %v5463_v57 = vsel %vm5207_vm14, %v8829_v10, %v8859_v25  ;;  %v5599_v4 = vadd.f32 %v8836_v50, %v8879_v30 }
 0x40d   : > { %v5885_v24 = vadd.f32 %v5884_v52, %v5749_v23  ;;  %v6148_v1 = vadd.f32 %v9340_v31, %v8424_v13  ;;  %v8989_v27 = vmul.f32 %v5485_v8, %v5485_v8  ;;  %v5464_v49 = vsel %vm5208_vm3, %v8847_v37, %v8872_v40 }
 0x40e   : > { %v8995_v7 = vadd.f32 %v8773_v42, %v8430_v56  ;;  %v5891_v45 = vadd.f32 %v9341_v2, %v8866_v17  ;;  %vm5223_vm5 = vcmp.gt.f32.partialorder %v8922_v29, 0.0  ;;  %v9000_v10 = vsel %vm5230_vm4, %v6147_v36, %v5358_v9 }
 0x40f   : > { %5886 = vadd.xlane.f32.xlu1 %v5885_v24  ;;  %v5600_v50 = vadd.f32 %v5599_v4, %v5463_v57  ;;  %vm5237_vm6 = vcmp.gt.f32.partialorder %v6148_v1, 0.0  ;;  %v5365_v25 = vmul.f32 0.2, %v6148_v1  ;;  %v9003_v30 = vmul.f32 0.2, %v8979_v5 }
 0x410   : > { %v5756_v21 = vmul.f32 %v5463_v57, %v5463_v57  ;;  %v5892_v37 = vadd.f32 %v5891_v45, %v8899_v0  ;;  %v6149_v42 = vadd.f32 %v8765_v60, %v8427_v28  ;;  %vm5231_vm7 = vcmp.gt.f32.partialorder %v8951_v14, 0.0  ;;  %v9346_v57 = vld [vmem:[#allocation37_spill] sm:$0xff] }
 0x411   : > { %v5601_v17 = vadd.f32 %v5600_v50, %v5464_v49  ;;  %v5493_v40 = vsel %vm5237_vm6, %v6148_v1, %v5365_v25  ;;  %v9011_v3 = vadd.f32 %v8781_v47, %v8436_v53  ;;  %vm5216_vm8 = vcmp.gt.f32.partialorder %v8886_v61, 0.0  ;;  %v9347_v25 = vld [vmem:[#allocation48_spill] sm:$0xff] }
 0x412   : > { %v5779_v41 = vmul.f32 %v9000_v10, %v9000_v10  ;;  %v9017_v34 = vadd.f32 %v9342_v15, %v5493_v40  ;;  %v5757_v0 = vmul.f32 %v5464_v49, %v5464_v49  ;;  %v5893_v33 = vadd.f32 %v5892_v37, %v5756_v21 }
 0x413   : > { %5602 = vadd.xlane.f32.xlu0 %v5601_v17  ;;  %v5367_v60 = vmul.f32 0.2, %v8995_v7  ;;  %vm5238_vm9 = vcmp.gt.f32.partialorder %v6149_v42, 0.0  ;;  %v5366_v22 = vmul.f32 0.2, %v6149_v42  ;;  %v5471_v47 = vsel %vm5215_vm1, %v8876_v48, %v8904_v18  ;;  %v9343_v48 = vld [vmem:[#allocation46_spill] sm:$0xff] }
 0x414   : > { %v5894_v35 = vadd.f32 %v5893_v33, %v5757_v0  ;;  %v5472_v62 = vsel %vm5216_vm8, %v8886_v61, %v8918_v63  ;;  %v5608_v36 = vadd.f32 %v8882_v58, %v8912_v39  ;;  %v6150_v38 = vadd.f32 %v8788_v11, %v8424_v13  ;;  %v9344_v11 = vld [vmem:[#allocation9_spill] sm:$0xff] }
 0x415   : > { %v5786_v8 = vmul.f32 %v5493_v40, %v5493_v40  ;;  %vm5239_vm10 = vcmp.gt.f32.partialorder %v8995_v7, 0.0  ;;  %v5368_v23 = vmul.f32 0.2, %v9011_v3  ;;  %v9034_v43 = vadd.f32 %v8813_v12, %v8430_v56  ;;  %v9345_v56 = vld [vmem:[#allocation10_spill] sm:$0xff] }
 0x416   : > { %v5900_v18 = vadd.f32 %v9343_v48, %v8901_v20  ;;  %5895 = vadd.xlane.f32.xlu1 %v5894_v35  ;;  %v5494_v61 = vsel %vm5238_vm9, %v6149_v42, %v5366_v22  ;;  %v5609_v63 = vadd.f32 %v5608_v36, %v5471_v47  ;;  %vm5245_vm11 = vcmp.gt.f32.partialorder %v6150_v38, 0.0 }
 0x417   : > { %v5373_v58 = vmul.f32 0.2, %v6150_v38  ;;  %v5764_v39 = vmul.f32 %v5471_v47, %v5471_v47  ;;  %v5765_v52 = vmul.f32 %v5472_v62, %v5472_v62  ;;  %v6151_v9 = vadd.f32 %v9344_v11, %v8427_v28 }
 0x418   : > { %v5901_v13 = vadd.f32 %v5900_v18, %v8930_v19  ;;  %v5610_v51 = vadd.f32 %v5609_v63, %v5472_v62  ;;  %v6183_v12 = vadd.f32 %v9345_v56, %v8436_v53  ;;  %vm5224_vm12 = vcmp.gt.f32.partialorder %v8934_v54, 0.0 }
 0x419   : > { %v5501_v24 = vsel %vm5245_vm11, %v6150_v38, %v5373_v58  ;;  %v5787_v20 = vmul.f32 %v5494_v61, %v5494_v61  ;;  %vm5247_vm13 = vcmp.gt.f32.partialorder %v9034_v43, 0.0  ;;  %v5375_v1 = vmul.f32 0.2, %v9034_v43 }
 0x41a   : > { %v5643_v4 = vadd.f32 %v9346_v57, %v5501_v24  ;;  %v5902_v31 = vadd.f32 %v5901_v13, %v5764_v39  ;;  %5611 = vadd.xlane.f32.xlu0 %v5610_v51  ;;  %v5374_v19 = vmul.f32 0.2, %v6151_v9  ;;  %v5479_v28 = vsel %vm5223_vm5, %v8922_v29, %v8945_v32 }
 0x41b   : > { %v5480_v53 = vsel %vm5224_vm12, %v8934_v54, %v8964_v59  ;;  %v5794_v49 = vmul.f32 %v5501_v24, %v5501_v24  ;;  %vm5246_vm14 = vcmp.gt.f32.partialorder %v6151_v9, 0.0  ;;  %v5617_v45 = vadd.f32 %v8925_v26, %v8956_v44 }
 0x41c   : > { %v5903_v2 = vadd.f32 %v5902_v31, %v5765_v52  ;;  %v5376_v50 = vmul.f32 0.2, %v6183_v12  ;;  %v5909_v21 = vadd.f32 %v9347_v25, %v8958_v55  ;;  %vm5232_vm15 = vcmp.gt.f32.partialorder %v8979_v5, 0.0  ;;  %v9348_v55 = vld [vmem:[#allocation33_spill] sm:$0xff] }
 0x41d   : > { %v5487_v29 = vsel %vm5231_vm7, %v8951_v14, %v8975_v6  ;;  %v5618_v32 = vadd.f32 %v5617_v45, %v5479_v28  ;;  %v5772_v54 = vmul.f32 %v5479_v28, %v5479_v28  ;;  %v5773_v59 = vmul.f32 %v5480_v53, %v5480_v53 }
 0x41e   : > { %5904 = vadd.xlane.f32.xlu1 %v5903_v2  ;;  %v5626_v37 = vadd.f32 %v8971_v46, %v9000_v10  ;;  %v5502_v42 = vsel %vm5246_vm14, %v6151_v9, %v5374_v19  ;;  %v5910_v26 = vadd.f32 %v5909_v21, %v8968_v16  ;;  %v5488_v44 = vsel %vm5232_vm15, %v8979_v5, %v9003_v30  ;;  %v9349_v30 = vld [vmem:[#allocation49_spill] sm:$0xff] }
 0x41f   : > { %v5918_v17 = vadd.f32 %v9348_v55, %v8989_v27  ;;  %v5619_v40 = vadd.f32 %v5618_v32, %v5480_v53  ;;  %v5780_v0 = vmul.f32 %v5487_v29, %v5487_v29  ;;  %vm5240_vm0 = vcmp.gt.f32.partialorder %v9011_v3, 0.0 }
 0x420   : > { %v5627_v15 = vadd.f32 %v5626_v37, %v5487_v29  ;;  %v5911_v14 = vadd.f32 %v5910_v26, %v5772_v54  ;;  %v5495_v46 = vsel %vm5239_vm10, %v8995_v7, %v5367_v60  ;;  %v5635_v10 = vadd.f32 %v9017_v34, %v5494_v61  ;;  %v9350_v61 = vld [vmem:[#allocation50_spill] sm:$0xff] }
 0x421   : > { %v5919_v6 = vadd.f32 %v5918_v17, %v5779_v41  ;;  %v5795_v16 = vmul.f32 %v5502_v42, %v5502_v42  ;;  %5620 = vadd.xlane.f32.xlu0 %v5619_v40  ;;  %v5781_v5 = vmul.f32 %v5488_v44, %v5488_v44  ;;  %v5927_v22 = vadd.f32 %v9349_v30, %v5786_v8 }
 0x422   : > { %v5628_v33 = vadd.f32 %v5627_v15, %v5488_v44  ;;  %v5912_v27 = vadd.f32 %v5911_v14, %v5773_v59  ;;  %v5496_v35 = vsel %vm5240_vm0, %v9011_v3, %v5368_v23  ;;  %v5636_v62 = vadd.f32 %v5635_v10, %v5495_v46 }
 0x423   : > { %v5920_v47 = vadd.f32 %v5919_v6, %v5780_v0  ;;  %v5788_v36 = vmul.f32 %v5495_v46, %v5495_v46  ;;  %v5928_v38 = vadd.f32 %v5927_v22, %v5787_v20  ;;  %vm5248_vm1 = vcmp.gt.f32.partialorder %v6183_v12, 0.0 }
 0x424   : > { %v5644_v41 = vadd.f32 %v5643_v4, %v5502_v42  ;;  %5913 = vadd.xlane.f32.xlu1 %v5912_v27  ;;  %v5637_v7 = vadd.f32 %v5636_v62, %v5496_v35  ;;  %v5503_v34 = vsel %vm5247_vm13, %v9034_v43, %v5375_v1  ;;  %v5789_v60 = vmul.f32 %v5496_v35, %v5496_v35 }
 0x425   : > { %v5921_v48 = vadd.f32 %v5920_v47, %v5781_v5  ;;  %5629 = vadd.xlane.f32.xlu0 %v5628_v33  ;;  %v5929_v18 = vadd.f32 %v5928_v38, %v5788_v36  ;;  %v5936_v63 = vadd.f32 %v9350_v61, %v5794_v49  ;;  %v5504_v58 = vsel %vm5248_vm1, %v6183_v12, %v5376_v50 }
 0x426   : > { %v5645_v8 = vadd.f32 %v5644_v41, %v5503_v34  ;;  %v5796_v39 = vmul.f32 %v5503_v34, %v5503_v34  ;;  %v5797_v13 = vmul.f32 %v5504_v58, %v5504_v58 }
 0x427   : > { %v5930_v3 = vadd.f32 %v5929_v18, %v5789_v60  ;;  %v5937_v52 = vadd.f32 %v5936_v63, %v5795_v16 }
 0x428   : > { %v5646_v23 = vadd.f32 %v5645_v8, %v5504_v58  ;;  %5922 = vadd.xlane.f32.xlu1 %v5921_v48 }
 0x429   : > { %5638 = vadd.xlane.f32.xlu0 %v5637_v7  ;;  %v5938_v11 = vadd.f32 %v5937_v52, %v5796_v39 }
 0x42b   : > { %v5939_v9 = vadd.f32 %v5938_v11, %v5797_v13 }
 0x42c   : > { %5931 = vadd.xlane.f32.xlu1 %v5930_v3 }
 0x42d   : > { %5647 = vadd.xlane.f32.xlu0 %v5646_v23 }
 0x430   : > { %5940 = vadd.xlane.f32.xlu1 %v5939_v9 }
 0x455   : > { %v5513_v43 = vpop.xlane.xlu0 %5512 }
 0x45c   : > { %v5806_v51 = vpop.xlane.xlu1 %5805 }
 0x45d   : > { %v5522_v24 = vpop.xlane.xlu0 %5521 }
 0x45e   : > { %v5649_v29 = vadd.f32 %v5522_v24, %v5513_v43 }
 0x462   : > { %v5815_v56 = vpop.xlane.xlu1 %5814 }
 0x463   : > { %v5942_v59 = vadd.f32 %v5815_v56, %v5806_v51 }
 0x466   : > { %v5531_v20 = vpop.xlane.xlu0 %5530 }
 0x467   : > { %v5650_v54 = vadd.f32 %v5649_v29, %v5531_v20 }
 0x469   : > { %v5824_v57 = vpop.xlane.xlu1 %5823 }
 0x46a   : > { %v5943_v26 = vadd.f32 %v5942_v59, %v5824_v57 }
 0x46d   : > { %v5540_v4 = vpop.xlane.xlu0 %5539 }
 0x46e   : > { %v5651_v42 = vadd.f32 %v5650_v54, %v5540_v4 }
 0x470   : > { %v5833_v12 = vpop.xlane.xlu1 %5832 }
 0x471   : > { %v5944_v17 = vadd.f32 %v5943_v26, %v5833_v12 }
 0x474   : > { %v5549_v31 = vpop.xlane.xlu0 %5548 }
 0x475   : > { %v5652_v44 = vadd.f32 %v5651_v42, %v5549_v31 }
 0x478   : > { %v5842_v1 = vpop.xlane.xlu1 %5841 }
 0x479   : > { %v5945_v15 = vadd.f32 %v5944_v17, %v5842_v1 }
 0x47c   : > { %v5558_v19 = vpop.xlane.xlu0 %5557 }
 0x47d   : > { %v5653_v40 = vadd.f32 %v5652_v44, %v5558_v19  ;;  %v6922_v19 = vmov (!%p6049_p4), 0.0  }
 0x47e   : > { %5967 = vst [vmem:[#allocation2] sm:$0x1] (!%p6049_p4), %v6922_v19  ;;  %5968 = vst [vmem:[#allocation4] sm:$0x1] (!%p6049_p4), %v6922_v19 }
 0x47f   : > { %v5851_v28 = vpop.xlane.xlu1 %5850 }
 0x480   : > { %v5946_v6 = vadd.f32 %v5945_v15, %v5851_v28 }
 0x483   : > { %v5567_v53 = vpop.xlane.xlu0 %5566 }
 0x484   : > { %v5654_v14 = vadd.f32 %v5653_v40, %v5567_v53 }
 0x486   : > { %v5860_v49 = vpop.xlane.xlu1 %5859 }
 0x487   : > { %v5947_v16 = vadd.f32 %v5946_v6, %v5860_v49 }
 0x48a   : > { %v5576_v2 = vpop.xlane.xlu0 %5575 }
 0x48b   : > { %v5655_v46 = vadd.f32 %v5654_v14, %v5576_v2 }
 0x48d   : > { %v5869_v45 = vpop.xlane.xlu1 %5868 }
 0x48e   : > { %v5948_v5 = vadd.f32 %v5947_v16, %v5869_v45 }
 0x491   : > { %v5585_v50 = vpop.xlane.xlu0 %5584 }
 0x492   : > { %v5656_v33 = vadd.f32 %v5655_v46, %v5585_v50 }
 0x494   : > { %v5878_v25 = vpop.xlane.xlu1 %5877 }
 0x495   : > { %v5949_v27 = vadd.f32 %v5948_v5, %v5878_v25 }
 0x498   : > { %v5594_v21 = vpop.xlane.xlu0 %5593 }
 0x499   : > { %v5657_v22 = vadd.f32 %v5656_v33, %v5594_v21 }
 0x49c   : > { %v5887_v32 = vpop.xlane.xlu1 %5886 }
 0x49d   : > { %v5950_v62 = vadd.f32 %v5949_v27, %v5887_v32 }
 0x4a0   : > { %v5603_v37 = vpop.xlane.xlu0 %5602 }
 0x4a1   : > { %v5658_v47 = vadd.f32 %v5657_v22, %v5603_v37 }
 0x4a3   : > { %v5896_v55 = vpop.xlane.xlu1 %5895 }
 0x4a4   : > { %v5951_v41 = vadd.f32 %v5950_v62, %v5896_v55 }
 0x4a7   : > { %v5612_v0 = vpop.xlane.xlu0 %5611 }
 0x4a8   : > { %v5659_v38 = vadd.f32 %v5658_v47, %v5612_v0 }
 0x4ab   : > { %v5905_v10 = vpop.xlane.xlu1 %5904 }
 0x4ac   : > { %v5952_v34 = vadd.f32 %v5951_v41, %v5905_v10 }
 0x4ae   : > { %v5621_v30 = vpop.xlane.xlu0 %5620 }
 0x4af   : > { %v5660_v48 = vadd.f32 %v5659_v38, %v5621_v30 }
 0x4b1   : > { %v5914_v35 = vpop.xlane.xlu1 %5913 }
 0x4b2   : > { %v5630_v36 = vpop.xlane.xlu0 %5629  ;;  %v5953_v8 = vadd.f32 %v5952_v34, %v5914_v35 }
 0x4b3   : > { %v5661_v18 = vadd.f32 %v5660_v48, %v5630_v36 }
 0x4b5   : > { %v5923_v7 = vpop.xlane.xlu1 %5922 }
 0x4b6   : > { %v5639_v60 = vpop.xlane.xlu0 %5638  ;;  %v5954_v58 = vadd.f32 %v5953_v8, %v5923_v7 }
 0x4b7   : > { %v5662_v61 = vadd.f32 %v5661_v18, %v5639_v60 }
 0x4b9   : > { %v5932_v63 = vpop.xlane.xlu1 %5931 }
 0x4ba   : > { %v5648_v3 = vpop.xlane.xlu0 %5647  ;;  %v5955_v39 = vadd.f32 %v5954_v58, %v5932_v63 }
 0x4bb   : > { %v5663_v23 = vadd.f32 %v5662_v61, %v5648_v3 }
 0x4bd   : > { %v5664_v52 = vrot.slane %v5663_v23, 4  ;;  %v5941_v13 = vpop.xlane.xlu1 %5940 }
 0x4be   : > { %v5956_v11 = vadd.f32 %v5955_v39, %v5941_v13 }
 0x4bf   : > { %v5665_v9 = vadd.f32 %v5664_v52, %v5663_v23 }
 0x4c0   : > { %v5957_v43 = vrot.slane %v5956_v11, 4 }
 0x4c1   : > { %v5666_v51 = vrot.slane %v5665_v9, 2 }
 0x4c2   : > { %v5958_v24 = vadd.f32 %v5957_v43, %v5956_v11 }
 0x4c3   : > { %v5667_v56 = vadd.f32 %v5666_v51, %v5665_v9 }
 0x4c4   : > { %v5959_v20 = vrot.slane %v5958_v24, 2  ;;  %5966 = sbr.rel (%p6049_p4) target bundleno = 1227 (0x4cb), region = 36 }
 0x4c5   : > { %v5668_v57 = vrot.slane %v5667_v56, 1 }
 0x4c6   : > { %v5960_v4 = vadd.f32 %v5959_v20, %v5958_v24 }
 0x4c7   : > { %v5669_v12 = vadd.f32 %v5668_v57, %v5667_v56 }
 0x4c8   : > { %v5961_v31 = vrot.slane %v5960_v4, 1 }
 0x4ca   : > { %v5962_v1 = vadd.f32 %v5961_v31, %v5960_v4 }
 0x4cb PF: > { %v5969_v28 = vld [vmem:[#allocation2] sm:$0x1]  ;;  %v5972_v53 = vld [vmem:[#allocation4] sm:$0x1]  ;;  %p6832_p5 = scmp.eq.s32.totalorder %s6956_s16, 1  ;;  %s6923_s8 = smov [#allocation2]  }
 0x4cc   : > { %v5970_v49 = vadd.f32 %v5969_v28, %v5669_v12  ;;  %v5973_v2 = vadd.f32 %v5972_v53, %v5962_v1  ;;  %s5982_s9 = sshll.u32 %s6923_s8, 4  ;;  %s6924_s10 = smov [#allocation4]   ;;  %s5983_s9 = int_to_ptr.vmem [resolvable:$true] %s5982_s9 }
 0x4cd   : > { %s5993_s11 = sshll.u32 %s6924_s10, 4  ;;  %s6853_s12 = scalar_lea.vmem %s5983_s9, 16  ;;  %s9082_s11 = int_to_ptr.vmem [resolvable:$true] %s5993_s11 }
 0x4ce   : > { %5971 = vst [vmem:[#allocation2] sm:$0x1] %v5970_v49  ;;  %5974 = vst [vmem:[#allocation4] sm:$0x1] %v5973_v2  ;;  %p6854_p6 = scmp.ne.s32.totalorder %s5983_s9, %s6853_s12  ;;  %s6859_s13 = scalar_lea.vmem %s5983_s9, 32 }
 0x4cf   : > { %p6860_p9 = scmp.lt.s32.totalorder %s5983_s9, %s5983_s9  ;;  %p6861_p10 = scmp.lt.s32.totalorder %s6859_s13, %s6853_s12 }
 0x4d0   : > { %p6855_p7 = pnand %p6854_p6, %p6832_p5 }
 0x4d1   : > { %p6862_p11 = por %p6861_p10, %p6860_p9 }
 0x4d2   : > { %p6856_p8 = pneg %p6855_p7 }
 0x4d4   : > { %p6863_p12 = pnand %p6862_p11, %p6856_p8 }
 0x4d6   : > { %6866 = shalt.err (!%p6863_p12)
}
 0x4d7   : > { %s6867_s18 = scalar_lea.hbm %s9140_s3, 16 }
 0x4d8   : > { %p6868_p13 = scmp.ne.s32.totalorder %s9140_s3, %s6867_s18  ;;  %p6873_p2 = scmp.lt.u32.totalorder %s6867_s18, %s9140_s3 }
 0x4da   : > { %p6869_p0 = pnand %p6868_p13, %p6832_p5 }
 0x4dc   : > { %p6870_p1 = pneg %p6869_p0 }
 0x4de   : > { %p6875_p3 = pnand %p6873_p2, %p6870_p1 }
 0x4e0   : > { %6878 = shalt.err (!%p6875_p3)
}
 0x4e1   : > { %6825 = dma.vmem_to_hbm [thread:$0]  (%p6832_p5), %s5983_s9, 16, %s9140_s3, [#allocation3]  }
 0x4e2   : > { %s6879_s25 = scalar_lea.vmem %s9082_s11, 16  ;;  %s6885_s26 = scalar_lea.vmem %s9082_s11, 32 }
 0x4e3   : > { %p6880_p4 = scmp.ne.s32.totalorder %s9082_s11, %s6879_s25  ;;  %p6886_p8 = scmp.lt.s32.totalorder %s9082_s11, %s9082_s11 }
 0x4e4   : > { %p6887_p9 = scmp.lt.s32.totalorder %s6885_s26, %s6879_s25 }
 0x4e5   : > { %p6881_p6 = pnand %p6880_p4, %p6832_p5 }
 0x4e6   : > { %p6888_p10 = por %p6887_p9, %p6886_p8 }
 0x4e7   : > { %p6882_p7 = pneg %p6881_p6 }
 0x4e9   : > { %p6889_p11 = pnand %p6888_p10, %p6882_p7 }
 0x4eb   : > { %6892 = shalt.err (!%p6889_p11)
}
 0x4ec   : > { %s6893_s29 = scalar_lea.hbm %s9141_s4, 16 }
 0x4ed   : > { %p6894_p12 = scmp.ne.s32.totalorder %s9141_s4, %s6893_s29  ;;  %p6899_p1 = scmp.lt.u32.totalorder %s6893_s29, %s9141_s4 }
 0x4ef   : > { %p6895_p13 = pnand %p6894_p12, %p6832_p5 }
 0x4f1   : > { %p6896_p0 = pneg %p6895_p13 }
 0x4f3   : > { %p6901_p2 = pnand %p6899_p1, %p6896_p0 }
 0x4f5   : > { %6904 = shalt.err (!%p6901_p2)
}
 0x4f6   : > { %6827 = dma.vmem_to_hbm [thread:$0]  (%p6832_p5), %s9082_s11, 16, %s9141_s4, [#allocation5]  }
 0x4f7   : > { %6910 = dma.done.wait (%p6832_p5), [#allocation3], 16  }
 0x4f8   : > { %6912 = vsyncadd (%p6832_p5), [#allocation3], 4294967280 }
 0x4f9   : > { %6914 = dma.done.wait (%p6832_p5), [#allocation5], 16  }
 0x4fa   : > { %6916 = vsyncadd (%p6832_p5), [#allocation5], 4294967280 }
 0x4fb PF: > { %s17_s15 = sadd.s32 1, %s6919_s15  }
 0x4fc   : > { %p14_p3 = scmp.ge.s32.totalorder %s17_s15, 4  }
 0x4fe   :  { %16 = sbr.rel (!%p14_p3) target bundleno = 2 (0x2), region = 71 }
 0x505   :  { %6010 = vsyncpa [#allocation3], 1 }
 0x506   :  { %6012 = vsyncpa [#allocation3 + $0x1], 1 }
 0x507   :  { %6013 = vsyncpa [#allocation5], 1 }

</bundles_post_ra>
